<compile_context>
chip_gen: v7x
topology: tpu7x:2x2x1
jax: 0.10.0
libtpu: 0.0.40
codegen_flags: <defaults>
</compile_context>

<pallas_src>
import functools

import jax
import jax.numpy as jnp
from jax.experimental import pallas as pl
from jax.experimental.pallas import tpu as pltpu

LANE = 128


def _round_up(x, m):
    return (x + m - 1) // m * m


def rot_green_kernel(x_ref, w1_ref, b1_ref, w2_ref, b2_ref,
                     w3_ref, b3_ref, w4_ref, b4_ref, out_ref,
                     *, batch, npts):
    x = x_ref[...]                                                     # (B*N, Fp) bf16
    # relu(bn1(conv1(x)))  -- BN folded into w1/b1
    h1 = jnp.dot(x, w1_ref[...], preferred_element_type=jnp.float32) + b1_ref[...]
    h1 = jnp.maximum(h1, 0.0).astype(jnp.bfloat16)                     # (B*N, 1024)
    # relu(bn2(conv2(x)))
    h2 = jnp.dot(h1, w2_ref[...], preferred_element_type=jnp.float32) + b2_ref[...]
    h2 = jnp.maximum(h2, 0.0)                                          # (B*N, 256) f32
    # torch.max(x, dim=2, keepdim=True)[0] -> per-batch max over the N points
    c2 = h2.shape[-1]
    g = jnp.max(h2.reshape(batch, npts, c2), axis=1)                   # (B, 256)
    # relu(bn3(conv3(x)))
    h3 = jnp.dot(g.astype(jnp.bfloat16), w3_ref[...],
                 preferred_element_type=jnp.float32) + b3_ref[...]
    h3 = jnp.maximum(h3, 0.0)                                          # (B, 256)
    # TODO(synk): Dropout(p=0.2) is identity in eval mode; training-mode dropout not implemented.
    out = jnp.dot(h3.astype(jnp.bfloat16), w4_ref[...],
                  preferred_element_type=jnp.float32) + b4_ref[...]
    out_ref[...] = out                                                 # (B, Kp)


def fold_bn(w, b, bn, eps=1e-5):
    """Fold eval-mode BatchNorm1d into a (C_out, C_in) conv weight and bias (f32)."""
    gamma, beta, mean, var = bn
    s = gamma / jnp.sqrt(var + eps)
    return w * s[:, None], s * b + beta - s * mean


def rot_green_forward(x_ncl, params):
    B, F_in, N = x_ncl.shape

    w1, b1 = fold_bn(params["w1"], params["b1"], params["bn1"])
    w2, b2 = fold_bn(params["w2"], params["b2"], params["bn2"])
    w3, b3 = fold_bn(params["w3"], params["b3"], params["bn3"])
    w4, b4 = params["w4"], params["b4"]
    k = w4.shape[0]

    f_pad = _round_up(F_in, LANE)        # 1036 -> 1152
    k_pad = _round_up(k, LANE)           # 24 -> 128

    # activations: NCL -> (B*N, Fp) bf16, channel axis zero-padded
    x = jnp.transpose(x_ncl, (0, 2, 1)).astype(jnp.float32)            # (B, N, F)
    x = jnp.pad(x, ((0, 0), (0, 0), (0, f_pad - F_in)))
    x2 = x.reshape(B * N, f_pad).astype(jnp.bfloat16)

    # kernel-side weights are (C_in, C_out) in bf16; biases stay f32 (1, C_out)
    w1k = jnp.pad(jnp.transpose(w1), ((0, f_pad - F_in), (0, 0))).astype(jnp.bfloat16)
    w2k = jnp.transpose(w2).astype(jnp.bfloat16)
    w3k = jnp.transpose(w3).astype(jnp.bfloat16)
    w4k = jnp.pad(jnp.transpose(w4), ((0, 0), (0, k_pad - k))).astype(jnp.bfloat16)
    b1k = b1.reshape(1, -1)
    b2k = b2.reshape(1, -1)
    b3k = b3.reshape(1, -1)
    b4k = jnp.pad(b4, (0, k_pad - k)).reshape(1, -1)

    def whole(arr):
        nd = arr.ndim
        return pl.BlockSpec(arr.shape, lambda i, _nd=nd: (0,) * _nd)

    c1, c2, c3 = w1k.shape[1], w2k.shape[1], w3k.shape[1]
    m = B * N
    flops = 2 * m * (f_pad * c1 + c1 * c2) + 2 * B * (c2 * c3 + c3 * k_pad)
    bytes_accessed = (x2.size * 2
                      + (w1k.size + w2k.size + w3k.size + w4k.size) * 2
                      + (b1k.size + b2k.size + b3k.size + b4k.size) * 4
                      + B * k_pad * 4)

    out = pl.pallas_call(
        functools.partial(rot_green_kernel, batch=B, npts=N),
        out_shape=jax.ShapeDtypeStruct((B, k_pad), jnp.float32),
        grid=(1,),
        in_specs=[whole(a) for a in
                  (x2, w1k, b1k, w2k, b2k, w3k, b3k, w4k, b4k)],
        out_specs=pl.BlockSpec((B, k_pad), lambda i: (0, 0)),
        compiler_params=pltpu.CompilerParams(
            dimension_semantics=("arbitrary",)),
        cost_estimate=pl.CostEstimate(
            flops=flops, transcendentals=0, bytes_accessed=bytes_accessed),
    )(x2, w1k, b1k, w2k, b2k, w3k, b3k, w4k, b4k)
    return out[:, :k]                                                  # (B, k)


def init_params(key, f=1036, k=24):
    keys = jax.random.split(key, 20)

    def conv(kw, kb, c_out, c_in):
        bound = 1.0 / (c_in ** 0.5)
        w = jax.random.uniform(kw, (c_out, c_in), jnp.float32, -bound, bound)
        b = jax.random.uniform(kb, (c_out,), jnp.float32, -bound, bound)
        return w, b

    def bn(kg, kb, km, kv, c):
        gamma = 1.0 + 0.1 * jax.random.normal(kg, (c,), jnp.float32)
        beta = 0.1 * jax.random.normal(kb, (c,), jnp.float32)
        mean = 0.1 * jax.random.normal(km, (c,), jnp.float32)
        var = jax.random.uniform(kv, (c,), jnp.float32, 0.5, 1.5)
        return (gamma, beta, mean, var)

    w1, b1 = conv(keys[0], keys[1], 1024, f)
    w2, b2 = conv(keys[2], keys[3], 256, 1024)
    w3, b3 = conv(keys[4], keys[5], 256, 256)
    w4, b4 = conv(keys[6], keys[7], k, 256)
    return dict(
        w1=w1, b1=b1, w2=w2, b2=b2, w3=w3, b3=b3, w4=w4, b4=b4,
        bn1=bn(keys[8], keys[9], keys[10], keys[11], 1024),
        bn2=bn(keys[12], keys[13], keys[14], keys[15], 256),
        bn3=bn(keys[16], keys[17], keys[18], keys[19], 256),
    )


def reference_forward(x_ncl, params, eps=1e-5):
    """Pure-JAX f32 replica of the PyTorch eval-mode forward (NCL layout)."""
    def conv1x1(x, w, b):
        return jnp.einsum("oc,bcn->bon", w, x) + b[None, :, None]

    def bn(x, p):
        g, be, m, v = p
        return (x - m[None, :, None]) / jnp.sqrt(v[None, :, None] + eps) \
            * g[None, :, None] + be[None, :, None]

    x = jax.nn.relu(bn(conv1x1(x_ncl, params["w1"], params["b1"]), params["bn1"]))
    x = jax.nn.relu(bn(conv1x1(x, params["w2"], params["b2"]), params["bn2"]))
    x = jnp.max(x, axis=2, keepdims=True)
    x = jax.nn.relu(bn(conv1x1(x, params["w3"], params["b3"]), params["bn3"]))
    x = conv1x1(x, params["w4"], params["b4"])
    return x[:, :, 0]


if __name__ == "__main__":
    B, F_IN, N, K = 2, 1036, 16, 24
    key = jax.random.PRNGKey(0)
    kx, kp = jax.random.split(key)
    x = jax.random.normal(kx, (B, F_IN, N), jnp.float32)   # PyTorch NCL input
    params = init_params(kp, f=F_IN, k=K)

    out = rot_green_forward(x, params)
    out = jax.block_until_ready(out)

    ref = reference_forward(x, params)
    assert out.shape == (B, K), out.shape
    # bf16 weights/activations vs f32 reference -> loosened tolerance
    assert jnp.allclose(out, ref, rtol=5e-2, atol=5e-2), \
        f"max abs err {jnp.max(jnp.abs(out - ref))}"
    print("KERNEL_OK")
</pallas_src>

<mosaic_0001>
module attributes {stable_mosaic.version = 11 : i64} {
  func.func @rot_green_kernel(%arg0: i32, %arg1: memref<32x1152xbf16, #tpu.memory_space<vmem>>, %arg2: memref<1152x1024xbf16, #tpu.memory_space<vmem>>, %arg3: memref<1x1024xf32, #tpu.memory_space<vmem>>, %arg4: memref<1024x256xbf16, #tpu.memory_space<vmem>>, %arg5: memref<1x256xf32, #tpu.memory_space<vmem>>, %arg6: memref<256x256xbf16, #tpu.memory_space<vmem>>, %arg7: memref<1x256xf32, #tpu.memory_space<vmem>>, %arg8: memref<256x128xbf16, #tpu.memory_space<vmem>>, %arg9: memref<1x128xf32, #tpu.memory_space<vmem>>, %arg10: memref<2x128xf32, #tpu.memory_space<vmem>>) attributes {dimension_semantics = [#tpu.dimension_semantics<arbitrary>], iteration_bounds = array<i64: 1>, scalar_prefetch = 0 : i64, scratch_operands = 0 : i64, tpu.core_type = #tpu.core_type<tc>, window_params = [{pipeline_mode = #tpu.pipeline_mode<synchronous>, transform_indices = @transform_0, window_bounds = array<i64: 32, 1152>}, {pipeline_mode = #tpu.pipeline_mode<synchronous>, transform_indices = @transform_1, window_bounds = array<i64: 1152, 1024>}, {pipeline_mode = #tpu.pipeline_mode<synchronous>, transform_indices = @transform_2, window_bounds = array<i64: 1, 1024>}, {pipeline_mode = #tpu.pipeline_mode<synchronous>, transform_indices = @transform_3, window_bounds = array<i64: 1024, 256>}, {pipeline_mode = #tpu.pipeline_mode<synchronous>, transform_indices = @transform_4, window_bounds = array<i64: 1, 256>}, {pipeline_mode = #tpu.pipeline_mode<synchronous>, transform_indices = @transform_5, window_bounds = array<i64: 256, 256>}, {pipeline_mode = #tpu.pipeline_mode<synchronous>, transform_indices = @transform_6, window_bounds = array<i64: 1, 256>}, {pipeline_mode = #tpu.pipeline_mode<synchronous>, transform_indices = @transform_7, window_bounds = array<i64: 256, 128>}, {pipeline_mode = #tpu.pipeline_mode<synchronous>, transform_indices = @transform_8, window_bounds = array<i64: 1, 128>}, {pipeline_mode = #tpu.pipeline_mode<synchronous>, transform_indices = @transform_9, window_bounds = array<i64: 2, 128>}]} {
    %c0 = arith.constant 0 : index
    %c0_0 = arith.constant 0 : index
    %0 = vector.load %arg1[%c0, %c0_0] : memref<32x1152xbf16, #tpu.memory_space<vmem>>, vector<32x1152xbf16>
    %c0_1 = arith.constant 0 : index
    %c0_2 = arith.constant 0 : index
    %1 = vector.load %arg2[%c0_1, %c0_2] : memref<1152x1024xbf16, #tpu.memory_space<vmem>>, vector<1152x1024xbf16>
    %cst = arith.constant dense<0.000000e+00> : vector<32x1024xf32>
    %2 = tpu.matmul %0, %1, %cst {dimension_numbers = #tpu.dot_dimension_numbers<[1], [0], [0], [1], [0, 0, 1, 1], [], []>} : vector<32x1152xbf16>, vector<1152x1024xbf16>, vector<32x1024xf32> -> vector<32x1024xf32>
    %c0_3 = arith.constant 0 : index
    %c0_4 = arith.constant 0 : index
    %3 = vector.load %arg3[%c0_3, %c0_4] : memref<1x1024xf32, #tpu.memory_space<vmem>>, vector<1x1024xf32>
    %4 = vector.broadcast %3 : vector<1x1024xf32> to vector<32x1024xf32>
    %5 = arith.addf %2, %4 : vector<32x1024xf32>
    %cst_5 = arith.constant 0.000000e+00 : f32
    %6 = vector.broadcast %cst_5 : f32 to vector<32x1024xf32>
    %7 = arith.maximumf %5, %6 : vector<32x1024xf32>
    %8 = arith.truncf %7 : vector<32x1024xf32> to vector<32x1024xbf16>
    %c0_6 = arith.constant 0 : index
    %c0_7 = arith.constant 0 : index
    %9 = vector.load %arg4[%c0_6, %c0_7] : memref<1024x256xbf16, #tpu.memory_space<vmem>>, vector<1024x256xbf16>
    %cst_8 = arith.constant dense<0.000000e+00> : vector<32x256xf32>
    %10 = tpu.matmul %8, %9, %cst_8 {dimension_numbers = #tpu.dot_dimension_numbers<[1], [0], [0], [1], [0, 0, 1, 1], [], []>} : vector<32x1024xbf16>, vector<1024x256xbf16>, vector<32x256xf32> -> vector<32x256xf32>
    %c0_9 = arith.constant 0 : index
    %c0_10 = arith.constant 0 : index
    %11 = vector.load %arg5[%c0_9, %c0_10] : memref<1x256xf32, #tpu.memory_space<vmem>>, vector<1x256xf32>
    %12 = vector.broadcast %11 : vector<1x256xf32> to vector<32x256xf32>
    %13 = arith.addf %10, %12 : vector<32x256xf32>
    %cst_11 = arith.constant 0.000000e+00 : f32
    %14 = vector.broadcast %cst_11 : f32 to vector<32x256xf32>
    %15 = arith.maximumf %13, %14 : vector<32x256xf32>
    %16 = vector.shape_cast %15 : vector<32x256xf32> to vector<2x16x256xf32>
    %cst_12 = arith.constant dense<0xFF800000> : vector<2x256xf32>
    %17 = vector.multi_reduction <maximumf>, %16, %cst_12 [1] : vector<2x16x256xf32> to vector<2x256xf32>
    %18 = arith.truncf %17 : vector<2x256xf32> to vector<2x256xbf16>
    %c0_13 = arith.constant 0 : index
    %c0_14 = arith.constant 0 : index
    %19 = vector.load %arg6[%c0_13, %c0_14] : memref<256x256xbf16, #tpu.memory_space<vmem>>, vector<256x256xbf16>
    %cst_15 = arith.constant dense<0.000000e+00> : vector<2x256xf32>
    %20 = tpu.matmul %18, %19, %cst_15 {dimension_numbers = #tpu.dot_dimension_numbers<[1], [0], [0], [1], [0, 0, 1, 1], [], []>} : vector<2x256xbf16>, vector<256x256xbf16>, vector<2x256xf32> -> vector<2x256xf32>
    %c0_16 = arith.constant 0 : index
    %c0_17 = arith.constant 0 : index
    %21 = vector.load %arg7[%c0_16, %c0_17] : memref<1x256xf32, #tpu.memory_space<vmem>>, vector<1x256xf32>
    %22 = vector.broadcast %21 : vector<1x256xf32> to vector<2x256xf32>
    %23 = arith.addf %20, %22 : vector<2x256xf32>
    %cst_18 = arith.constant 0.000000e+00 : f32
    %24 = vector.broadcast %cst_18 : f32 to vector<2x256xf32>
    %25 = arith.maximumf %23, %24 : vector<2x256xf32>
    %26 = arith.truncf %25 : vector<2x256xf32> to vector<2x256xbf16>
    %c0_19 = arith.constant 0 : index
    %c0_20 = arith.constant 0 : index
    %27 = vector.load %arg8[%c0_19, %c0_20] : memref<256x128xbf16, #tpu.memory_space<vmem>>, vector<256x128xbf16>
    %cst_21 = arith.constant dense<0.000000e+00> : vector<2x128xf32>
    %28 = tpu.matmul %26, %27, %cst_21 {dimension_numbers = #tpu.dot_dimension_numbers<[1], [0], [0], [1], [0, 0, 1, 1], [], []>} : vector<2x256xbf16>, vector<256x128xbf16>, vector<2x128xf32> -> vector<2x128xf32>
    %c0_22 = arith.constant 0 : index
    %c0_23 = arith.constant 0 : index
    %29 = vector.load %arg9[%c0_22, %c0_23] : memref<1x128xf32, #tpu.memory_space<vmem>>, vector<1x128xf32>
    %30 = vector.broadcast %29 : vector<1x128xf32> to vector<2x128xf32>
    %31 = arith.addf %28, %30 : vector<2x128xf32>
    %c0_24 = arith.constant 0 : index
    %c0_25 = arith.constant 0 : index
    %32 = vector.load %arg10[%c0_24, %c0_25] : memref<2x128xf32, #tpu.memory_space<vmem>>, vector<2x128xf32>
    tpu.vector_store %arg10[%c0_24, %c0_25], %31 {strides = array<i32>} : memref<2x128xf32, #tpu.memory_space<vmem>>, vector<2x128xf32>,
    return
  }
  func.func @transform_0(%arg0: i32) -> (i32, i32) {
    %c0_i32 = arith.constant 0 : i32
    %c0_i32_0 = arith.constant 0 : i32
    %c0_i32_1 = arith.constant 0 : i32
    return %c0_i32, %c0_i32_0 : i32, i32
  }
  func.func @transform_1(%arg0: i32) -> (i32, i32) {
    %c0_i32 = arith.constant 0 : i32
    %c0_i32_0 = arith.constant 0 : i32
    %c0_i32_1 = arith.constant 0 : i32
    return %c0_i32, %c0_i32_0 : i32, i32
  }
  func.func @transform_2(%arg0: i32) -> (i32, i32) {
    %c0_i32 = arith.constant 0 : i32
    %c0_i32_0 = arith.constant 0 : i32
    %c0_i32_1 = arith.constant 0 : i32
    return %c0_i32, %c0_i32_0 : i32, i32
  }
  func.func @transform_3(%arg0: i32) -> (i32, i32) {
    %c0_i32 = arith.constant 0 : i32
    %c0_i32_0 = arith.constant 0 : i32
    %c0_i32_1 = arith.constant 0 : i32
    return %c0_i32, %c0_i32_0 : i32, i32
  }
  func.func @transform_4(%arg0: i32) -> (i32, i32) {
    %c0_i32 = arith.constant 0 : i32
    %c0_i32_0 = arith.constant 0 : i32
    %c0_i32_1 = arith.constant 0 : i32
    return %c0_i32, %c0_i32_0 : i32, i32
  }
  func.func @transform_5(%arg0: i32) -> (i32, i32) {
    %c0_i32 = arith.constant 0 : i32
    %c0_i32_0 = arith.constant 0 : i32
    %c0_i32_1 = arith.constant 0 : i32
    return %c0_i32, %c0_i32_0 : i32, i32
  }
  func.func @transform_6(%arg0: i32) -> (i32, i32) {
    %c0_i32 = arith.constant 0 : i32
    %c0_i32_0 = arith.constant 0 : i32
    %c0_i32_1 = arith.constant 0 : i32
    return %c0_i32, %c0_i32_0 : i32, i32
  }
  func.func @transform_7(%arg0: i32) -> (i32, i32) {
    %c0_i32 = arith.constant 0 : i32
    %c0_i32_0 = arith.constant 0 : i32
    %c0_i32_1 = arith.constant 0 : i32
    return %c0_i32, %c0_i32_0 : i32, i32
  }
  func.func @transform_8(%arg0: i32) -> (i32, i32) {
    %c0_i32 = arith.constant 0 : i32
    %c0_i32_0 = arith.constant 0 : i32
    %c0_i32_1 = arith.constant 0 : i32
    return %c0_i32, %c0_i32_0 : i32, i32
  }
  func.func @transform_9(%arg0: i32) -> (i32, i32) {
    %c0_i32 = arith.constant 0 : i32
    %c0_i32_0 = arith.constant 0 : i32
    %c0_i32_1 = arith.constant 0 : i32
    return %c0_i32, %c0_i32_0 : i32, i32
  }
}

</mosaic_0001>

<bundles_post_ra>
// kernel: tpu_custom_call.1
= control target key start
LH: loop header
LB: loop body
LE: loop exit
PB: predicated region body
PF: predicated region fallthrough
CT: control target
= control target key end

     0   :  { %14 = vsyncpa [#allocation3], 0  ;;  %s8276_s0 = inlined_call_operand.hbm [shape: bf16[32,1152], index: 0, kind: input, shape index: {}]   ;;  %s8277_s1 = inlined_call_operand.hbm [shape: bf16[1152,1024], index: 1, kind: input, shape index: {}]   ;;  %s8278_s2 = inlined_call_operand.hbm [shape: f32[1,1024], index: 2, kind: input, shape index: {}]   ;;  %s8279_s3 = inlined_call_operand.hbm [shape: bf16[1024,256], index: 3, kind: input, shape index: {}]   ;;  %s8280_s4 = inlined_call_operand.hbm [shape: f32[1,256], index: 4, kind: input, shape index: {}]   ;;  %s8281_s5 = inlined_call_operand.hbm [shape: bf16[256,256], index: 5, kind: input, shape index: {}]   ;;  %s8282_s6 = inlined_call_operand.hbm [shape: f32[1,256], index: 6, kind: input, shape index: {}]   ;;  %s8283_s7 = inlined_call_operand.hbm [shape: bf16[256,128], index: 7, kind: input, shape index: {}]   ;;  %s8284_s8 = inlined_call_operand.hbm [shape: f32[1,128], index: 8, kind: input, shape index: {}]   ;;  %s8285_s9 = inlined_call_operand.hbm [shape: f32[2,128], index: 9, kind: output, shape index: {}]  }
   0x1   :  { %15 = vsyncpa [#allocation6], 0 }
   0x2   :  { %16 = vsyncpa [#allocation9], 0 }
   0x3   :  { %17 = vsyncpa [#allocation12], 0 }
   0x4   :  { %18 = vsyncpa [#allocation15], 0 }
   0x5   :  { %19 = vsyncpa [#allocation4], 0  ;;  %s7912_s30 = smov [#allocation5]   ;;  %s7680_s13 = scalar_lea.hbm %s8277_s1, 73728 }
   0x6   :  { %s37_s10 = sshll.u32 %s7912_s30, 4  ;;  %p7681_p0 = scmp.ne.s32.totalorder %s8277_s1, %s7680_s13  ;;  %s38_s10 = int_to_ptr.vmem [resolvable:$true] %s37_s10 }
   0x7   :  { %p7684_p1 = scmp.lt.u32.totalorder %s7680_s13, %s8277_s1 }
   0x9   :  { %p7686_p2 = pnand %p7684_p1, %p7681_p0 }
   0xb   :  { %7689 = shalt.err (!%p7686_p2)
}
   0xc   :  { %s7690_s18 = scalar_lea.vmem %s38_s10, 73728  ;;  %p7695_p4 = scmp.lt.s32.totalorder %s38_s10, %s38_s10 }
   0xd   :  { %p7691_p3 = scmp.ne.s32.totalorder %s38_s10, %s7690_s18  ;;  %p7696_p5 = scmp.lt.s32.totalorder %s7690_s18, %s7690_s18 }
   0xf   :  { %p7697_p6 = por %p7696_p5, %p7695_p4 }
  0x11   :  { %p7698_p7 = pnand %p7697_p6, %p7691_p3 }
  0x13   :  { %7701 = shalt.err (!%p7698_p7)
}
  0x14   :  { %s7913_s19 = smov 512   ;;  %s7914_s20 = smov 32  }
  0x15   :  { %43 = dma.hbm_to_vmem [thread:$0]  %s8277_s1, 73728, %s38_s10, [#allocation6], %s7913_s19, %s7913_s19, %s7914_s20  }
  0x16   :  { %s7915_s23 = smov [#allocation8]   ;;  %s7702_s27 = scalar_lea.hbm %s8279_s3, 16384 }
  0x17   :  { %s59_s24 = sshll.u32 %s7915_s23, 4  ;;  %p7703_p8 = scmp.ne.s32.totalorder %s8279_s3, %s7702_s27  ;;  %s60_s24 = int_to_ptr.vmem [resolvable:$true] %s59_s24 }
  0x18   :  { %p7706_p9 = scmp.lt.u32.totalorder %s7702_s27, %s8279_s3 }
  0x1a   :  { %p7708_p10 = pnand %p7706_p9, %p7703_p8 }
  0x1c   :  { %7711 = shalt.err (!%p7708_p10)
}
  0x1d   :  { %s7712_s12 = scalar_lea.vmem %s60_s24, 16384  ;;  %p7717_p12 = scmp.lt.s32.totalorder %s60_s24, %s60_s24 }
  0x1e   :  { %p7713_p11 = scmp.ne.s32.totalorder %s60_s24, %s7712_s12  ;;  %p7718_p13 = scmp.lt.s32.totalorder %s7712_s12, %s7712_s12 }
  0x20   :  { %p7719_p0 = por %p7718_p13, %p7717_p12 }
  0x22   :  { %p7720_p1 = pnand %p7719_p0, %p7713_p11 }
  0x24   :  { %7723 = shalt.err (!%p7720_p1)
}
  0x25   :  { %s7916_s1 = smov 128   ;;  %s7917_s10 = smov 8  }
  0x26   :  { %65 = dma.hbm_to_vmem [thread:$0]  %s8279_s3, 16384, %s60_s24, [#allocation9], %s7916_s1, %s7916_s1, %s7917_s10  }
  0x27   :  { %s7918_s15 = smov [#allocation11]   ;;  %s7919_s17 = smov [#allocation14]  }
  0x28   :  { %s81_s16 = sshll.u32 %s7918_s15, 4  ;;  %s103_s18 = sshll.u32 %s7919_s17, 4  ;;  %s82_s16 = int_to_ptr.vmem [resolvable:$true] %s81_s16  ;;  %s8005_s18 = int_to_ptr.vmem [resolvable:$true] %s103_s18 }
  0x29   :  { %s7724_s21 = scalar_lea.hbm %s8281_s5, 4096 }
  0x2a   :  { %p7725_p2 = scmp.ne.s32.totalorder %s8281_s5, %s7724_s21  ;;  %p7728_p3 = scmp.lt.u32.totalorder %s7724_s21, %s8281_s5 }
  0x2c   :  { %p7730_p4 = pnand %p7728_p3, %p7725_p2 }
  0x2e   :  { %7733 = shalt.err (!%p7730_p4)
}
  0x2f   :  { %s7734_s3 = scalar_lea.vmem %s82_s16, 4096  ;;  %p7739_p6 = scmp.lt.s32.totalorder %s82_s16, %s82_s16 }
  0x30   :  { %p7735_p5 = scmp.ne.s32.totalorder %s82_s16, %s7734_s3  ;;  %p7740_p7 = scmp.lt.s32.totalorder %s7734_s3, %s7734_s3 }
  0x32   :  { %p7741_p8 = por %p7740_p7, %p7739_p6 }
  0x34   :  { %p7742_p9 = pnand %p7741_p8, %p7735_p5 }
  0x36   :  { %7745 = shalt.err (!%p7742_p9)
}
  0x37   :  { %87 = dma.hbm_to_vmem [thread:$0]  %s8281_s5, 4096, %s82_s16, [#allocation12], %s7916_s1, %s7916_s1, %s7917_s10  }
  0x38   :  { %s7746_s30 = scalar_lea.hbm %s8283_s7, 2048 }
  0x39   :  { %p7747_p10 = scmp.ne.s32.totalorder %s8283_s7, %s7746_s30  ;;  %p7750_p11 = scmp.lt.u32.totalorder %s7746_s30, %s8283_s7 }
  0x3b   :  { %p7752_p12 = pnand %p7750_p11, %p7747_p10 }
  0x3d   :  { %7755 = shalt.err (!%p7752_p12)
}
  0x3e   :  { %s7756_s15 = scalar_lea.vmem %s8005_s18, 2048  ;;  %p7761_p0 = scmp.lt.s32.totalorder %s8005_s18, %s8005_s18 }
  0x3f   :  { %p7757_p13 = scmp.ne.s32.totalorder %s8005_s18, %s7756_s15  ;;  %p7762_p1 = scmp.lt.s32.totalorder %s7756_s15, %s7756_s15 }
  0x41   :  { %p7763_p2 = por %p7762_p1, %p7761_p0 }
  0x43   :  { %p7764_p3 = pnand %p7763_p2, %p7757_p13 }
  0x45   :  { %7767 = shalt.err (!%p7764_p3)
}
  0x46   :  { %s7920_s5 = smov 64   ;;  %s7921_s1 = smov 4  }
  0x47   :  { %109 = dma.hbm_to_vmem [thread:$0]  %s8283_s7, 2048, %s8005_s18, [#allocation15], %s7920_s5, %s7920_s5, %s7921_s1  }
  0x48   :  { %s7922_s17 = smov [#allocation2]   ;;  %s7768_s22 = scalar_lea.hbm %s8276_s0, 2304 }
  0x49   :  { %s25_s19 = sshll.u32 %s7922_s17, 4  ;;  %p7769_p4 = scmp.ne.s32.totalorder %s8276_s0, %s7768_s22  ;;  %s26_s19 = int_to_ptr.vmem [resolvable:$true] %s25_s19 }
  0x4a   :  { %p7772_p5 = scmp.lt.u32.totalorder %s7768_s22, %s8276_s0 }
  0x4c   :  { %p7774_p6 = pnand %p7772_p5, %p7769_p4 }
  0x4e   :  { %7777 = shalt.err (!%p7774_p6)
}
  0x4f   :  { %s7778_s24 = scalar_lea.vmem %s26_s19, 2304  ;;  %p7783_p8 = scmp.lt.s32.totalorder %s26_s19, %s26_s19 }
  0x50   :  { %p7779_p7 = scmp.ne.s32.totalorder %s26_s19, %s7778_s24  ;;  %p7784_p9 = scmp.lt.s32.totalorder %s7778_s24, %s7778_s24 }
  0x52   :  { %p7785_p10 = por %p7784_p9, %p7783_p8 }
  0x54   :  { %p7786_p11 = pnand %p7785_p10, %p7779_p7 }
  0x56   :  { %7789 = shalt.err (!%p7786_p11)
}
  0x57   :  { %s7923_s7 = smov 576   ;;  %s7924_s18 = smov 36  }
  0x58   :  { %31 = dma.hbm_to_vmem [thread:$0]  %s8276_s0, 2304, %s26_s19, [#allocation3], %s7923_s7, %s7923_s7, %s7924_s18  }
  0x59   :  { %s7925_s29 = smov [#allocation7]   ;;  %s7926_s11 = smov [#allocation10]  }
  0x5a   :  { %s50_s30 = sshll.u32 %s7925_s29, 4  ;;  %s72_s12 = sshll.u32 %s7926_s11, 4  ;;  %s51_s30 = int_to_ptr.vmem [resolvable:$true] %s50_s30  ;;  %s73_s12 = int_to_ptr.vmem [resolvable:$true] %s72_s12 }
  0x5b   :  { %s7790_s15 = scalar_lea.hbm %s8278_s2, 128 }
  0x5c   :  { %p7791_p12 = scmp.ne.s32.totalorder %s8278_s2, %s7790_s15  ;;  %p7794_p13 = scmp.lt.u32.totalorder %s7790_s15, %s8278_s2 }
  0x5e   :  { %p7796_p0 = pnand %p7794_p13, %p7791_p12 }
  0x60   :  { %7799 = shalt.err (!%p7796_p0)
}
  0x61   :  { %s7800_s0 = scalar_lea.vmem %s51_s30, 128  ;;  %p7805_p2 = scmp.lt.s32.totalorder %s51_s30, %s51_s30 }
  0x62   :  { %p7801_p1 = scmp.ne.s32.totalorder %s51_s30, %s7800_s0  ;;  %p7806_p3 = scmp.lt.s32.totalorder %s7800_s0, %s7800_s0 }
  0x64   :  { %p7807_p4 = por %p7806_p3, %p7805_p2 }
  0x66   :  { %p7808_p5 = pnand %p7807_p4, %p7801_p1 }
  0x68   :  { %7811 = shalt.err (!%p7808_p5)
}
  0x69   :  { %53 = dma.hbm_to_vmem [thread:$0]  %s8278_s2, 128, %s51_s30, [#allocation6]  }
  0x6a   :  { %s7812_s22 = scalar_lea.hbm %s8280_s4, 32 }
  0x6b   :  { %p7813_p6 = scmp.ne.s32.totalorder %s8280_s4, %s7812_s22  ;;  %p7816_p7 = scmp.lt.u32.totalorder %s7812_s22, %s8280_s4 }
  0x6d   :  { %p7818_p8 = pnand %p7816_p7, %p7813_p6 }
  0x6f   :  { %7821 = shalt.err (!%p7818_p8)
}
  0x70   :  { %s7822_s24 = scalar_lea.vmem %s73_s12, 32  ;;  %p7827_p10 = scmp.lt.s32.totalorder %s73_s12, %s73_s12 }
  0x71   :  { %p7823_p9 = scmp.ne.s32.totalorder %s73_s12, %s7822_s24  ;;  %p7828_p11 = scmp.lt.s32.totalorder %s7822_s24, %s7822_s24 }
  0x73   :  { %p7829_p12 = por %p7828_p11, %p7827_p10 }
  0x75   :  { %p7830_p13 = pnand %p7829_p12, %p7823_p9 }
  0x77   :  { %7833 = shalt.err (!%p7830_p13)
}
  0x78   :  { %75 = dma.hbm_to_vmem [thread:$0]  %s8280_s4, 32, %s73_s12, [#allocation9]  }
  0x79   :  { %s7927_s18 = smov [#allocation13]   ;;  %s7928_s28 = smov [#allocation16]  }
  0x7a   :  { %s94_s27 = sshll.u32 %s7927_s18, 4  ;;  %s116_s29 = sshll.u32 %s7928_s28, 4  ;;  %s95_s27 = int_to_ptr.vmem [resolvable:$true] %s94_s27  ;;  %s117_s29 = int_to_ptr.vmem [resolvable:$true] %s116_s29 }
  0x7b   :  { %s7834_s13 = scalar_lea.hbm %s8282_s6, 32 }
  0x7c   :  { %p7835_p0 = scmp.ne.s32.totalorder %s8282_s6, %s7834_s13  ;;  %p7838_p1 = scmp.lt.u32.totalorder %s7834_s13, %s8282_s6 }
  0x7e   :  { %p7840_p2 = pnand %p7838_p1, %p7835_p0 }
  0x80   :  { %7843 = shalt.err (!%p7840_p2)
}
  0x81   :  { %s7844_s4 = scalar_lea.vmem %s95_s27, 32  ;;  %p7849_p4 = scmp.lt.s32.totalorder %s95_s27, %s95_s27 }
  0x82   :  { %p7845_p3 = scmp.ne.s32.totalorder %s95_s27, %s7844_s4  ;;  %p7850_p5 = scmp.lt.s32.totalorder %s7844_s4, %s7844_s4 }
  0x84   :  { %p7851_p6 = por %p7850_p5, %p7849_p4 }
  0x86   :  { %p7852_p7 = pnand %p7851_p6, %p7845_p3 }
  0x88   :  { %7855 = shalt.err (!%p7852_p7)
}
  0x89   :  { %97 = dma.hbm_to_vmem [thread:$0]  %s8282_s6, 32, %s95_s27, [#allocation12]  }
  0x8a   :  { %s7856_s17 = scalar_lea.hbm %s8284_s8, 16 }
  0x8b   :  { %p7857_p8 = scmp.ne.s32.totalorder %s8284_s8, %s7856_s17  ;;  %p7860_p9 = scmp.lt.u32.totalorder %s7856_s17, %s8284_s8 }
  0x8d   :  { %p7862_p10 = pnand %p7860_p9, %p7857_p8 }
  0x8f   :  { %7865 = shalt.err (!%p7862_p10)
}
  0x90   :  { %s7866_s23 = scalar_lea.vmem %s117_s29, 16  ;;  %s7870_s25 = scalar_lea.vmem %s117_s29, 32 }
  0x91   :  { %p7867_p11 = scmp.ne.s32.totalorder %s117_s29, %s7866_s23  ;;  %p7871_p12 = scmp.lt.s32.totalorder %s117_s29, %s117_s29 }
  0x92   :  { %p7872_p13 = scmp.lt.s32.totalorder %s7870_s25, %s7866_s23 }
  0x94   :  { %p7873_p0 = por %p7872_p13, %p7871_p12 }
  0x96   :  { %p7874_p1 = pnand %p7873_p0, %p7867_p11 }
  0x98   :  { %7877 = shalt.err (!%p7874_p1)
}
  0x99   :  { %119 = dma.hbm_to_vmem [thread:$0]  %s8284_s8, 16, %s117_s29, [#allocation15]  }
  0x9a   :  { %7900 = dma.done.wait [#allocation3], 2304  }
  0x9b   :  { %7901 = vsyncadd [#allocation3], 4294964992 }
  0x9c   :  { %7902 = dma.done.wait [#allocation6], 73856  }
  0x9d   :  { %7903 = vsyncadd [#allocation6], 4294893440 }
  0x9e   :  { %7904 = dma.done.wait [#allocation9], 16416  }
  0x9f   :  { %7905 = vsyncadd [#allocation9], 4294950880 }
  0xa0   :  { %7906 = dma.done.wait [#allocation12], 4128  }
  0xa1   :  { %7907 = vsyncadd [#allocation12], 4294963168 }
  0xa2   :  { %7908 = dma.done.wait [#allocation15], 2064  }
  0xa3   :  { %7909 = vsyncadd [#allocation15], 4294965232  ;;  %v168_v0 = vld [vmem:[#allocation5] sm:$0xff]  ;;  %v8096_v57 = vld [vmem:[#allocation2 + $0x4] ss:$36 sps:$4 sm:$0xff]   ;;  %vm5950_vm0 = vcmask 1041409  }
  0xa4   :  { %v172_v1 = vld [vmem:[#allocation5 + $0x20] sm:$0xff]  ;;  %3790 = vmatprep.mubr.bf16.mxu1 %v8096_v57  ;;  %s7930_s8 = smov [#allocation17]  }
  0xa5   :  { %v296_v2 = vld [vmem:[#allocation5 + $0x400] sm:$0xff]  ;;  %v6376_v3 = vcombine.high %v168_v0, %v172_v1  ;;  %v6375_v5 = vcombine.low %v168_v0, %v172_v1  ;;  %s6344_s3 = sshll.u32 %s7930_s8, 4  ;;  %s6345_s3 = int_to_ptr.vmem [resolvable:$true] %s6344_s3 }
  0xa6   :  { %v300_v4 = vld [vmem:[#allocation5 + $0x420] sm:$0xff]  ;;  %s7878_s24 = scalar_lea.vmem %s6345_s3, 32  ;;  %p7883_p3 = scmp.lt.s32.totalorder %s6345_s3, %s6345_s3 }
  0xa7   :  { %v176_v6 = vld [vmem:[#allocation5 + $0x40] sm:$0xff]  ;;  %v6504_v8 = vcombine.high %v296_v2, %v300_v4  ;;  %v6503_v9 = vcombine.low %v296_v2, %v300_v4  ;;  %3758 = vmatprep.subr.bf16.mxu1 %v6376_v3  ;;  %p7879_p2 = scmp.ne.s32.totalorder %s6345_s3, %s7878_s24  ;;  %p7884_p4 = scmp.lt.s32.totalorder %s7878_s24, %s7878_s24 }
  0xa8   :  { %v180_v7 = vld [vmem:[#allocation5 + $0x60] sm:$0xff]  ;;  %3759 = vmatpush1.bf16.msra.mxu1 %v6375_v5 }
  0xa9   :  { %v6384_v10 = vcombine.high %v176_v6, %v180_v7  ;;  %v304_v11 = vld [vmem:[#allocation5 + $0x440] sm:$0xff]  ;;  %3811 = vmatprep.subr.bf16.mxu0 %v6504_v8  ;;  %v6383_v18 = vcombine.low %v176_v6, %v180_v7  ;;  %p7885_p5 = por %p7884_p4, %p7883_p3 }
  0xaa   :  { %v308_v12 = vld [vmem:[#allocation5 + $0x460] sm:$0xff]  ;;  %3812 = vmatpush1.bf16.msra.mxu0 %v6503_v9 }
  0xab   :  { %v184_v13 = vld [vmem:[#allocation5 + $0x80] sm:$0xff]  ;;  %v6512_v14 = vcombine.high %v304_v11, %v308_v12  ;;  %3760 = vmatprep.subr.bf16.mxu1 %v6384_v10  ;;  %v6511_v19 = vcombine.low %v304_v11, %v308_v12  ;;  %p7886_p6 = pnand %p7885_p5, %p7879_p2 }
  0xac   :  { %v188_v15 = vld [vmem:[#allocation5 + $0xa0] sm:$0xff]  ;;  %3761 = vmatpush1.bf16.msra.mxu1 %v6383_v18 }
  0xad   :  { %v312_v16 = vld [vmem:[#allocation5 + $0x480] sm:$0xff]  ;;  %v6392_v20 = vcombine.high %v184_v13, %v188_v15  ;;  %3813 = vmatprep.subr.bf16.mxu0 %v6512_v14  ;;  %v6391_v26 = vcombine.low %v184_v13, %v188_v15 }
  0xae   :  { %v316_v17 = vld [vmem:[#allocation5 + $0x4a0] sm:$0xff]  ;;  %3814 = vmatpush1.bf16.msra.mxu0 %v6511_v19 }
  0xaf   :  { %v6520_v21 = vcombine.high %v312_v16, %v316_v17  ;;  %v192_v22 = vld [vmem:[#allocation5 + $0xc0] sm:$0xff]  ;;  %3762 = vmatprep.subr.bf16.mxu1 %v6392_v20  ;;  %v6519_v27 = vcombine.low %v312_v16, %v316_v17 }
  0xb0   :  { %v196_v23 = vld [vmem:[#allocation5 + $0xe0] sm:$0xff]  ;;  %3763 = vmatpush1.bf16.msra.mxu1 %v6391_v26 }
  0xb1   :  { %v320_v24 = vld [vmem:[#allocation5 + $0x4c0] sm:$0xff]  ;;  %v6400_v28 = vcombine.high %v192_v22, %v196_v23  ;;  %3815 = vmatprep.subr.bf16.mxu0 %v6520_v21  ;;  %v6399_v34 = vcombine.low %v192_v22, %v196_v23 }
  0xb2   :  { %v324_v25 = vld [vmem:[#allocation5 + $0x4e0] sm:$0xff]  ;;  %3816 = vmatpush1.bf16.msra.mxu0 %v6519_v27 }
  0xb3   :  { %v6528_v29 = vcombine.high %v320_v24, %v324_v25  ;;  %v200_v30 = vld [vmem:[#allocation5 + $0x100] sm:$0xff]  ;;  %3764 = vmatprep.subr.bf16.mxu1 %v6400_v28  ;;  %v6527_v35 = vcombine.low %v320_v24, %v324_v25 }
  0xb4   :  { %v204_v31 = vld [vmem:[#allocation5 + $0x120] sm:$0xff]  ;;  %3765 = vmatpush1.bf16.msra.mxu1 %v6399_v34 }
  0xb5   :  { %v328_v32 = vld [vmem:[#allocation5 + $0x500] sm:$0xff]  ;;  %v6408_v36 = vcombine.high %v200_v30, %v204_v31  ;;  %3817 = vmatprep.subr.bf16.mxu0 %v6528_v29  ;;  %v6407_v42 = vcombine.low %v200_v30, %v204_v31 }
  0xb6   :  { %v332_v33 = vld [vmem:[#allocation5 + $0x520] sm:$0xff]  ;;  %3818 = vmatpush1.bf16.msra.mxu0 %v6527_v35 }
  0xb7   :  { %v6536_v37 = vcombine.high %v328_v32, %v332_v33  ;;  %v208_v38 = vld [vmem:[#allocation5 + $0x140] sm:$0xff]  ;;  %3766 = vmatprep.subr.bf16.mxu1 %v6408_v36  ;;  %v6535_v43 = vcombine.low %v328_v32, %v332_v33 }
  0xb8   :  { %v212_v39 = vld [vmem:[#allocation5 + $0x160] sm:$0xff]  ;;  %3767 = vmatpush1.bf16.msra.mxu1 %v6407_v42 }
  0xb9   :  { %v336_v40 = vld [vmem:[#allocation5 + $0x540] sm:$0xff]  ;;  %v6416_v44 = vcombine.high %v208_v38, %v212_v39  ;;  %3819 = vmatprep.subr.bf16.mxu0 %v6536_v37  ;;  %v6415_v50 = vcombine.low %v208_v38, %v212_v39 }
  0xba   :  { %v340_v41 = vld [vmem:[#allocation5 + $0x560] sm:$0xff]  ;;  %3820 = vmatpush1.bf16.msra.mxu0 %v6535_v43 }
  0xbb   :  { %v6544_v45 = vcombine.high %v336_v40, %v340_v41  ;;  %v216_v46 = vld [vmem:[#allocation5 + $0x180] sm:$0xff]  ;;  %3768 = vmatprep.subr.bf16.mxu1 %v6416_v44  ;;  %v6543_v52 = vcombine.low %v336_v40, %v340_v41 }
  0xbc   :  { %v220_v47 = vld [vmem:[#allocation5 + $0x1a0] sm:$0xff]  ;;  %3769 = vmatpush1.bf16.msra.mxu1 %v6415_v50 }
  0xbd   :  { %v344_v48 = vld [vmem:[#allocation5 + $0x580] sm:$0xff]  ;;  %v6424_v53 = vcombine.high %v216_v46, %v220_v47  ;;  %3821 = vmatprep.subr.bf16.mxu0 %v6544_v45  ;;  %v6423_v60 = vcombine.low %v216_v46, %v220_v47 }
  0xbe   :  { %v348_v49 = vld [vmem:[#allocation5 + $0x5a0] sm:$0xff]  ;;  %3822 = vmatpush1.bf16.msra.mxu0 %v6543_v52 }
  0xbf   :  { %v224_v51 = vld [vmem:[#allocation5 + $0x1c0] sm:$0xff]  ;;  %v6552_v55 = vcombine.high %v344_v48, %v348_v49  ;;  %3770 = vmatprep.subr.bf16.mxu1 %v6424_v53  ;;  %v6551_v61 = vcombine.low %v344_v48, %v348_v49 }
  0xc0   :  { %v228_v54 = vld [vmem:[#allocation5 + $0x1e0] sm:$0xff]  ;;  %3771 = vmatpush1.bf16.msra.mxu1 %v6423_v60 }
  0xc1   :  { %v352_v56 = vld [vmem:[#allocation5 + $0x5c0] sm:$0xff]  ;;  %v6432_v62 = vcombine.high %v224_v51, %v228_v54  ;;  %3823 = vmatprep.subr.bf16.mxu0 %v6552_v55  ;;  %v6431_v4 = vcombine.low %v224_v51, %v228_v54 }
  0xc2   :  { %v356_v58 = vld [vmem:[#allocation5 + $0x5e0] sm:$0xff]  ;;  %3824 = vmatpush1.bf16.msra.mxu0 %v6551_v61 }
  0xc3   :  { %v7364_v59 = vld [vmem:[#allocation2 + $0xc] ss:$36 sps:$4 sm:$0xff]   ;;  %v6560_v63 = vcombine.high %v352_v56, %v356_v58  ;;  %3772 = vmatprep.subr.bf16.mxu1 %v6432_v62  ;;  %v6559_v5 = vcombine.low %v352_v56, %v356_v58 }
  0xc4   :  { %v232_v0 = vld [vmem:[#allocation5 + $0x200] sm:$0xff]  ;;  %3843 = vmatprep.mubr.bf16.mxu0 %v7364_v59  ;;  %3773 = vmatpush1.bf16.msra.mxu1 %v6431_v4 }
  0xc5   :  { %v236_v1 = vld [vmem:[#allocation5 + $0x220] sm:$0xff]  ;;  %3825 = vmatprep.subr.bf16.mxu0 %v6560_v63 }
  0xc6   :  { %v360_v2 = vld [vmem:[#allocation5 + $0x600] sm:$0xff]  ;;  %v6440_v6 = vcombine.high %v232_v0, %v236_v1  ;;  %v6439_v12 = vcombine.low %v232_v0, %v236_v1  ;;  %3826 = vmatpush1.bf16.msra.mxu0 %v6559_v5 }
  0xc7   :  { %v364_v3 = vld [vmem:[#allocation5 + $0x620] sm:$0xff] }
  0xc8   :  { %v6568_v7 = vcombine.high %v360_v2, %v364_v3  ;;  %v240_v8 = vld [vmem:[#allocation5 + $0x240] sm:$0xff]  ;;  %3774 = vmatprep.subr.bf16.mxu1 %v6440_v6  ;;  %v6567_v13 = vcombine.low %v360_v2, %v364_v3 }
  0xc9   :  { %v244_v9 = vld [vmem:[#allocation5 + $0x260] sm:$0xff]  ;;  %3775 = vmatpush1.bf16.msra.mxu1 %v6439_v12 }
  0xca   :  { %v368_v10 = vld [vmem:[#allocation5 + $0x640] sm:$0xff]  ;;  %v6448_v14 = vcombine.high %v240_v8, %v244_v9  ;;  %3827 = vmatprep.subr.bf16.mxu0 %v6568_v7  ;;  %v6447_v20 = vcombine.low %v240_v8, %v244_v9 }
  0xcb   :  { %v372_v11 = vld [vmem:[#allocation5 + $0x660] sm:$0xff]  ;;  %3828 = vmatpush1.bf16.msra.mxu0 %v6567_v13 }
  0xcc   :  { %v6576_v15 = vcombine.high %v368_v10, %v372_v11  ;;  %v248_v16 = vld [vmem:[#allocation5 + $0x280] sm:$0xff]  ;;  %3776 = vmatprep.subr.bf16.mxu1 %v6448_v14  ;;  %v6575_v21 = vcombine.low %v368_v10, %v372_v11  ;;  %v8099_v11 = vld [vmem:[#allocation2] ss:$36 sps:$4 sm:$0xff]  }
  0xcd   :  { %v252_v17 = vld [vmem:[#allocation5 + $0x2a0] sm:$0xff]  ;;  %3777 = vmatpush1.bf16.msra.mxu1 %v6447_v20 }
  0xce   :  { %v376_v18 = vld [vmem:[#allocation5 + $0x680] sm:$0xff]  ;;  %v6456_v22 = vcombine.high %v248_v16, %v252_v17  ;;  %3829 = vmatprep.subr.bf16.mxu0 %v6576_v15  ;;  %v6455_v28 = vcombine.low %v248_v16, %v252_v17  ;;  %v7366_v15 = vld [vmem:[#allocation2 + $0x8] ss:$36 sps:$4 sm:$0xff]  }
  0xcf   :  { %v380_v19 = vld [vmem:[#allocation5 + $0x6a0] sm:$0xff]  ;;  %3830 = vmatpush1.bf16.msra.mxu0 %v6575_v21 }
  0xd0   :  { %v6584_v23 = vcombine.high %v376_v18, %v380_v19  ;;  %v256_v24 = vld [vmem:[#allocation5 + $0x2c0] sm:$0xff]  ;;  %3778 = vmatprep.subr.bf16.mxu1 %v6456_v22  ;;  %v6583_v29 = vcombine.low %v376_v18, %v380_v19 }
  0xd1   :  { %v260_v25 = vld [vmem:[#allocation5 + $0x2e0] sm:$0xff]  ;;  %3779 = vmatpush1.bf16.msra.mxu1 %v6455_v28 }
  0xd2   :  { %v384_v26 = vld [vmem:[#allocation5 + $0x6c0] sm:$0xff]  ;;  %v6464_v30 = vcombine.high %v256_v24, %v260_v25  ;;  %3831 = vmatprep.subr.bf16.mxu0 %v6584_v23  ;;  %v6463_v36 = vcombine.low %v256_v24, %v260_v25 }
  0xd3   :  { %v388_v27 = vld [vmem:[#allocation5 + $0x6e0] sm:$0xff]  ;;  %3832 = vmatpush1.bf16.msra.mxu0 %v6583_v29 }
  0xd4   :  { %v6592_v31 = vcombine.high %v384_v26, %v388_v27  ;;  %v264_v32 = vld [vmem:[#allocation5 + $0x300] sm:$0xff]  ;;  %3780 = vmatprep.subr.bf16.mxu1 %v6464_v30  ;;  %v6591_v37 = vcombine.low %v384_v26, %v388_v27 }
  0xd5   :  { %v268_v33 = vld [vmem:[#allocation5 + $0x320] sm:$0xff]  ;;  %3781 = vmatpush1.bf16.msra.mxu1 %v6463_v36 }
  0xd6   :  { %v392_v34 = vld [vmem:[#allocation5 + $0x700] sm:$0xff]  ;;  %v6472_v38 = vcombine.high %v264_v32, %v268_v33  ;;  %3833 = vmatprep.subr.bf16.mxu0 %v6592_v31  ;;  %v6471_v44 = vcombine.low %v264_v32, %v268_v33  ;;  %v8105_v33 = vld [vmem:[#allocation2 + $0x48] ss:$36 sps:$4 sm:$0xff]  }
  0xd7   :  { %v396_v35 = vld [vmem:[#allocation5 + $0x720] sm:$0xff]  ;;  %3834 = vmatpush1.bf16.msra.mxu0 %v6591_v37 }
  0xd8   :  { %v6600_v39 = vcombine.high %v392_v34, %v396_v35  ;;  %v272_v40 = vld [vmem:[#allocation5 + $0x340] sm:$0xff]  ;;  %3782 = vmatprep.subr.bf16.mxu1 %v6472_v38  ;;  %v6599_v45 = vcombine.low %v392_v34, %v396_v35 }
  0xd9   :  { %v276_v41 = vld [vmem:[#allocation5 + $0x360] sm:$0xff]  ;;  %3783 = vmatpush1.bf16.msra.mxu1 %v6471_v44 }
  0xda   :  { %v400_v42 = vld [vmem:[#allocation5 + $0x740] sm:$0xff]  ;;  %v6480_v46 = vcombine.high %v272_v40, %v276_v41  ;;  %3835 = vmatprep.subr.bf16.mxu0 %v6600_v39  ;;  %v6479_v52 = vcombine.low %v272_v40, %v276_v41 }
  0xdb   :  { %v404_v43 = vld [vmem:[#allocation5 + $0x760] sm:$0xff]  ;;  %3836 = vmatpush1.bf16.msra.mxu0 %v6599_v45  ;;  %v7929_v45 = vmov 0  }
  0xdc   :  { %v6608_v47 = vcombine.high %v400_v42, %v404_v43  ;;  %v280_v48 = vld [vmem:[#allocation5 + $0x380] sm:$0xff]  ;;  %3784 = vmatprep.subr.bf16.mxu1 %v6480_v46  ;;  %v6607_v53 = vcombine.low %v400_v42, %v404_v43 }
  0xdd   :  { %v284_v49 = vld [vmem:[#allocation5 + $0x3a0] sm:$0xff]  ;;  %3785 = vmatpush1.bf16.msra.mxu1 %v6479_v52 }
  0xde   :  { %v408_v50 = vld [vmem:[#allocation5 + $0x780] sm:$0xff]  ;;  %v6488_v54 = vcombine.high %v280_v48, %v284_v49  ;;  %3837 = vmatprep.subr.bf16.mxu0 %v6608_v47  ;;  %v6487_v61 = vcombine.low %v280_v48, %v284_v49 }
  0xdf   :  { %v412_v51 = vld [vmem:[#allocation5 + $0x7a0] sm:$0xff]  ;;  %3838 = vmatpush1.bf16.msra.mxu0 %v6607_v53 }
  0xe0   :  { %v6616_v55 = vcombine.high %v408_v50, %v412_v51  ;;  %v288_v56 = vld [vmem:[#allocation5 + $0x3c0] sm:$0xff]  ;;  %3786 = vmatprep.subr.bf16.mxu1 %v6488_v54  ;;  %v6615_v62 = vcombine.low %v408_v50, %v412_v51 }
  0xe1   :  { %v292_v58 = vld [vmem:[#allocation5 + $0x3e0] sm:$0xff]  ;;  %3787 = vmatpush1.bf16.msra.mxu1 %v6487_v61 }
  0xe2   :  { %v416_v59 = vld [vmem:[#allocation5 + $0x7c0] sm:$0xff]  ;;  %v6496_v63 = vcombine.high %v288_v56, %v292_v58  ;;  %3839 = vmatprep.subr.bf16.mxu0 %v6616_v55  ;;  %v6495_v5 = vcombine.low %v288_v56, %v292_v58 }
  0xe3   :  { %v420_v60 = vld [vmem:[#allocation5 + $0x7e0] sm:$0xff]  ;;  %3840 = vmatpush1.bf16.msra.mxu0 %v6615_v62 }
  0xe4   :  { %v680_v0 = vld [vmem:[#allocation5 + $0x1000] sm:$0xff]  ;;  %v6624_v1 = vcombine.high %v416_v59, %v420_v60  ;;  %3788 = vmatprep.subr.bf16.mxu1 %v6496_v63  ;;  %v6623_v6 = vcombine.low %v416_v59, %v420_v60 }
  0xe5   :  { %v684_v2 = vld [vmem:[#allocation5 + $0x1020] sm:$0xff]  ;;  %3789 = vmatpush1.bf16.msra.mxu1 %v6495_v5 }
  0xe6   :  { %v424_v3 = vld [vmem:[#allocation5 + $0x800] sm:$0xff]  ;;  %v6888_v7 = vcombine.high %v680_v0, %v684_v2  ;;  %3841 = vmatprep.subr.bf16.mxu0 %v6624_v1  ;;  %v6887_v14 = vcombine.low %v680_v0, %v684_v2 }
  0xe7   :  { %v428_v4 = vld [vmem:[#allocation5 + $0x820] sm:$0xff]  ;;  %3842 = vmatpush1.bf16.msra.mxu0 %v6623_v6 }
  0xe8   :  { %v6632_v8 = vcombine.high %v424_v3, %v428_v4  ;;  %v688_v9 = vld [vmem:[#allocation5 + $0x1040] sm:$0xff]  ;;  %v6631_v16 = vcombine.low %v424_v3, %v428_v4  ;;  %3970 = vmatprep.subr.bf16.mxu1 %v6888_v7  ;;  %3791 = vmatmul.mubr.bf16.vlgmr.msra.gmra.mrb[0].mxu1 %v8099_v11 }
  0xe9   :  { %v692_v10 = vld [vmem:[#allocation5 + $0x1060] sm:$0xff]  ;;  %3971 = vmatpush1.bf16.msra.mxu1 %v6887_v14  ;;  %v173_v14 = vld [vmem:[#allocation5 + $0x28] sm:$0xff] }
  0xea   :  { %v432_v12 = vld [vmem:[#allocation5 + $0x840] sm:$0xff]  ;;  %v6896_v17 = vcombine.high %v688_v9, %v692_v10  ;;  %3864 = vmatprep.subr.bf16.mxu0 %v6632_v8  ;;  %3844 = vmatmul.mubr.bf16.vlgmr.msra.gmra.mrb[0].mxu0 %v7366_v15  ;;  %v6895_v25 = vcombine.low %v688_v9, %v692_v10 }
  0xeb   :  { %v436_v13 = vld [vmem:[#allocation5 + $0x860] sm:$0xff]  ;;  %3865 = vmatpush1.bf16.msra.mxu0 %v6631_v16 }
  0xec   :  { %v6640_v18 = vcombine.high %v432_v12, %v436_v13  ;;  %v696_v19 = vld [vmem:[#allocation5 + $0x1080] sm:$0xff]  ;;  %v6639_v26 = vcombine.low %v432_v12, %v436_v13  ;;  %3972 = vmatprep.subr.bf16.mxu1 %v6896_v17  ;;  %v169_v12 = vld [vmem:[#allocation5 + $0x8] sm:$0xff]  ;;  %v7370_v17 = vld [vmem:[#allocation2 + $0x20] ss:$36 sps:$4 sm:$0xff]  }
  0xed   :  { %v700_v20 = vld [vmem:[#allocation5 + $0x10a0] sm:$0xff]  ;;  %3973 = vmatpush1.bf16.msra.mxu1 %v6895_v25  ;;  %v6377_v25 = vcombine.low %v169_v12, %v173_v14 }
  0xee   :  { %v8101_v21 = vld [vmem:[#allocation2 + $0x4c] ss:$36 sps:$4 sm:$0xff]   ;;  %v7371_v24 = vld [vmem:[#allocation2 + $0x54] ss:$36 sps:$4 sm:$0xff]   ;;  %v6904_v27 = vcombine.high %v696_v19, %v700_v20  ;;  %3866 = vmatprep.subr.bf16.mxu0 %v6640_v18  ;;  %v6903_v34 = vcombine.low %v696_v19, %v700_v20  ;;  %v6378_v18 = vcombine.high %v169_v12, %v173_v14 }
  0xef   :  { %v440_v22 = vld [vmem:[#allocation5 + $0x880] sm:$0xff]  ;;  %3800 = vmatprep.mubr.bf16.mxu1 %v8101_v21  ;;  %3853 = vmatprep.mubr.bf16.mxu0 %v7371_v24  ;;  %v181_v24 = vld [vmem:[#allocation5 + $0x68] sm:$0xff] }
  0xf0   :  { %v444_v23 = vld [vmem:[#allocation5 + $0x8a0] sm:$0xff]  ;;  %3867 = vmatpush1.bf16.msra.mxu0 %v6639_v26  ;;  %3974 = vmatprep.subr.bf16.mxu1 %v6904_v27  ;;  %v229_v12 = vld [vmem:[#allocation5 + $0x1e8] sm:$0xff] }
  0xf1   :  { %v704_v28 = vld [vmem:[#allocation5 + $0x10c0] sm:$0xff]  ;;  %v6648_v29 = vcombine.high %v440_v22, %v444_v23  ;;  %v6647_v35 = vcombine.low %v440_v22, %v444_v23  ;;  %3801 = vmatmul.mubr.bf16.gmra.mrb[4].mxu1 %v8105_v33  ;;  %v177_v22 = vld [vmem:[#allocation5 + $0x48] sm:$0xff] }
  0xf2   :  { %v708_v30 = vld [vmem:[#allocation5 + $0x10e0] sm:$0xff]  ;;  %3975 = vmatpush1.bf16.msra.mxu1 %v6903_v34  ;;  %4002 = vmatprep.mubr.bf16.mxu1 %v7929_v45  ;;  %v6386_v27 = vcombine.high %v177_v22, %v181_v24  ;;  %v6385_v34 = vcombine.low %v177_v22, %v181_v24 }
  0xf3   :  { %v448_v31 = vld [vmem:[#allocation5 + $0x8c0] sm:$0xff]  ;;  %v6912_v36 = vcombine.high %v704_v28, %v708_v30  ;;  %3868 = vmatprep.subr.bf16.mxu0 %v6648_v29  ;;  %v6911_v44 = vcombine.low %v704_v28, %v708_v30  ;;  %v185_v30 = vld [vmem:[#allocation5 + $0x88] sm:$0xff] }
  0xf4   :  { %v452_v32 = vld [vmem:[#allocation5 + $0x8e0] sm:$0xff]  ;;  %3869 = vmatpush1.bf16.msra.mxu0 %v6647_v35 }
  0xf5   :  { %v712_v37 = vld [vmem:[#allocation5 + $0x1100] sm:$0xff]  ;;  %v6656_v39 = vcombine.high %v448_v31, %v452_v32  ;;  %v6655_v46 = vcombine.low %v448_v31, %v452_v32  ;;  %3976 = vmatprep.subr.bf16.mxu1 %v6912_v36  ;;  %v189_v32 = vld [vmem:[#allocation5 + $0xa8] sm:$0xff] }
  0xf6   :  { %v716_v38 = vld [vmem:[#allocation5 + $0x1120] sm:$0xff]  ;;  %3977 = vmatpush1.bf16.msra.mxu1 %v6911_v44  ;;  %v6394_v36 = vcombine.high %v185_v30, %v189_v32 }
  0xf7   :  { %v7373_v40 = vld [vmem:[#allocation2 + $0x50] ss:$36 sps:$4 sm:$0xff]   ;;  %v6920_v47 = vcombine.high %v712_v37, %v716_v38  ;;  %3870 = vmatprep.subr.bf16.mxu0 %v6656_v39  ;;  %v6919_v53 = vcombine.low %v712_v37, %v716_v38  ;;  %v193_v39 = vld [vmem:[#allocation5 + $0xc8] sm:$0xff] }
  0xf8   :  { %v456_v41 = vld [vmem:[#allocation5 + $0x900] sm:$0xff]  ;;  %3854 = vmatmul.mubr.bf16.gmra.mrb[4].mxu0 %v7373_v40  ;;  %v197_v40 = vld [vmem:[#allocation5 + $0xe8] sm:$0xff] }
  0xf9   :  { %v460_v42 = vld [vmem:[#allocation5 + $0x920] sm:$0xff]  ;;  %3871 = vmatpush1.bf16.msra.mxu0 %v6655_v46  ;;  %3978 = vmatprep.subr.bf16.mxu1 %v6920_v47  ;;  %v6402_v46 = vcombine.high %v193_v39, %v197_v40 }
  0xfa   :  { %v7376_v43 = vld [vmem:[#allocation2 + $0x14] ss:$36 sps:$4 sm:$0xff]   ;;  %v6664_v49 = vcombine.high %v456_v41, %v460_v42  ;;  %v6663_v54 = vcombine.low %v456_v41, %v460_v42  ;;  %3979 = vmatpush1.bf16.msra.mxu1 %v6919_v53  ;;  %v7377_v42 = vld [vmem:[#allocation2 + $0x68] ss:$36 sps:$4 sm:$0xff]  }
  0xfb   :  { %v720_v48 = vld [vmem:[#allocation5 + $0x1140] sm:$0xff]  ;;  %3896 = vmatprep.mubr.bf16.mxu0 %v7376_v43  ;;  %v6393_v43 = vcombine.low %v185_v30, %v189_v32  ;;  %v245_v30 = vld [vmem:[#allocation5 + $0x268] sm:$0xff] }
  0xfc   :  { %v724_v50 = vld [vmem:[#allocation5 + $0x1160] sm:$0xff]  ;;  %3872 = vmatprep.subr.bf16.mxu0 %v6664_v49  ;;  %v201_v49 = vld [vmem:[#allocation5 + $0x108] sm:$0xff] }
  0xfd   :  { %v464_v51 = vld [vmem:[#allocation5 + $0x940] sm:$0xff]  ;;  %v6928_v55 = vcombine.high %v720_v48, %v724_v50  ;;  %v6927_v62 = vcombine.low %v720_v48, %v724_v50  ;;  %3873 = vmatpush1.bf16.msra.mxu0 %v6663_v54 }
  0xfe   :  { %v468_v52 = vld [vmem:[#allocation5 + $0x960] sm:$0xff] }
  0xff   :  { %v6672_v56 = vcombine.high %v464_v51, %v468_v52  ;;  %v472_v58 = vld [vmem:[#allocation5 + $0x980] sm:$0xff]  ;;  %v6671_v63 = vcombine.low %v464_v51, %v468_v52  ;;  %3980 = vmatprep.subr.bf16.mxu1 %v6928_v55  ;;  %v205_v51 = vld [vmem:[#allocation5 + $0x128] sm:$0xff]  ;;  %v6401_v52 = vcombine.low %v193_v39, %v197_v40 }
 0x100   :  { %v728_v59 = vld [vmem:[#allocation5 + $0x1180] sm:$0xff]  ;;  %3981 = vmatpush1.bf16.msra.mxu1 %v6927_v62  ;;  %v6410_v54 = vcombine.high %v201_v49, %v205_v51  ;;  %v7378_v40 = vld [vmem:[#allocation2 + $0x5c] ss:$36 sps:$4 sm:$0xff]  }
 0x101   :  { %v732_v60 = vld [vmem:[#allocation5 + $0x11a0] sm:$0xff]  ;;  %3874 = vmatprep.subr.bf16.mxu0 %v6672_v56 }
 0x102   :  { %v476_v61 = vld [vmem:[#allocation5 + $0x9a0] sm:$0xff]  ;;  %v6936_v0 = vcombine.high %v728_v59, %v732_v60  ;;  %v6935_v6 = vcombine.low %v728_v59, %v732_v60  ;;  %3875 = vmatpush1.bf16.msra.mxu0 %v6671_v63  ;;  %v213_v60 = vld [vmem:[#allocation5 + $0x168] sm:$0xff] }
 0x103   :  { %v480_v1 = vld [vmem:[#allocation5 + $0x9c0] sm:$0xff]  ;;  %v6680_v4 = vcombine.high %v472_v58, %v476_v61  ;;  %v6679_v7 = vcombine.low %v472_v58, %v476_v61  ;;  %v209_v58 = vld [vmem:[#allocation5 + $0x148] sm:$0xff]  ;;  %v6409_v61 = vcombine.low %v201_v49, %v205_v51 }
 0x104   :  { %v484_v2 = vld [vmem:[#allocation5 + $0x9e0] sm:$0xff]  ;;  %3982 = vmatprep.subr.bf16.mxu1 %v6936_v0  ;;  %v6418_v63 = vcombine.high %v209_v58, %v213_v60 }
 0x105   :  { %v736_v3 = vld [vmem:[#allocation5 + $0x11c0] sm:$0xff]  ;;  %3876 = vmatprep.subr.bf16.mxu0 %v6680_v4  ;;  %v6688_v13 = vcombine.high %v480_v1, %v484_v2  ;;  %3983 = vmatpush1.bf16.msra.mxu1 %v6935_v6  ;;  %v6687_v16 = vcombine.low %v480_v1, %v484_v2  ;;  %v217_v2 = vld [vmem:[#allocation5 + $0x188] sm:$0xff]  ;;  %v6417_v4 = vcombine.low %v209_v58, %v213_v60 }
 0x106   :  { %v740_v5 = vld [vmem:[#allocation5 + $0x11e0] sm:$0xff]  ;;  %3877 = vmatpush1.bf16.msra.mxu0 %v6679_v7  ;;  %v269_v58 = vld [vmem:[#allocation5 + $0x328] sm:$0xff] }
 0x107   :  { %v6944_v8 = vcombine.high %v736_v3, %v740_v5  ;;  %v488_v9 = vld [vmem:[#allocation5 + $0xa00] sm:$0xff]  ;;  %v6943_v15 = vcombine.low %v736_v3, %v740_v5  ;;  %3878 = vmatprep.subr.bf16.mxu0 %v6688_v13  ;;  %v221_v3 = vld [vmem:[#allocation5 + $0x1a8] sm:$0xff] }
 0x108   :  { %v492_v10 = vld [vmem:[#allocation5 + $0xa20] sm:$0xff]  ;;  %v6426_v6 = vcombine.high %v217_v2, %v221_v3  ;;  %v6425_v13 = vcombine.low %v217_v2, %v221_v3  ;;  %v7383_v60 = vld [vmem:[#allocation2 + $0x1c] ss:$36 sps:$4 sm:$0xff]  }
 0x109   :  { %3984 = vmatprep.subr.bf16.mxu1 %v6944_v8  ;;  %v496_v19 = vld [vmem:[#allocation5 + $0xa40] sm:$0xff]  ;;  %v6696_v23 = vcombine.high %v488_v9, %v492_v10  ;;  %v6695_v26 = vcombine.low %v488_v9, %v492_v10  ;;  %v225_v9 = vld [vmem:[#allocation5 + $0x1c8] sm:$0xff] }
 0x10a   :  { %v500_v20 = vld [vmem:[#allocation5 + $0xa60] sm:$0xff]  ;;  %3985 = vmatpush1.bf16.msra.mxu1 %v6943_v15  ;;  %3879 = vmatpush1.bf16.msra.mxu0 %v6687_v16  ;;  %v6434_v15 = vcombine.high %v225_v9, %v229_v12  ;;  %v6433_v22 = vcombine.low %v225_v9, %v229_v12  ;;  %v273_v2 = vld [vmem:[#allocation5 + $0x348] sm:$0xff] }
 0x10b   :  { %4023 = vmatprep.subr.bf16.mxu1 %v6378_v18  ;;  %v504_v28 = vld [vmem:[#allocation5 + $0xa80] sm:$0xff]  ;;  %3880 = vmatprep.subr.bf16.mxu0 %v6696_v23  ;;  %v6704_v31 = vcombine.high %v496_v19, %v500_v20  ;;  %v6703_v35 = vcombine.low %v496_v19, %v500_v20  ;;  %v233_v18 = vld [vmem:[#allocation5 + $0x208] sm:$0xff] }
 0x10c   :  { %v508_v29 = vld [vmem:[#allocation5 + $0xaa0] sm:$0xff]  ;;  %v237_v20 = vld [vmem:[#allocation5 + $0x228] sm:$0xff] }
 0x10d   :  { %4003 = vmatmul.mubr.bf16.vlgmr.msra.gmra.mrb[8].mxu1 %v7370_v17  ;;  %v512_v37 = vld [vmem:[#allocation5 + $0xac0] sm:$0xff]  ;;  %v6712_v41 = vcombine.high %v504_v28, %v508_v29  ;;  %v6711_v44 = vcombine.low %v504_v28, %v508_v29  ;;  %v6442_v24 = vcombine.high %v233_v18, %v237_v20  ;;  %v277_v3 = vld [vmem:[#allocation5 + $0x368] sm:$0xff] }
 0x10e   :  { %4024 = vmatpush1.bf16.msra.mxu1 %v6377_v25  ;;  %4012 = vmatprep.mubr.bf16.mxu1 %v7929_v45  ;;  %v516_v38 = vld [vmem:[#allocation5 + $0xae0] sm:$0xff]  ;;  %v281_v9 = vld [vmem:[#allocation5 + $0x388] sm:$0xff] }
 0x10f   :  { %3881 = vmatpush1.bf16.msra.mxu0 %v6695_v26  ;;  %4025 = vmatprep.subr.bf16.mxu1 %v6386_v27  ;;  %v520_v47 = vld [vmem:[#allocation5 + $0xb00] sm:$0xff]  ;;  %v6720_v50 = vcombine.high %v512_v37, %v516_v38  ;;  %v6719_v53 = vcombine.low %v512_v37, %v516_v38  ;;  %v241_v27 = vld [vmem:[#allocation5 + $0x248] sm:$0xff] }
 0x110   :  { %3882 = vmatprep.subr.bf16.mxu0 %v6704_v31  ;;  %v524_v48 = vld [vmem:[#allocation5 + $0xb20] sm:$0xff]  ;;  %v6441_v31 = vcombine.low %v233_v18, %v237_v20  ;;  %v249_v37 = vld [vmem:[#allocation5 + $0x288] sm:$0xff] }
 0x111   :  { %v528_v55 = vld [vmem:[#allocation5 + $0xb40] sm:$0xff]  ;;  %v6728_v59 = vcombine.high %v520_v47, %v524_v48  ;;  %v6727_v62 = vcombine.low %v520_v47, %v524_v48  ;;  %v253_v38 = vld [vmem:[#allocation5 + $0x2a8] sm:$0xff] }
 0x112   :  { %4026 = vmatpush1.bf16.msra.mxu1 %v6385_v34  ;;  %v532_v56 = vld [vmem:[#allocation5 + $0xb60] sm:$0xff]  ;;  %v6450_v34 = vcombine.high %v241_v27, %v245_v30  ;;  %v257_v47 = vld [vmem:[#allocation5 + $0x2c8] sm:$0xff]  ;;  %v6457_v51 = vcombine.low %v249_v37, %v253_v38 }
 0x113   :  { %3883 = vmatpush1.bf16.msra.mxu0 %v6703_v35  ;;  %4027 = vmatprep.subr.bf16.mxu1 %v6394_v36  ;;  %v536_v0 = vld [vmem:[#allocation5 + $0xb80] sm:$0xff]  ;;  %v6735_v5 = vcombine.low %v528_v55, %v532_v56  ;;  %v261_v48 = vld [vmem:[#allocation5 + $0x2e8] sm:$0xff] }
 0x114   :  { %3884 = vmatprep.subr.bf16.mxu0 %v6712_v41  ;;  %v540_v1 = vld [vmem:[#allocation5 + $0xba0] sm:$0xff]  ;;  %v6449_v41 = vcombine.low %v241_v27, %v245_v30  ;;  %v285_v12 = vld [vmem:[#allocation5 + $0x3a8] sm:$0xff] }
 0x115   :  { %4013 = vmatmul.mubr.bf16.gmra.mrb[12].mxu1 %v7377_v42  ;;  %v544_v7 = vld [vmem:[#allocation5 + $0xbc0] sm:$0xff]  ;;  %v6744_v10 = vcombine.high %v536_v0, %v540_v1  ;;  %v6743_v14 = vcombine.low %v536_v0, %v540_v1  ;;  %v293_v20 = vld [vmem:[#allocation5 + $0x3e8] sm:$0xff] }
 0x116   :  { %4028 = vmatpush1.bf16.msra.mxu1 %v6393_v43  ;;  %4055 = vmatprep.mubr.bf16.mxu1 %v8096_v57  ;;  %v6736_v57 = vcombine.high %v528_v55, %v532_v56  ;;  %v548_v8 = vld [vmem:[#allocation5 + $0xbe0] sm:$0xff]  ;;  %v6458_v43 = vcombine.high %v249_v37, %v253_v38  ;;  %v265_v56 = vld [vmem:[#allocation5 + $0x308] sm:$0xff] }
 0x117   :  { %3885 = vmatpush1.bf16.msra.mxu0 %v6711_v44  ;;  %4029 = vmatprep.subr.bf16.mxu1 %v6402_v46  ;;  %v552_v16 = vld [vmem:[#allocation5 + $0xc00] sm:$0xff]  ;;  %v6752_v19 = vcombine.high %v544_v7, %v548_v8  ;;  %v6751_v23 = vcombine.low %v544_v7, %v548_v8  ;;  %v297_v27 = vld [vmem:[#allocation5 + $0x408] sm:$0xff] }
 0x118   :  { %3886 = vmatprep.subr.bf16.mxu0 %v6720_v50  ;;  %v556_v17 = vld [vmem:[#allocation5 + $0xc20] sm:$0xff]  ;;  %v7380_v50 = vld [vmem:[#allocation2 + $0x58] ss:$36 sps:$4 sm:$0xff]  }
 0x119   :  { %v560_v25 = vld [vmem:[#allocation5 + $0xc40] sm:$0xff]  ;;  %v6760_v29 = vcombine.high %v552_v16, %v556_v17  ;;  %v6759_v32 = vcombine.low %v552_v16, %v556_v17  ;;  %v309_v38 = vld [vmem:[#allocation5 + $0x468] sm:$0xff] }
 0x11a   :  { %4030 = vmatpush1.bf16.msra.mxu1 %v6401_v52  ;;  %v564_v26 = vld [vmem:[#allocation5 + $0xc60] sm:$0xff] }
 0x11b   :  { %3887 = vmatpush1.bf16.msra.mxu0 %v6719_v53  ;;  %4031 = vmatprep.subr.bf16.mxu1 %v6410_v54  ;;  %v7374_v28 = vld [vmem:[#allocation2 + $0x10] ss:$36 sps:$4 sm:$0xff]   ;;  %v6768_v39 = vcombine.high %v560_v25, %v564_v26  ;;  %v6767_v42 = vcombine.low %v560_v25, %v564_v26  ;;  %v6466_v53 = vcombine.high %v257_v47, %v261_v48 }
 0x11c   :  { %3888 = vmatprep.subr.bf16.mxu0 %v6728_v59  ;;  %v568_v35 = vld [vmem:[#allocation5 + $0xc80] sm:$0xff] }
 0x11d   :  { %v572_v36 = vld [vmem:[#allocation5 + $0xca0] sm:$0xff] }
 0x11e   :  { %4032 = vmatpush1.bf16.msra.mxu1 %v6409_v61  ;;  %v576_v44 = vld [vmem:[#allocation5 + $0xcc0] sm:$0xff]  ;;  %v6776_v49 = vcombine.high %v568_v35, %v572_v36  ;;  %v6775_v52 = vcombine.low %v568_v35, %v572_v36  ;;  %v6465_v61 = vcombine.low %v257_v47, %v261_v48  ;;  %v305_v36 = vld [vmem:[#allocation5 + $0x448] sm:$0xff] }
 0x11f   :  { %3889 = vmatpush1.bf16.msra.mxu0 %v6727_v62  ;;  %4033 = vmatprep.subr.bf16.mxu1 %v6418_v63  ;;  %v580_v46 = vld [vmem:[#allocation5 + $0xce0] sm:$0xff]  ;;  %v6474_v63 = vcombine.high %v265_v56, %v269_v58  ;;  %v317_v47 = vld [vmem:[#allocation5 + $0x4a8] sm:$0xff]  ;;  %v6513_v48 = vcombine.low %v305_v36, %v309_v38 }
 0x120   :  { %3890 = vmatprep.subr.bf16.mxu0 %v6736_v57  ;;  %v584_v54 = vld [vmem:[#allocation5 + $0xd00] sm:$0xff]  ;;  %v6784_v59 = vcombine.high %v576_v44, %v580_v46  ;;  %v6783_v62 = vcombine.low %v576_v44, %v580_v46  ;;  %v313_v44 = vld [vmem:[#allocation5 + $0x488] sm:$0xff] }
 0x121   :  { %v588_v55 = vld [vmem:[#allocation5 + $0xd20] sm:$0xff] }
 0x122   :  { %4034 = vmatpush1.bf16.msra.mxu1 %v6417_v4  ;;  %v592_v0 = vld [vmem:[#allocation5 + $0xd40] sm:$0xff]  ;;  %v6792_v57 = vcombine.high %v584_v54, %v588_v55  ;;  %v6473_v4 = vcombine.low %v265_v56, %v269_v58  ;;  %v6521_v56 = vcombine.low %v313_v44, %v317_v47 }
 0x123   :  { %3891 = vmatpush1.bf16.msra.mxu0 %v6735_v5  ;;  %4035 = vmatprep.subr.bf16.mxu1 %v6426_v6  ;;  %v596_v1 = vld [vmem:[#allocation5 + $0xd60] sm:$0xff]  ;;  %v6791_v5 = vcombine.low %v584_v54, %v588_v55  ;;  %v6482_v6 = vcombine.high %v273_v2, %v277_v3  ;;  %v325_v55 = vld [vmem:[#allocation5 + $0x4e8] sm:$0xff] }
 0x124   :  { %3892 = vmatprep.subr.bf16.mxu0 %v6744_v10  ;;  %v600_v7 = vld [vmem:[#allocation5 + $0xd80] sm:$0xff]  ;;  %v6800_v10 = vcombine.high %v592_v0, %v596_v1 }
 0x125   :  { %v604_v8 = vld [vmem:[#allocation5 + $0xda0] sm:$0xff] }
 0x126   :  { %4036 = vmatpush1.bf16.msra.mxu1 %v6425_v13  ;;  %v6481_v13 = vcombine.low %v273_v2, %v277_v3  ;;  %v608_v16 = vld [vmem:[#allocation5 + $0xdc0] sm:$0xff]  ;;  %v6808_v18 = vcombine.high %v600_v7, %v604_v8 }
 0x127   :  { %3893 = vmatpush1.bf16.msra.mxu0 %v6743_v14  ;;  %4037 = vmatprep.subr.bf16.mxu1 %v6434_v15  ;;  %v6799_v14 = vcombine.low %v592_v0, %v596_v1  ;;  %v6490_v15 = vcombine.high %v281_v9, %v285_v12  ;;  %v612_v17 = vld [vmem:[#allocation5 + $0xde0] sm:$0xff] }
 0x128   :  { %3894 = vmatprep.subr.bf16.mxu0 %v6752_v19  ;;  %v289_v19 = vld [vmem:[#allocation5 + $0x3c8] sm:$0xff]  ;;  %v616_v25 = vld [vmem:[#allocation5 + $0xe00] sm:$0xff] }
 0x129   :  { %v620_v26 = vld [vmem:[#allocation5 + $0xe20] sm:$0xff]  ;;  %v6497_v30 = vcombine.low %v289_v19, %v293_v20 }
 0x12a   :  { %4038 = vmatpush1.bf16.msra.mxu1 %v6433_v22  ;;  %v6489_v22 = vcombine.low %v281_v9, %v285_v12  ;;  %v628_v35 = vld [vmem:[#allocation5 + $0xe60] sm:$0xff]  ;;  %v6824_v37 = vcombine.high %v616_v25, %v620_v26 }
 0x12b   :  { %3895 = vmatpush1.bf16.msra.mxu0 %v6751_v23  ;;  %4039 = vmatprep.subr.bf16.mxu1 %v6442_v24  ;;  %v6807_v23 = vcombine.low %v600_v7, %v604_v8  ;;  %v6498_v24 = vcombine.high %v289_v19, %v293_v20  ;;  %v8114_v0 = vld [vmem:[#allocation2 + $0xc] ss:$36 sps:$4 sm:$0xff]   ;;  %v353_v19 = vld [vmem:[#allocation5 + $0x5c8] sm:$0xff] }
 0x12c   :  { %3917 = vmatprep.subr.bf16.mxu0 %v6760_v29  ;;  %v301_v29 = vld [vmem:[#allocation5 + $0x428] sm:$0xff]  ;;  %v660_v3 = vld [vmem:[#allocation5 + $0xf60] sm:$0xff] }
 0x12d   :  { %v664_v9 = vld [vmem:[#allocation5 + $0xf80] sm:$0xff]  ;;  %v357_v20 = vld [vmem:[#allocation5 + $0x5e8] sm:$0xff] }
 0x12e   :  { %3897 = vmatmul.mubr.bf16.vlgmr.msra.gmra.mrb[0].mxu0 %v7374_v28  ;;  %4040 = vmatpush1.bf16.msra.mxu1 %v6441_v31  ;;  %v6816_v28 = vcombine.high %v608_v16, %v612_v17  ;;  %v6815_v31 = vcombine.low %v608_v16, %v612_v17 }
 0x12f   :  { %3918 = vmatpush1.bf16.msra.mxu0 %v6759_v32  ;;  %4041 = vmatprep.subr.bf16.mxu1 %v6450_v34  ;;  %v6506_v32 = vcombine.high %v297_v27, %v301_v29  ;;  %v624_v34 = vld [vmem:[#allocation5 + $0xe40] sm:$0xff] }
 0x130   :  { %3919 = vmatprep.subr.bf16.mxu0 %v6768_v39  ;;  %3906 = vmatprep.mubr.bf16.mxu0 %v7378_v40  ;;  %v6505_v39 = vcombine.low %v297_v27, %v301_v29  ;;  %v6823_v40 = vcombine.low %v616_v25, %v620_v26  ;;  %v6832_v46 = vcombine.high %v624_v34, %v628_v35  ;;  %v365_v29 = vld [vmem:[#allocation5 + $0x628] sm:$0xff] }
 0x131   :  { %v6562_v26 = vcombine.high %v353_v19, %v357_v20 }
 0x132   :  { %4042 = vmatpush1.bf16.msra.mxu1 %v6449_v41  ;;  %v6514_v41 = vcombine.high %v305_v36, %v309_v38  ;;  %v373_v38 = vld [vmem:[#allocation5 + $0x668] sm:$0xff] }
 0x133   :  { %3920 = vmatpush1.bf16.msra.mxu0 %v6767_v42  ;;  %4043 = vmatprep.subr.bf16.mxu1 %v6458_v43  ;;  %v632_v42 = vld [vmem:[#allocation5 + $0xe80] sm:$0xff] }
 0x134   :  { %3921 = vmatprep.subr.bf16.mxu0 %v6776_v49  ;;  %v636_v43 = vld [vmem:[#allocation5 + $0xea0] sm:$0xff]  ;;  %v6831_v49 = vcombine.low %v624_v34, %v628_v35 }
 0x135   :  { %v6840_v54 = vcombine.high %v632_v42, %v636_v43  ;;  %v6839_v58 = vcombine.low %v632_v42, %v636_v43 }
 0x136   :  { %4044 = vmatpush1.bf16.msra.mxu1 %v6457_v51  ;;  %3907 = vmatmul.mubr.bf16.gmra.mrb[4].mxu0 %v7380_v50  ;;  %v6522_v50 = vcombine.high %v313_v44, %v317_v47  ;;  %v640_v51 = vld [vmem:[#allocation5 + $0xec0] sm:$0xff]  ;;  %v7384_v47 = vld [vmem:[#allocation2 + $0x64] ss:$36 sps:$4 sm:$0xff]  }
 0x137   :  { %3922 = vmatpush1.bf16.msra.mxu0 %v6775_v52  ;;  %4045 = vmatprep.subr.bf16.mxu1 %v6466_v53  ;;  %v644_v52 = vld [vmem:[#allocation5 + $0xee0] sm:$0xff]  ;;  %v321_v53 = vld [vmem:[#allocation5 + $0x4c8] sm:$0xff] }
 0x138   :  { %3923 = vmatprep.subr.bf16.mxu0 %v6784_v59  ;;  %3949 = vmatprep.mubr.bf16.mxu0 %v7383_v60  ;;  %v648_v59 = vld [vmem:[#allocation5 + $0xf00] sm:$0xff]  ;;  %v6847_v1 = vcombine.low %v640_v51, %v644_v52 }
 0x139   :  { %v652_v60 = vld [vmem:[#allocation5 + $0xf20] sm:$0xff] }
 0x13a   :  { %4046 = vmatpush1.bf16.msra.mxu1 %v6465_v61  ;;  %v329_v61 = vld [vmem:[#allocation5 + $0x508] sm:$0xff] }
 0x13b   :  { %3924 = vmatpush1.bf16.msra.mxu0 %v6783_v62  ;;  %4047 = vmatprep.subr.bf16.mxu1 %v6474_v63  ;;  %v333_v62 = vld [vmem:[#allocation5 + $0x528] sm:$0xff]  ;;  %v6529_v63 = vcombine.low %v321_v53, %v325_v55 }
 0x13c   :  { %3925 = vmatprep.subr.bf16.mxu0 %v6792_v57  ;;  %v6538_v2 = vcombine.high %v329_v61, %v333_v62  ;;  %v656_v57 = vld [vmem:[#allocation5 + $0xf40] sm:$0xff]  ;;  %v6537_v7 = vcombine.low %v329_v61, %v333_v62 }
 0x13d   :  { %v6864_v12 = vcombine.high %v656_v57, %v660_v3  ;;  %v6863_v16 = vcombine.low %v656_v57, %v660_v3  ;;  %v202_v57 = vld [vmem:[#allocation5 + $0x110] sm:$0xff] }
 0x13e   :  { %4048 = vmatpush1.bf16.msra.mxu1 %v6473_v4  ;;  %v337_v4 = vld [vmem:[#allocation5 + $0x548] sm:$0xff]  ;;  %v206_v3 = vld [vmem:[#allocation5 + $0x130] sm:$0xff] }
 0x13f   :  { %3926 = vmatpush1.bf16.msra.mxu0 %v6791_v5  ;;  %4049 = vmatprep.subr.bf16.mxu1 %v6482_v6  ;;  %v6856_v5 = vcombine.high %v648_v59, %v652_v60  ;;  %v341_v6 = vld [vmem:[#allocation5 + $0x568] sm:$0xff] }
 0x140   :  { %3927 = vmatprep.subr.bf16.mxu0 %v6800_v10  ;;  %v6546_v8 = vcombine.high %v337_v4, %v341_v6  ;;  %v345_v10 = vld [vmem:[#allocation5 + $0x588] sm:$0xff] }
 0x142   :  { %4050 = vmatpush1.bf16.msra.mxu1 %v6481_v13  ;;  %v349_v13 = vld [vmem:[#allocation5 + $0x5a8] sm:$0xff] }
 0x143   :  { %3928 = vmatpush1.bf16.msra.mxu0 %v6799_v14  ;;  %4051 = vmatprep.subr.bf16.mxu1 %v6490_v15  ;;  %v668_v14 = vld [vmem:[#allocation5 + $0xfa0] sm:$0xff]  ;;  %v6545_v15 = vcombine.low %v337_v4, %v341_v6  ;;  %v6554_v17 = vcombine.high %v345_v10, %v349_v13 }
 0x144   :  { %3929 = vmatprep.subr.bf16.mxu0 %v6808_v18  ;;  %v6872_v18 = vcombine.high %v664_v9, %v668_v14  ;;  %v6871_v25 = vcombine.low %v664_v9, %v668_v14  ;;  %v7644_v9 = vld [vmem:[#allocation2 + $0x4] ss:$36 sps:$4 sm:$0xff]   ;;  %v6411_v14 = vcombine.low %v202_v57, %v206_v3 }
 0x146   :  { %4052 = vmatpush1.bf16.msra.mxu1 %v6489_v22  ;;  %v672_v22 = vld [vmem:[#allocation5 + $0xfc0] sm:$0xff] }
 0x147   :  { %3930 = vmatpush1.bf16.msra.mxu0 %v6807_v23  ;;  %4053 = vmatprep.subr.bf16.mxu1 %v6498_v24  ;;  %v676_v23 = vld [vmem:[#allocation5 + $0xfe0] sm:$0xff]  ;;  %v6553_v24 = vcombine.low %v345_v10, %v349_v13  ;;  %v210_v10 = vld [vmem:[#allocation5 + $0x150] sm:$0xff] }
 0x148   :  { %3931 = vmatprep.subr.bf16.mxu0 %v6816_v28  ;;  %v6880_v27 = vcombine.high %v672_v22, %v676_v23  ;;  %v361_v28 = vld [vmem:[#allocation5 + $0x608] sm:$0xff]  ;;  %v6879_v34 = vcombine.low %v672_v22, %v676_v23 }
 0x149   :  { %v6570_v35 = vcombine.high %v361_v28, %v365_v29  ;;  %v6569_v42 = vcombine.low %v361_v28, %v365_v29  ;;  %v226_v28 = vld [vmem:[#allocation5 + $0x1d0] sm:$0xff] }
 0x14a   :  { %4054 = vmatpush1.bf16.msra.mxu1 %v6497_v30  ;;  %v170_v30 = vld [vmem:[#allocation5 + $0x10] sm:$0xff] }
 0x14b   :  { %3932 = vmatpush1.bf16.msra.mxu0 %v6815_v31  ;;  %4076 = vmatprep.subr.bf16.mxu1 %v6506_v32  ;;  %v174_v31 = vld [vmem:[#allocation5 + $0x30] sm:$0xff]  ;;  %v6561_v32 = vcombine.low %v353_v19, %v357_v20 }
 0x14c   :  { %3933 = vmatprep.subr.bf16.mxu0 %v6824_v37  ;;  %v6380_v36 = vcombine.high %v170_v30, %v174_v31  ;;  %v369_v37 = vld [vmem:[#allocation5 + $0x648] sm:$0xff]  ;;  %v6379_v43 = vcombine.low %v170_v30, %v174_v31  ;;  %v218_v19 = vld [vmem:[#allocation5 + $0x190] sm:$0xff] }
 0x14d   :  { %4056 = vmatmul.mubr.bf16.vlgmr.msra.gmra.mrb[16].mxu1 %v8099_v11  ;;  %v6530_v11 = vcombine.high %v321_v53, %v325_v55  ;;  %v6578_v44 = vcombine.high %v369_v37, %v373_v38  ;;  %v222_v20 = vld [vmem:[#allocation5 + $0x1b0] sm:$0xff] }
 0x14e   :  { %4077 = vmatpush1.bf16.msra.mxu1 %v6505_v39  ;;  %4065 = vmatprep.mubr.bf16.mxu1 %v8101_v21  ;;  %v6848_v21 = vcombine.high %v640_v51, %v644_v52  ;;  %v178_v39 = vld [vmem:[#allocation5 + $0x50] sm:$0xff]  ;;  %v6577_v52 = vcombine.low %v369_v37, %v373_v38  ;;  %v6427_v31 = vcombine.low %v218_v19, %v222_v20 }
 0x14f   :  { %3934 = vmatpush1.bf16.msra.mxu0 %v6823_v40  ;;  %4078 = vmatprep.subr.bf16.mxu1 %v6514_v41  ;;  %v182_v40 = vld [vmem:[#allocation5 + $0x70] sm:$0xff]  ;;  %v7381_v41 = vld [vmem:[#allocation2 + $0x18] ss:$36 sps:$4 sm:$0xff]  }
 0x150   :  { %3935 = vmatprep.subr.bf16.mxu0 %v6832_v46  ;;  %v6388_v46 = vcombine.high %v178_v39, %v182_v40  ;;  %v190_v51 = vld [vmem:[#allocation5 + $0xb0] sm:$0xff]  ;;  %v6387_v53 = vcombine.low %v178_v39, %v182_v40 }
 0x151   :  { %v230_v29 = vld [vmem:[#allocation5 + $0x1f0] sm:$0xff] }
 0x152   :  { %4079 = vmatpush1.bf16.msra.mxu1 %v6513_v48  ;;  %v377_v48 = vld [vmem:[#allocation5 + $0x688] sm:$0xff]  ;;  %v234_v37 = vld [vmem:[#allocation5 + $0x210] sm:$0xff]  ;;  %v6435_v40 = vcombine.low %v226_v28, %v230_v29 }
 0x153   :  { %3936 = vmatpush1.bf16.msra.mxu0 %v6831_v49  ;;  %4080 = vmatprep.subr.bf16.mxu1 %v6522_v50  ;;  %v381_v49 = vld [vmem:[#allocation5 + $0x6a8] sm:$0xff]  ;;  %v186_v50 = vld [vmem:[#allocation5 + $0x90] sm:$0xff] }
 0x154   :  { %3937 = vmatprep.subr.bf16.mxu0 %v6840_v54  ;;  %v6586_v54 = vcombine.high %v377_v48, %v381_v49  ;;  %v6396_v55 = vcombine.high %v186_v50, %v190_v51  ;;  %v6585_v61 = vcombine.low %v377_v48, %v381_v49  ;;  %v238_v38 = vld [vmem:[#allocation5 + $0x230] sm:$0xff] }
 0x155   :  { %4066 = vmatmul.mubr.bf16.gmra.mrb[20].mxu1 %v8105_v33  ;;  %v6855_v33 = vcombine.low %v648_v59, %v652_v60  ;;  %v198_v59 = vld [vmem:[#allocation5 + $0xf0] sm:$0xff]  ;;  %v6443_v49 = vcombine.low %v234_v37, %v238_v38 }
 0x156   :  { %4081 = vmatpush1.bf16.msra.mxu1 %v6521_v56  ;;  %4108 = vmatprep.mubr.bf16.mxu1 %v8114_v0  ;;  %v385_v56 = vld [vmem:[#allocation5 + $0x6c8] sm:$0xff]  ;;  %v7386_v60 = vld [vmem:[#allocation2 + $0x60] ss:$36 sps:$4 sm:$0xff]  }
 0x157   :  { %3938 = vmatpush1.bf16.msra.mxu0 %v6839_v58  ;;  %4082 = vmatprep.subr.bf16.mxu1 %v6530_v11  ;;  %v389_v58 = vld [vmem:[#allocation5 + $0x6e8] sm:$0xff]  ;;  %v194_v11 = vld [vmem:[#allocation5 + $0xd0] sm:$0xff] }
 0x158   :  { %3939 = vmatprep.subr.bf16.mxu0 %v6848_v21  ;;  %v6395_v21 = vcombine.low %v186_v50, %v190_v51  ;;  %v6594_v62 = vcombine.high %v385_v56, %v389_v58  ;;  %v6593_v4 = vcombine.low %v385_v56, %v389_v58  ;;  %v254_v56 = vld [vmem:[#allocation5 + $0x2b0] sm:$0xff] }
 0x15a   :  { %4083 = vmatpush1.bf16.msra.mxu1 %v6529_v63  ;;  %v6404_v63 = vcombine.high %v194_v11, %v198_v59 }
 0x15b   :  { %3940 = vmatpush1.bf16.msra.mxu0 %v6847_v1  ;;  %4084 = vmatprep.subr.bf16.mxu1 %v6538_v2  ;;  %v393_v1 = vld [vmem:[#allocation5 + $0x708] sm:$0xff] }
 0x15c   :  { %3941 = vmatprep.subr.bf16.mxu0 %v6856_v5  ;;  %v397_v2 = vld [vmem:[#allocation5 + $0x728] sm:$0xff]  ;;  %v6403_v5 = vcombine.low %v194_v11, %v198_v59 }
 0x15d   :  { %v6602_v6 = vcombine.high %v393_v1, %v397_v2  ;;  %v6601_v13 = vcombine.low %v393_v1, %v397_v2  ;;  %v8120_v11 = vld [vmem:[#allocation2 + $0x54] ss:$36 sps:$4 sm:$0xff]   ;;  %v262_v1 = vld [vmem:[#allocation5 + $0x2f0] sm:$0xff] }
 0x15e   :  { %4085 = vmatpush1.bf16.msra.mxu1 %v6537_v7  ;;  %v6412_v7 = vcombine.high %v202_v57, %v206_v3 }
 0x15f   :  { %3942 = vmatpush1.bf16.msra.mxu0 %v6855_v33  ;;  %4086 = vmatprep.subr.bf16.mxu1 %v6546_v8  ;;  %v401_v33 = vld [vmem:[#allocation5 + $0x748] sm:$0xff] }
 0x160   :  { %3943 = vmatprep.subr.bf16.mxu0 %v6864_v12  ;;  %v405_v8 = vld [vmem:[#allocation5 + $0x768] sm:$0xff]  ;;  %v214_v12 = vld [vmem:[#allocation5 + $0x170] sm:$0xff] }
 0x161   :  { %v6609_v22 = vcombine.low %v401_v33, %v405_v8  ;;  %v6419_v23 = vcombine.low %v210_v10, %v214_v12 }
 0x162   :  { %4087 = vmatpush1.bf16.msra.mxu1 %v6545_v15  ;;  %v6610_v15 = vcombine.high %v401_v33, %v405_v8  ;;  %v270_v33 = vld [vmem:[#allocation5 + $0x330] sm:$0xff]  ;;  %v8123_v8 = vld [vmem:[#allocation2 + $0x50] ss:$36 sps:$4 sm:$0xff]  }
 0x163   :  { %3944 = vmatpush1.bf16.msra.mxu0 %v6863_v16  ;;  %4088 = vmatprep.subr.bf16.mxu1 %v6554_v17  ;;  %v6420_v16 = vcombine.high %v210_v10, %v214_v12  ;;  %v409_v17 = vld [vmem:[#allocation5 + $0x788] sm:$0xff] }
 0x164   :  { %3945 = vmatprep.subr.bf16.mxu0 %v6872_v18  ;;  %v413_v18 = vld [vmem:[#allocation5 + $0x7a8] sm:$0xff] }
 0x165   :  { %v6617_v30 = vcombine.low %v409_v17, %v413_v18  ;;  %v8126_v10 = vld [vmem:[#allocation2 + $0x14] ss:$36 sps:$4 sm:$0xff]  }
 0x166   :  { %4089 = vmatpush1.bf16.msra.mxu1 %v6553_v24  ;;  %v6618_v24 = vcombine.high %v409_v17, %v413_v18  ;;  %v274_v17 = vld [vmem:[#allocation5 + $0x350] sm:$0xff] }
 0x167   :  { %3946 = vmatpush1.bf16.msra.mxu0 %v6871_v25  ;;  %4090 = vmatprep.subr.bf16.mxu1 %v6562_v26  ;;  %v6428_v25 = vcombine.high %v218_v19, %v222_v20  ;;  %v417_v26 = vld [vmem:[#allocation5 + $0x7c8] sm:$0xff]  ;;  %v278_v18 = vld [vmem:[#allocation5 + $0x370] sm:$0xff] }
 0x168   :  { %3947 = vmatprep.subr.bf16.mxu0 %v6880_v27  ;;  %v421_v27 = vld [vmem:[#allocation5 + $0x7e8] sm:$0xff] }
 0x169   :  { %v6625_v39 = vcombine.low %v417_v26, %v421_v27 }
 0x16a   :  { %4091 = vmatpush1.bf16.msra.mxu1 %v6561_v32  ;;  %v6626_v32 = vcombine.high %v417_v26, %v421_v27  ;;  %v282_v26 = vld [vmem:[#allocation5 + $0x390] sm:$0xff] }
 0x16b   :  { %3948 = vmatpush1.bf16.msra.mxu0 %v6879_v34  ;;  %4092 = vmatprep.subr.bf16.mxu1 %v6570_v35  ;;  %v6436_v34 = vcombine.high %v226_v28, %v230_v29  ;;  %v425_v35 = vld [vmem:[#allocation5 + $0x808] sm:$0xff]  ;;  %v286_v27 = vld [vmem:[#allocation5 + $0x3b0] sm:$0xff]  ;;  %v6483_v29 = vcombine.low %v274_v17, %v278_v18 }
 0x16c   :  { %4288 = vmatprep.subr.bf16.mxu0 %v6380_v36  ;;  %v429_v36 = vld [vmem:[#allocation5 + $0x828] sm:$0xff] }
 0x16d   :  { %v6633_v48 = vcombine.low %v425_v35, %v429_v36 }
 0x16e   :  { %3950 = vmatmul.mubr.bf16.vlgmr.msra.gmra.mrb[0].mxu0 %v7381_v41  ;;  %4093 = vmatpush1.bf16.msra.mxu1 %v6569_v42  ;;  %v6634_v41 = vcombine.high %v425_v35, %v429_v36  ;;  %v6444_v42 = vcombine.high %v234_v37, %v238_v38  ;;  %v290_v35 = vld [vmem:[#allocation5 + $0x3d0] sm:$0xff]  ;;  %v6491_v38 = vcombine.low %v282_v26, %v286_v27 }
 0x16f   :  { %4289 = vmatpush1.bf16.msra.mxu0 %v6379_v43  ;;  %4094 = vmatprep.subr.bf16.mxu1 %v6578_v44  ;;  %v433_v43 = vld [vmem:[#allocation5 + $0x848] sm:$0xff]  ;;  %v294_v36 = vld [vmem:[#allocation5 + $0x3f0] sm:$0xff] }
 0x170   :  { %4290 = vmatprep.subr.bf16.mxu0 %v6388_v46  ;;  %3959 = vmatprep.mubr.bf16.mxu0 %v7384_v47  ;;  %v437_v44 = vld [vmem:[#allocation5 + $0x868] sm:$0xff]  ;;  %v242_v46 = vld [vmem:[#allocation5 + $0x250] sm:$0xff] }
 0x171   :  { %v246_v47 = vld [vmem:[#allocation5 + $0x270] sm:$0xff]  ;;  %v6642_v50 = vcombine.high %v433_v43, %v437_v44  ;;  %v6641_v58 = vcombine.low %v433_v43, %v437_v44 }
 0x172   :  { %4095 = vmatpush1.bf16.msra.mxu1 %v6577_v52  ;;  %v6452_v51 = vcombine.high %v242_v46, %v246_v47  ;;  %v441_v52 = vld [vmem:[#allocation5 + $0x888] sm:$0xff]  ;;  %v6451_v59 = vcombine.low %v242_v46, %v246_v47  ;;  %v298_v43 = vld [vmem:[#allocation5 + $0x410] sm:$0xff]  ;;  %v6499_v47 = vcombine.low %v290_v35, %v294_v36 }
 0x173   :  { %4291 = vmatpush1.bf16.msra.mxu0 %v6387_v53  ;;  %4096 = vmatprep.subr.bf16.mxu1 %v6586_v54  ;;  %v445_v53 = vld [vmem:[#allocation5 + $0x8a8] sm:$0xff]  ;;  %v8117_v54 = vld [vmem:[#allocation2 + $0x8] ss:$36 sps:$4 sm:$0xff]   ;;  %v302_v44 = vld [vmem:[#allocation5 + $0x430] sm:$0xff] }
 0x174   :  { %4292 = vmatprep.subr.bf16.mxu0 %v6396_v55  ;;  %v250_v55 = vld [vmem:[#allocation5 + $0x290] sm:$0xff]  ;;  %v6649_v2 = vcombine.low %v441_v52, %v445_v53 }
 0x175   :  { %v6459_v57 = vcombine.low %v250_v55, %v254_v56 }
 0x176   :  { %3960 = vmatmul.mubr.bf16.gmra.mrb[4].mxu0 %v7386_v60  ;;  %4097 = vmatpush1.bf16.msra.mxu1 %v6585_v61  ;;  %v6650_v60 = vcombine.high %v441_v52, %v445_v53  ;;  %v6460_v61 = vcombine.high %v250_v55, %v254_v56  ;;  %v306_v52 = vld [vmem:[#allocation5 + $0x450] sm:$0xff]  ;;  %v6507_v56 = vcombine.low %v298_v43, %v302_v44 }
 0x177   :  { %4293 = vmatpush1.bf16.msra.mxu0 %v6395_v21  ;;  %4098 = vmatprep.subr.bf16.mxu1 %v6594_v62  ;;  %v449_v21 = vld [vmem:[#allocation5 + $0x8c8] sm:$0xff]  ;;  %v310_v53 = vld [vmem:[#allocation5 + $0x470] sm:$0xff] }
 0x178   :  { %4294 = vmatprep.subr.bf16.mxu0 %v6404_v63  ;;  %4320 = vmatprep.mubr.bf16.mxu0 %v7644_v9  ;;  %v453_v62 = vld [vmem:[#allocation5 + $0x8e8] sm:$0xff]  ;;  %v258_v63 = vld [vmem:[#allocation5 + $0x2d0] sm:$0xff] }
 0x179   :  { %v6658_v3 = vcombine.high %v449_v21, %v453_v62  ;;  %v6657_v9 = vcombine.low %v449_v21, %v453_v62  ;;  %v6467_v12 = vcombine.low %v258_v63, %v262_v1  ;;  %v314_v21 = vld [vmem:[#allocation5 + $0x490] sm:$0xff] }
 0x17a   :  { %4099 = vmatpush1.bf16.msra.mxu1 %v6593_v4  ;;  %v6468_v4 = vcombine.high %v258_v63, %v262_v1  ;;  %v318_v62 = vld [vmem:[#allocation5 + $0x4b0] sm:$0xff] }
 0x17b   :  { %4295 = vmatpush1.bf16.msra.mxu0 %v6403_v5  ;;  %4100 = vmatprep.subr.bf16.mxu1 %v6602_v6  ;;  %v457_v5 = vld [vmem:[#allocation5 + $0x908] sm:$0xff]  ;;  %v7649_v63 = vld [vmem:[#allocation2] ss:$36 sps:$4 sm:$0xff]  }
 0x17c   :  { %4296 = vmatprep.subr.bf16.mxu0 %v6412_v7  ;;  %v461_v6 = vld [vmem:[#allocation5 + $0x928] sm:$0xff]  ;;  %v266_v7 = vld [vmem:[#allocation5 + $0x310] sm:$0xff] }
 0x17d   :  { %v6665_v19 = vcombine.low %v457_v5, %v461_v6  ;;  %v6475_v20 = vcombine.low %v266_v7, %v270_v33 }
 0x17e   :  { %4101 = vmatpush1.bf16.msra.mxu1 %v6601_v13  ;;  %v6666_v13 = vcombine.high %v457_v5, %v461_v6  ;;  %v517_v5 = vld [vmem:[#allocation5 + $0xae8] sm:$0xff]  ;;  %v7650_v6 = vld [vmem:[#allocation2 + $0x4c] ss:$36 sps:$4 sm:$0xff]  }
 0x17f   :  { %4297 = vmatpush1.bf16.msra.mxu0 %v6411_v14  ;;  %4102 = vmatprep.subr.bf16.mxu1 %v6610_v15  ;;  %v6476_v14 = vcombine.high %v266_v7, %v270_v33  ;;  %v465_v15 = vld [vmem:[#allocation5 + $0x948] sm:$0xff]  ;;  %v322_v7 = vld [vmem:[#allocation5 + $0x4d0] sm:$0xff] }
 0x180   :  { %4298 = vmatprep.subr.bf16.mxu0 %v6420_v16  ;;  %v469_v16 = vld [vmem:[#allocation5 + $0x968] sm:$0xff]  ;;  %v326_v33 = vld [vmem:[#allocation5 + $0x4f0] sm:$0xff] }
 0x181   :  { %v6673_v28 = vcombine.low %v465_v15, %v469_v16 }
 0x182   :  { %4103 = vmatpush1.bf16.msra.mxu1 %v6609_v22  ;;  %v6674_v22 = vcombine.high %v465_v15, %v469_v16  ;;  %v521_v15 = vld [vmem:[#allocation5 + $0xb08] sm:$0xff] }
 0x183   :  { %4299 = vmatpush1.bf16.msra.mxu0 %v6419_v23  ;;  %4104 = vmatprep.subr.bf16.mxu1 %v6618_v24  ;;  %v6484_v23 = vcombine.high %v274_v17, %v278_v18  ;;  %v473_v24 = vld [vmem:[#allocation5 + $0x988] sm:$0xff]  ;;  %v330_v17 = vld [vmem:[#allocation5 + $0x510] sm:$0xff] }
 0x184   :  { %4300 = vmatprep.subr.bf16.mxu0 %v6428_v25  ;;  %v477_v25 = vld [vmem:[#allocation5 + $0x9a8] sm:$0xff]  ;;  %v334_v18 = vld [vmem:[#allocation5 + $0x530] sm:$0xff] }
 0x185   :  { %v6681_v37 = vcombine.low %v473_v24, %v477_v25  ;;  %v525_v16 = vld [vmem:[#allocation5 + $0xb28] sm:$0xff] }
 0x186   :  { %4105 = vmatpush1.bf16.msra.mxu1 %v6617_v30  ;;  %v6682_v30 = vcombine.high %v473_v24, %v477_v25  ;;  %v6540_v24 = vcombine.high %v330_v17, %v334_v18  ;;  %v529_v25 = vld [vmem:[#allocation5 + $0xb48] sm:$0xff] }
 0x187   :  { %4301 = vmatpush1.bf16.msra.mxu0 %v6427_v31  ;;  %4106 = vmatprep.subr.bf16.mxu1 %v6626_v32  ;;  %v6492_v31 = vcombine.high %v282_v26, %v286_v27  ;;  %v481_v32 = vld [vmem:[#allocation5 + $0x9c8] sm:$0xff]  ;;  %v338_v27 = vld [vmem:[#allocation5 + $0x550] sm:$0xff] }
 0x188   :  { %4302 = vmatprep.subr.bf16.mxu0 %v6436_v34  ;;  %v485_v34 = vld [vmem:[#allocation5 + $0x9e8] sm:$0xff] }
 0x189   :  { %v6689_v46 = vcombine.low %v481_v32, %v485_v34  ;;  %v533_v26 = vld [vmem:[#allocation5 + $0xb68] sm:$0xff] }
 0x18a   :  { %4107 = vmatpush1.bf16.msra.mxu1 %v6625_v39  ;;  %v6690_v39 = vcombine.high %v481_v32, %v485_v34  ;;  %v537_v34 = vld [vmem:[#allocation5 + $0xb88] sm:$0xff] }
 0x18b   :  { %4303 = vmatpush1.bf16.msra.mxu0 %v6435_v40  ;;  %4129 = vmatprep.subr.bf16.mxu1 %v6634_v41  ;;  %v6500_v40 = vcombine.high %v290_v35, %v294_v36  ;;  %v489_v41 = vld [vmem:[#allocation5 + $0xa08] sm:$0xff]  ;;  %v346_v36 = vld [vmem:[#allocation5 + $0x590] sm:$0xff] }
 0x18c   :  { %4304 = vmatprep.subr.bf16.mxu0 %v6444_v42  ;;  %v493_v42 = vld [vmem:[#allocation5 + $0xa28] sm:$0xff] }
 0x18d   :  { %4109 = vmatmul.mubr.bf16.vlgmr.msra.gmra.mrb[16].mxu1 %v8117_v54  ;;  %v6697_v55 = vcombine.low %v489_v41, %v493_v42  ;;  %v541_v35 = vld [vmem:[#allocation5 + $0xba8] sm:$0xff] }
 0x18e   :  { %4130 = vmatpush1.bf16.msra.mxu1 %v6633_v48  ;;  %4118 = vmatprep.mubr.bf16.mxu1 %v8120_v11  ;;  %v6698_v48 = vcombine.high %v489_v41, %v493_v42  ;;  %v545_v42 = vld [vmem:[#allocation5 + $0xbc8] sm:$0xff] }
 0x18f   :  { %4305 = vmatpush1.bf16.msra.mxu0 %v6443_v49  ;;  %4131 = vmatprep.subr.bf16.mxu1 %v6642_v50  ;;  %v6508_v49 = vcombine.high %v298_v43, %v302_v44  ;;  %v497_v50 = vld [vmem:[#allocation5 + $0xa48] sm:$0xff] }
 0x190   :  { %4306 = vmatprep.subr.bf16.mxu0 %v6452_v51  ;;  %v501_v51 = vld [vmem:[#allocation5 + $0xa68] sm:$0xff] }
 0x191   :  { %v6705_v1 = vcombine.low %v497_v50, %v501_v51  ;;  %v549_v43 = vld [vmem:[#allocation5 + $0xbe8] sm:$0xff] }
 0x192   :  { %4132 = vmatpush1.bf16.msra.mxu1 %v6641_v58  ;;  %v6706_v58 = vcombine.high %v497_v50, %v501_v51 }
 0x193   :  { %4307 = vmatpush1.bf16.msra.mxu0 %v6451_v59  ;;  %4133 = vmatprep.subr.bf16.mxu1 %v6650_v60  ;;  %v6516_v59 = vcombine.high %v306_v52, %v310_v53  ;;  %v505_v60 = vld [vmem:[#allocation5 + $0xa88] sm:$0xff] }
 0x194   :  { %4308 = vmatprep.subr.bf16.mxu0 %v6460_v61  ;;  %v509_v61 = vld [vmem:[#allocation5 + $0xaa8] sm:$0xff] }
 0x195   :  { %4119 = vmatmul.mubr.bf16.gmra.mrb[20].mxu1 %v8123_v8 }
 0x196   :  { %4134 = vmatpush1.bf16.msra.mxu1 %v6649_v2  ;;  %4161 = vmatprep.mubr.bf16.mxu1 %v8126_v10  ;;  %v6515_v2 = vcombine.low %v306_v52, %v310_v53  ;;  %v6754_v52 = vcombine.high %v545_v42, %v549_v43 }
 0x197   :  { %4309 = vmatpush1.bf16.msra.mxu0 %v6459_v57  ;;  %4135 = vmatprep.subr.bf16.mxu1 %v6658_v3  ;;  %v6714_v57 = vcombine.high %v505_v60, %v509_v61  ;;  %v6524_v3 = vcombine.high %v314_v21, %v318_v62 }
 0x198   :  { %4310 = vmatprep.subr.bf16.mxu0 %v6468_v4  ;;  %v513_v4 = vld [vmem:[#allocation5 + $0xac8] sm:$0xff] }
 0x19a   :  { %4136 = vmatpush1.bf16.msra.mxu1 %v6657_v9  ;;  %v6713_v9 = vcombine.low %v505_v60, %v509_v61  ;;  %v6753_v60 = vcombine.low %v545_v42, %v549_v43  ;;  %v593_v43 = vld [vmem:[#allocation5 + $0xd48] sm:$0xff] }
 0x19b   :  { %4311 = vmatpush1.bf16.msra.mxu0 %v6467_v12  ;;  %4137 = vmatprep.subr.bf16.mxu1 %v6666_v13  ;;  %v6523_v12 = vcombine.low %v314_v21, %v318_v62  ;;  %v6722_v13 = vcombine.high %v513_v4, %v517_v5 }
 0x19c   :  { %4312 = vmatprep.subr.bf16.mxu0 %v6476_v14  ;;  %v6532_v14 = vcombine.high %v322_v7, %v326_v33 }
 0x19e   :  { %4138 = vmatpush1.bf16.msra.mxu1 %v6665_v19  ;;  %v6721_v19 = vcombine.low %v513_v4, %v517_v5 }
 0x19f   :  { %4313 = vmatpush1.bf16.msra.mxu0 %v6475_v20  ;;  %4139 = vmatprep.subr.bf16.mxu1 %v6674_v22  ;;  %v7651_v20 = vld [vmem:[#allocation2 + $0x48] ss:$36 sps:$4 sm:$0xff]   ;;  %v6531_v22 = vcombine.low %v322_v7, %v326_v33 }
 0x1a0   :  { %4314 = vmatprep.subr.bf16.mxu0 %v6484_v23  ;;  %v6730_v23 = vcombine.high %v521_v15, %v525_v16 }
 0x1a2   :  { %4140 = vmatpush1.bf16.msra.mxu1 %v6673_v28  ;;  %v342_v28 = vld [vmem:[#allocation5 + $0x570] sm:$0xff] }
 0x1a3   :  { %4315 = vmatpush1.bf16.msra.mxu0 %v6483_v29  ;;  %4141 = vmatprep.subr.bf16.mxu1 %v6682_v30  ;;  %v6729_v29 = vcombine.low %v521_v15, %v525_v16  ;;  %v6539_v30 = vcombine.low %v330_v17, %v334_v18  ;;  %v6548_v32 = vcombine.high %v338_v27, %v342_v28  ;;  %v8146_v15 = vld [vmem:[#allocation2 + $0x10] ss:$36 sps:$4 sm:$0xff]   ;;  %v378_v16 = vld [vmem:[#allocation5 + $0x690] sm:$0xff] }
 0x1a4   :  { %4316 = vmatprep.subr.bf16.mxu0 %v6492_v31  ;;  %v6738_v31 = vcombine.high %v529_v25, %v533_v26  ;;  %v382_v17 = vld [vmem:[#allocation5 + $0x6b0] sm:$0xff] }
 0x1a6   :  { %4142 = vmatpush1.bf16.msra.mxu1 %v6681_v37  ;;  %v350_v37 = vld [vmem:[#allocation5 + $0x5b0] sm:$0xff] }
 0x1a7   :  { %4317 = vmatpush1.bf16.msra.mxu0 %v6491_v38  ;;  %4143 = vmatprep.subr.bf16.mxu1 %v6690_v39  ;;  %v6737_v38 = vcombine.low %v529_v25, %v533_v26  ;;  %v6547_v39 = vcombine.low %v338_v27, %v342_v28  ;;  %v6556_v41 = vcombine.high %v346_v36, %v350_v37  ;;  %v581_v25 = vld [vmem:[#allocation5 + $0xce8] sm:$0xff]  ;;  %v386_v26 = vld [vmem:[#allocation5 + $0x6d0] sm:$0xff] }
 0x1a8   :  { %4318 = vmatprep.subr.bf16.mxu0 %v6500_v40  ;;  %v6555_v51 = vcombine.low %v346_v36, %v350_v37  ;;  %v390_v27 = vld [vmem:[#allocation5 + $0x6f0] sm:$0xff]  ;;  %v8152_v37 = vld [vmem:[#allocation2 + $0x58] ss:$36 sps:$4 sm:$0xff]  }
 0x1a9   :  { %v398_v36 = vld [vmem:[#allocation5 + $0x730] sm:$0xff] }
 0x1aa   :  { %4144 = vmatpush1.bf16.msra.mxu1 %v6689_v46  ;;  %v354_v46 = vld [vmem:[#allocation5 + $0x5d0] sm:$0xff] }
 0x1ab   :  { %4319 = vmatpush1.bf16.msra.mxu0 %v6499_v47  ;;  %4145 = vmatprep.subr.bf16.mxu1 %v6698_v48  ;;  %v358_v47 = vld [vmem:[#allocation5 + $0x5f0] sm:$0xff] }
 0x1ac   :  { %4341 = vmatprep.subr.bf16.mxu0 %v6508_v49  ;;  %v6745_v49 = vcombine.low %v537_v34, %v541_v35  ;;  %v6564_v53 = vcombine.high %v354_v46, %v358_v47  ;;  %v6563_v61 = vcombine.low %v354_v46, %v358_v47  ;;  %v597_v46 = vld [vmem:[#allocation5 + $0xd68] sm:$0xff]  ;;  %v402_v47 = vld [vmem:[#allocation5 + $0x750] sm:$0xff] }
 0x1ae   :  { %4146 = vmatpush1.bf16.msra.mxu1 %v6697_v55  ;;  %4321 = vmatmul.mubr.bf16.vlgmr.msra.gmra.mrb[8].mxu0 %v7649_v63  ;;  %v553_v55 = vld [vmem:[#allocation5 + $0xc08] sm:$0xff] }
 0x1af   :  { %4342 = vmatpush1.bf16.msra.mxu0 %v6507_v56  ;;  %4147 = vmatprep.subr.bf16.mxu1 %v6706_v58  ;;  %v557_v56 = vld [vmem:[#allocation5 + $0xc28] sm:$0xff]  ;;  %v362_v58 = vld [vmem:[#allocation5 + $0x610] sm:$0xff] }
 0x1b0   :  { %4343 = vmatprep.subr.bf16.mxu0 %v6516_v59  ;;  %4330 = vmatprep.mubr.bf16.mxu0 %v7650_v6  ;;  %v366_v59 = vld [vmem:[#allocation5 + $0x630] sm:$0xff]  ;;  %v6762_v21 = vcombine.high %v553_v55, %v557_v56  ;;  %v561_v63 = vld [vmem:[#allocation5 + $0xc48] sm:$0xff]  ;;  %v6761_v5 = vcombine.low %v553_v55, %v557_v56 }
 0x1b1   :  { %v6572_v62 = vcombine.high %v362_v58, %v366_v59  ;;  %v6571_v7 = vcombine.low %v362_v58, %v366_v59  ;;  %v601_v56 = vld [vmem:[#allocation5 + $0xd88] sm:$0xff]  ;;  %v410_v59 = vld [vmem:[#allocation5 + $0x790] sm:$0xff] }
 0x1b2   :  { %4148 = vmatpush1.bf16.msra.mxu1 %v6705_v1  ;;  %v565_v1 = vld [vmem:[#allocation5 + $0xc68] sm:$0xff] }
 0x1b3   :  { %4344 = vmatpush1.bf16.msra.mxu0 %v6515_v2  ;;  %4149 = vmatprep.subr.bf16.mxu1 %v6714_v57  ;;  %v370_v57 = vld [vmem:[#allocation5 + $0x650] sm:$0xff]  ;;  %v6770_v33 = vcombine.high %v561_v63, %v565_v1  ;;  %v6769_v18 = vcombine.low %v561_v63, %v565_v1  ;;  %v605_v58 = vld [vmem:[#allocation5 + $0xda8] sm:$0xff] }
 0x1b4   :  { %4345 = vmatprep.subr.bf16.mxu0 %v6524_v3  ;;  %v374_v3 = vld [vmem:[#allocation5 + $0x670] sm:$0xff] }
 0x1b6   :  { %4150 = vmatpush1.bf16.msra.mxu1 %v6713_v9  ;;  %4331 = vmatmul.mubr.bf16.gmra.mrb[12].mxu0 %v7651_v20  ;;  %v6579_v20 = vcombine.low %v370_v57, %v374_v3 }
 0x1b7   :  { %4346 = vmatpush1.bf16.msra.mxu0 %v6523_v12  ;;  %4151 = vmatprep.subr.bf16.mxu1 %v6722_v13  ;;  %v6580_v12 = vcombine.high %v370_v57, %v374_v3  ;;  %v569_v13 = vld [vmem:[#allocation5 + $0xc88] sm:$0xff] }
 0x1b8   :  { %4347 = vmatprep.subr.bf16.mxu0 %v6532_v14  ;;  %4373 = vmatprep.mubr.bf16.mxu0 %v8114_v0  ;;  %v6746_v0 = vcombine.high %v537_v34, %v541_v35  ;;  %v573_v14 = vld [vmem:[#allocation5 + $0xca8] sm:$0xff]  ;;  %v394_v35 = vld [vmem:[#allocation5 + $0x710] sm:$0xff] }
 0x1b9   :  { %v6777_v28 = vcombine.low %v569_v13, %v573_v14  ;;  %v589_v34 = vld [vmem:[#allocation5 + $0xd28] sm:$0xff]  ;;  %v6604_v42 = vcombine.high %v394_v35, %v398_v36 }
 0x1ba   :  { %4152 = vmatpush1.bf16.msra.mxu1 %v6721_v19  ;;  %v8149_v19 = vld [vmem:[#allocation2 + $0x5c] ss:$36 sps:$4 sm:$0xff]  }
 0x1bb   :  { %4348 = vmatpush1.bf16.msra.mxu0 %v6531_v22  ;;  %4153 = vmatprep.subr.bf16.mxu1 %v6730_v23  ;;  %v8130_v40 = vpop.f32.mrb[0].mxu1  ;;  %v6778_v22 = vcombine.high %v569_v13, %v573_v14  ;;  %v6588_v23 = vcombine.high %v378_v16, %v382_v17  ;;  %v609_v57 = vld [vmem:[#allocation5 + $0xdc8] sm:$0xff]  ;;  %v6809_v13 = vcombine.low %v601_v56, %v605_v58 }
 0x1bc   :  { %4349 = vmatprep.subr.bf16.mxu0 %v6540_v24  ;;  %v8132_v44 = vpop.f32.mrb[1].mxu1  ;;  %v577_v24 = vld [vmem:[#allocation5 + $0xcc8] sm:$0xff] }
 0x1bd   :  { %v8134_v48 = vpop.f32.mrb[2].mxu1  ;;  %v613_v3 = vld [vmem:[#allocation5 + $0xde8] sm:$0xff] }
 0x1be   :  { %4154 = vmatpush1.bf16.msra.mxu1 %v6729_v29  ;;  %v8136_v50 = vpop.f32.mrb[3].mxu1  ;;  %v6587_v29 = vcombine.low %v378_v16, %v382_v17  ;;  %v6818_v17 = vcombine.high %v609_v57, %v613_v3 }
 0x1bf   :  { %4350 = vmatpush1.bf16.msra.mxu0 %v6539_v30  ;;  %4155 = vmatprep.subr.bf16.mxu1 %v6738_v31  ;;  %v6786_v30 = vcombine.high %v577_v24, %v581_v25  ;;  %v6596_v31 = vcombine.high %v386_v26, %v390_v27 }
 0x1c0   :  { %4351 = vmatprep.subr.bf16.mxu0 %v6548_v32  ;;  %v585_v32 = vld [vmem:[#allocation5 + $0xd08] sm:$0xff] }
 0x1c2   :  { %4156 = vmatpush1.bf16.msra.mxu1 %v6737_v38  ;;  %v6785_v38 = vcombine.low %v577_v24, %v581_v25  ;;  %v430_v24 = vld [vmem:[#allocation5 + $0x830] sm:$0xff]  ;;  %v6817_v25 = vcombine.low %v609_v57, %v613_v3  ;;  %v649_v57 = vld [vmem:[#allocation5 + $0xf08] sm:$0xff] }
 0x1c3   :  { %4352 = vmatpush1.bf16.msra.mxu0 %v6547_v39  ;;  %4157 = vmatprep.subr.bf16.mxu1 %v6746_v0  ;;  %v8155_v39 = vld [vmem:[#allocation2 + $0x1c] ss:$36 sps:$4 sm:$0xff]   ;;  %v6595_v0 = vcombine.low %v386_v26, %v390_v27 }
 0x1c4   :  { %4353 = vmatprep.subr.bf16.mxu0 %v6556_v41  ;;  %v8138_v2 = vpop.f32.mrb[4].mxu1  ;;  %v6794_v41 = vcombine.high %v585_v32, %v589_v34  ;;  %v653_v3 = vld [vmem:[#allocation5 + $0xf28] sm:$0xff] }
 0x1c5   :  { %v8140_v4 = vpop.f32.mrb[5].mxu1 }
 0x1c6   :  { %4158 = vmatpush1.bf16.msra.mxu1 %v6745_v49  ;;  %v8142_v6 = vpop.f32.mrb[6].mxu1  ;;  %v406_v49 = vld [vmem:[#allocation5 + $0x770] sm:$0xff] }
 0x1c7   :  { %4354 = vmatpush1.bf16.msra.mxu0 %v6555_v51  ;;  %4159 = vmatprep.subr.bf16.mxu1 %v6754_v52  ;;  %v8144_v9 = vpop.f32.mrb[7].mxu1  ;;  %v6793_v51 = vcombine.low %v585_v32, %v589_v34  ;;  %v6603_v52 = vcombine.low %v394_v35, %v398_v36  ;;  %v6612_v55 = vcombine.high %v402_v47, %v406_v49  ;;  %v434_v32 = vld [vmem:[#allocation5 + $0x850] sm:$0xff] }
 0x1c8   :  { %4355 = vmatprep.subr.bf16.mxu0 %v6564_v53  ;;  %v6802_v53 = vcombine.high %v593_v43, %v597_v46  ;;  %v438_v34 = vld [vmem:[#allocation5 + $0x870] sm:$0xff] }
 0x1ca   :  { %4160 = vmatpush1.bf16.msra.mxu1 %v6753_v60  ;;  %v414_v60 = vld [vmem:[#allocation5 + $0x7b0] sm:$0xff] }
 0x1cb   :  { %4356 = vmatpush1.bf16.msra.mxu0 %v6563_v61  ;;  %4182 = vmatprep.subr.bf16.mxu1 %v6762_v21  ;;  %v6801_v61 = vcombine.low %v593_v43, %v597_v46  ;;  %v6611_v21 = vcombine.low %v402_v47, %v406_v49  ;;  %v6620_v1 = vcombine.high %v410_v59, %v414_v60  ;;  %v633_v46 = vld [vmem:[#allocation5 + $0xe88] sm:$0xff]  ;;  %v442_v49 = vld [vmem:[#allocation5 + $0x890] sm:$0xff] }
 0x1cc   :  { %4357 = vmatprep.subr.bf16.mxu0 %v6572_v62  ;;  %v6810_v62 = vcombine.high %v601_v56, %v605_v58  ;;  %v6619_v16 = vcombine.low %v410_v59, %v414_v60  ;;  %v6644_v43 = vcombine.high %v434_v32, %v438_v34  ;;  %v637_v47 = vld [vmem:[#allocation5 + $0xea8] sm:$0xff]  ;;  %v450_v60 = vld [vmem:[#allocation5 + $0x8d0] sm:$0xff] }
 0x1cd   :  { %4162 = vmatmul.mubr.bf16.vlgmr.msra.gmra.mrb[16].mxu1 %v8146_v15  ;;  %v641_v58 = vld [vmem:[#allocation5 + $0xec8] sm:$0xff] }
 0x1ce   :  { %4183 = vmatpush1.bf16.msra.mxu1 %v6761_v5  ;;  %4171 = vmatprep.mubr.bf16.mxu1 %v8149_v19  ;;  %v645_v59 = vld [vmem:[#allocation5 + $0xee8] sm:$0xff] }
 0x1cf   :  { %4358 = vmatpush1.bf16.msra.mxu0 %v6571_v7  ;;  %4184 = vmatprep.subr.bf16.mxu1 %v6770_v33  ;;  %v418_v7 = vld [vmem:[#allocation5 + $0x7d0] sm:$0xff] }
 0x1d0   :  { %4359 = vmatprep.subr.bf16.mxu0 %v6580_v12  ;;  %v422_v33 = vld [vmem:[#allocation5 + $0x7f0] sm:$0xff] }
 0x1d1   :  { %v6627_v26 = vcombine.low %v418_v7, %v422_v33 }
 0x1d2   :  { %4185 = vmatpush1.bf16.msra.mxu1 %v6769_v18  ;;  %v6628_v18 = vcombine.high %v418_v7, %v422_v33  ;;  %v458_v7 = vld [vmem:[#allocation5 + $0x910] sm:$0xff] }
 0x1d3   :  { %4360 = vmatpush1.bf16.msra.mxu0 %v6579_v20  ;;  %4186 = vmatprep.subr.bf16.mxu1 %v6778_v22  ;;  %v617_v20 = vld [vmem:[#allocation5 + $0xe08] sm:$0xff]  ;;  %v462_v33 = vld [vmem:[#allocation5 + $0x930] sm:$0xff] }
 0x1d4   :  { %4361 = vmatprep.subr.bf16.mxu0 %v6588_v23  ;;  %v621_v22 = vld [vmem:[#allocation5 + $0xe28] sm:$0xff]  ;;  %v426_v23 = vld [vmem:[#allocation5 + $0x810] sm:$0xff] }
 0x1d5   :  { %4172 = vmatmul.mubr.bf16.gmra.mrb[20].mxu1 %v8152_v37  ;;  %v6826_v27 = vcombine.high %v617_v20, %v621_v22  ;;  %v6825_v36 = vcombine.low %v617_v20, %v621_v22  ;;  %v661_v20 = vld [vmem:[#allocation5 + $0xf68] sm:$0xff]  ;;  %v466_v22 = vld [vmem:[#allocation5 + $0x950] sm:$0xff] }
 0x1d6   :  { %4187 = vmatpush1.bf16.msra.mxu1 %v6777_v28  ;;  %4214 = vmatprep.mubr.bf16.mxu1 %v8155_v39  ;;  %v6636_v28 = vcombine.high %v426_v23, %v430_v24 }
 0x1d7   :  { %4362 = vmatpush1.bf16.msra.mxu0 %v6587_v29  ;;  %4188 = vmatprep.subr.bf16.mxu1 %v6786_v30  ;;  %v625_v29 = vld [vmem:[#allocation5 + $0xe48] sm:$0xff] }
 0x1d8   :  { %4363 = vmatprep.subr.bf16.mxu0 %v6596_v31  ;;  %v629_v30 = vld [vmem:[#allocation5 + $0xe68] sm:$0xff] }
 0x1da   :  { %4189 = vmatpush1.bf16.msra.mxu1 %v6785_v38 }
 0x1db   :  { %4364 = vmatpush1.bf16.msra.mxu0 %v6595_v0  ;;  %4190 = vmatprep.subr.bf16.mxu1 %v6794_v41  ;;  %v6635_v0 = vcombine.low %v426_v23, %v430_v24  ;;  %v6834_v41 = vcombine.high %v625_v29, %v629_v30  ;;  %v470_v23 = vld [vmem:[#allocation5 + $0x970] sm:$0xff]  ;;  %v6857_v24 = vcombine.low %v649_v57, %v653_v3 }
 0x1dc   :  { %4365 = vmatprep.subr.bf16.mxu0 %v6604_v42 }
 0x1de   :  { %4191 = vmatpush1.bf16.msra.mxu1 %v6793_v51  ;;  %v446_v51 = vld [vmem:[#allocation5 + $0x8b0] sm:$0xff] }
 0x1df   :  { %4366 = vmatpush1.bf16.msra.mxu0 %v6603_v52  ;;  %4192 = vmatprep.subr.bf16.mxu1 %v6802_v53  ;;  %v6833_v52 = vcombine.low %v625_v29, %v629_v30  ;;  %v6643_v53 = vcombine.low %v434_v32, %v438_v34  ;;  %v6652_v56 = vcombine.high %v442_v49, %v446_v51  ;;  %v474_v29 = vld [vmem:[#allocation5 + $0x990] sm:$0xff] }
 0x1e0   :  { %v8158_v63 = vpop.f32.mrb[8].mxu1  ;;  %4367 = vmatprep.subr.bf16.mxu0 %v6612_v55  ;;  %v6842_v55 = vcombine.high %v633_v46, %v637_v47  ;;  %v478_v30 = vld [vmem:[#allocation5 + $0x9b0] sm:$0xff]  ;;  %v6675_v34 = vcombine.low %v466_v22, %v470_v23 }
 0x1e1   :  { %v8160_v5 = vpop.f32.mrb[9].mxu1 }
 0x1e2   :  { %v8162_v12 = vpop.f32.mrb[10].mxu1  ;;  %4193 = vmatpush1.bf16.msra.mxu1 %v6801_v61  ;;  %v454_v61 = vld [vmem:[#allocation5 + $0x8f0] sm:$0xff] }
 0x1e3   :  { %4368 = vmatpush1.bf16.msra.mxu0 %v6611_v21  ;;  %v8164_v14 = vpop.f32.mrb[11].mxu1  ;;  %4194 = vmatprep.subr.bf16.mxu1 %v6810_v62  ;;  %v6841_v21 = vcombine.low %v633_v46, %v637_v47  ;;  %v6651_v62 = vcombine.low %v442_v49, %v446_v51  ;;  %v486_v46 = vld [vmem:[#allocation5 + $0x9f0] sm:$0xff]  ;;  %v6683_v49 = vcombine.low %v474_v29, %v478_v30 }
 0x1e4   :  { %4369 = vmatprep.subr.bf16.mxu0 %v6620_v1  ;;  %v6850_v1 = vcombine.high %v641_v58, %v645_v59 }
 0x1e6   :  { %4195 = vmatpush1.bf16.msra.mxu1 %v6809_v13  ;;  %v6849_v13 = vcombine.low %v641_v58, %v645_v59  ;;  %v494_v58 = vld [vmem:[#allocation5 + $0xa30] sm:$0xff] }
 0x1e7   :  { %4370 = vmatpush1.bf16.msra.mxu0 %v6619_v16  ;;  %4196 = vmatprep.subr.bf16.mxu1 %v6818_v17  ;;  %v6858_v16 = vcombine.high %v649_v57, %v653_v3  ;;  %v6668_v17 = vcombine.high %v458_v7, %v462_v33  ;;  %v502_v57 = vld [vmem:[#allocation5 + $0xa70] sm:$0xff] }
 0x1e8   :  { %4371 = vmatprep.subr.bf16.mxu0 %v6628_v18  ;;  %v8166_v31 = vpop.f32.mrb[12].mxu1  ;;  %v657_v18 = vld [vmem:[#allocation5 + $0xf48] sm:$0xff] }
 0x1e9   :  { %v8168_v35 = vpop.f32.mrb[13].mxu1  ;;  %v6865_v32 = vcombine.low %v657_v18, %v661_v20 }
 0x1ea   :  { %4197 = vmatpush1.bf16.msra.mxu1 %v6817_v25  ;;  %v8170_v38 = vpop.f32.mrb[14].mxu1  ;;  %v6667_v25 = vcombine.low %v458_v7, %v462_v33 }
 0x1eb   :  { %4372 = vmatpush1.bf16.msra.mxu0 %v6627_v26  ;;  %4198 = vmatprep.subr.bf16.mxu1 %v6826_v27  ;;  %v8172_v42 = vpop.f32.mrb[15].mxu1  ;;  %v6866_v26 = vcombine.high %v657_v18, %v661_v20  ;;  %v665_v27 = vld [vmem:[#allocation5 + $0xf88] sm:$0xff]  ;;  %v506_v18 = vld [vmem:[#allocation5 + $0xa90] sm:$0xff] }
 0x1ec   :  { %4394 = vmatprep.subr.bf16.mxu0 %v6636_v28  ;;  %v669_v28 = vld [vmem:[#allocation5 + $0xfa8] sm:$0xff]  ;;  %v510_v20 = vld [vmem:[#allocation5 + $0xab0] sm:$0xff] }
 0x1ed   :  { %v6873_v47 = vcombine.low %v665_v27, %v669_v28 }
 0x1ee   :  { %4199 = vmatpush1.bf16.msra.mxu1 %v6825_v36  ;;  %4374 = vmatmul.mubr.bf16.vlgmr.msra.gmra.mrb[8].mxu0 %v8117_v54  ;;  %v6660_v54 = vcombine.high %v450_v60, %v454_v61  ;;  %v6684_v36 = vcombine.high %v474_v29, %v478_v30  ;;  %v518_v29 = vld [vmem:[#allocation5 + $0xaf0] sm:$0xff] }
 0x1ef   :  { %4395 = vmatpush1.bf16.msra.mxu0 %v6635_v0  ;;  %4200 = vmatprep.subr.bf16.mxu1 %v6834_v41  ;;  %v673_v0 = vld [vmem:[#allocation5 + $0xfc8] sm:$0xff] }
 0x1f0   :  { %4396 = vmatprep.subr.bf16.mxu0 %v6644_v43  ;;  %4383 = vmatprep.mubr.bf16.mxu0 %v8120_v11  ;;  %v6659_v11 = vcombine.low %v450_v60, %v454_v61  ;;  %v677_v41 = vld [vmem:[#allocation5 + $0xfe8] sm:$0xff]  ;;  %v482_v43 = vld [vmem:[#allocation5 + $0x9d0] sm:$0xff] }
 0x1f1   :  { %v6882_v51 = vcombine.high %v673_v0, %v677_v41  ;;  %v6881_v59 = vcombine.low %v673_v0, %v677_v41  ;;  %v6691_v60 = vcombine.low %v482_v43, %v486_v46  ;;  %v717_v0 = vld [vmem:[#allocation5 + $0x1128] sm:$0xff]  ;;  %v522_v41 = vld [vmem:[#allocation5 + $0xb10] sm:$0xff] }
 0x1f2   :  { %4201 = vmatpush1.bf16.msra.mxu1 %v6833_v52  ;;  %v6692_v52 = vcombine.high %v482_v43, %v486_v46  ;;  %v526_v43 = vld [vmem:[#allocation5 + $0xb30] sm:$0xff] }
 0x1f3   :  { %4397 = vmatpush1.bf16.msra.mxu0 %v6643_v53  ;;  %4202 = vmatprep.subr.bf16.mxu1 %v6842_v55  ;;  %v681_v53 = vld [vmem:[#allocation5 + $0x1008] sm:$0xff]  ;;  %v8184_v46 = vld [vmem:[#allocation2 + $0x60] ss:$36 sps:$4 sm:$0xff]  }
 0x1f4   :  { %4398 = vmatprep.subr.bf16.mxu0 %v6652_v56  ;;  %v685_v55 = vld [vmem:[#allocation5 + $0x1028] sm:$0xff]  ;;  %v490_v56 = vld [vmem:[#allocation5 + $0xa10] sm:$0xff] }
 0x1f5   :  { %v6890_v61 = vcombine.high %v681_v53, %v685_v55  ;;  %v6889_v3 = vcombine.low %v681_v53, %v685_v55  ;;  %v6699_v7 = vcombine.low %v490_v56, %v494_v58  ;;  %v721_v53 = vld [vmem:[#allocation5 + $0x1148] sm:$0xff] }
 0x1f6   :  { %4203 = vmatpush1.bf16.msra.mxu1 %v6841_v21  ;;  %4384 = vmatmul.mubr.bf16.gmra.mrb[12].mxu0 %v8123_v8  ;;  %v6676_v8 = vcombine.high %v466_v22, %v470_v23  ;;  %v6700_v21 = vcombine.high %v490_v56, %v494_v58  ;;  %v8181_v23 = vld [vmem:[#allocation2 + $0x64] ss:$36 sps:$4 sm:$0xff]   ;;  %v725_v55 = vld [vmem:[#allocation5 + $0x1168] sm:$0xff] }
 0x1f7   :  { %4399 = vmatpush1.bf16.msra.mxu0 %v6651_v62  ;;  %4204 = vmatprep.subr.bf16.mxu1 %v6850_v1  ;;  %v689_v62 = vld [vmem:[#allocation5 + $0x1048] sm:$0xff]  ;;  %v530_v56 = vld [vmem:[#allocation5 + $0xb50] sm:$0xff] }
 0x1f8   :  { %4400 = vmatprep.subr.bf16.mxu0 %v6660_v54  ;;  %4426 = vmatprep.mubr.bf16.mxu0 %v8126_v10  ;;  %v6874_v10 = vcombine.high %v665_v27, %v669_v28  ;;  %v693_v1 = vld [vmem:[#allocation5 + $0x1068] sm:$0xff]  ;;  %v498_v54 = vld [vmem:[#allocation5 + $0xa50] sm:$0xff] }
 0x1f9   :  { %v6898_v33 = vcombine.high %v689_v62, %v693_v1  ;;  %v6897_v22 = vcombine.low %v689_v62, %v693_v1  ;;  %v709_v27 = vld [vmem:[#allocation5 + $0x10e8] sm:$0xff]  ;;  %v514_v28 = vld [vmem:[#allocation5 + $0xad0] sm:$0xff] }
 0x1fa   :  { %4205 = vmatpush1.bf16.msra.mxu1 %v6849_v13  ;;  %v6708_v13 = vcombine.high %v498_v54, %v502_v57  ;;  %v534_v58 = vld [vmem:[#allocation5 + $0xb70] sm:$0xff]  ;;  %v729_v62 = vld [vmem:[#allocation5 + $0x1188] sm:$0xff] }
 0x1fb   :  { %4401 = vmatpush1.bf16.msra.mxu0 %v6659_v11  ;;  %4206 = vmatprep.subr.bf16.mxu1 %v6858_v16  ;;  %v697_v11 = vld [vmem:[#allocation5 + $0x1088] sm:$0xff] }
 0x1fc   :  { %4402 = vmatprep.subr.bf16.mxu0 %v6668_v17  ;;  %v701_v16 = vld [vmem:[#allocation5 + $0x10a8] sm:$0xff] }
 0x1fd   :  { %v8178_v17 = vld [vmem:[#allocation2 + $0x18] ss:$36 sps:$4 sm:$0xff]   ;;  %v6905_v30 = vcombine.low %v697_v11, %v701_v16 }
 0x1fe   :  { %4207 = vmatpush1.bf16.msra.mxu1 %v6857_v24  ;;  %v6707_v24 = vcombine.low %v498_v54, %v502_v57  ;;  %v733_v1 = vld [vmem:[#allocation5 + $0x11a8] sm:$0xff]  ;;  %v538_v54 = vld [vmem:[#allocation5 + $0xb90] sm:$0xff] }
 0x1ff   :  { %4403 = vmatpush1.bf16.msra.mxu0 %v6667_v25  ;;  %4208 = vmatprep.subr.bf16.mxu1 %v6866_v26  ;;  %v6906_v25 = vcombine.high %v697_v11, %v701_v16  ;;  %v6716_v26 = vcombine.high %v506_v18, %v510_v20  ;;  %v542_v57 = vld [vmem:[#allocation5 + $0xbb0] sm:$0xff]  ;;  %v737_v11 = vld [vmem:[#allocation5 + $0x11c8] sm:$0xff] }
 0x200   :  { %4404 = vmatprep.subr.bf16.mxu0 %v6676_v8  ;;  %v705_v8 = vld [vmem:[#allocation5 + $0x10c8] sm:$0xff] }
 0x201   :  { %v741_v16 = vld [vmem:[#allocation5 + $0x11e8] sm:$0xff] }
 0x202   :  { %4209 = vmatpush1.bf16.msra.mxu1 %v6865_v32  ;;  %v6715_v32 = vcombine.low %v506_v18, %v510_v20  ;;  %v546_v18 = vld [vmem:[#allocation5 + $0xbd0] sm:$0xff] }
 0x203   :  { %4405 = vmatpush1.bf16.msra.mxu0 %v6675_v34  ;;  %4210 = vmatprep.subr.bf16.mxu1 %v6874_v10  ;;  %v6914_v34 = vcombine.high %v705_v8, %v709_v27  ;;  %v6724_v10 = vcombine.high %v514_v28, %v518_v29  ;;  %v550_v20 = vld [vmem:[#allocation5 + $0xbf0] sm:$0xff] }
 0x204   :  { %4406 = vmatprep.subr.bf16.mxu0 %v6684_v36  ;;  %v713_v36 = vld [vmem:[#allocation5 + $0x1108] sm:$0xff] }
 0x206   :  { %4211 = vmatpush1.bf16.msra.mxu1 %v6873_v47  ;;  %v6913_v47 = vcombine.low %v705_v8, %v709_v27  ;;  %v171_v8 = vld [vmem:[#allocation5 + $0x18] sm:$0xff] }
 0x207   :  { %4407 = vmatpush1.bf16.msra.mxu0 %v6683_v49  ;;  %4212 = vmatprep.subr.bf16.mxu1 %v6882_v51  ;;  %v6723_v49 = vcombine.low %v514_v28, %v518_v29  ;;  %v6922_v51 = vcombine.high %v713_v36, %v717_v0  ;;  %v175_v27 = vld [vmem:[#allocation5 + $0x38] sm:$0xff]  ;;  %v554_v28 = vld [vmem:[#allocation5 + $0xc10] sm:$0xff] }
 0x208   :  { %4408 = vmatprep.subr.bf16.mxu0 %v6692_v52  ;;  %v6732_v52 = vcombine.high %v522_v41, %v526_v43  ;;  %v558_v29 = vld [vmem:[#allocation5 + $0xc30] sm:$0xff] }
 0x20a   :  { %4213 = vmatpush1.bf16.msra.mxu1 %v6881_v59  ;;  %v6921_v59 = vcombine.low %v713_v36, %v717_v0  ;;  %v179_v36 = vld [vmem:[#allocation5 + $0x58] sm:$0xff] }
 0x20b   :  { %4409 = vmatpush1.bf16.msra.mxu0 %v6691_v60  ;;  %4235 = vmatprep.subr.bf16.mxu1 %v6890_v61  ;;  %v6731_v60 = vcombine.low %v522_v41, %v526_v43  ;;  %v6930_v61 = vcombine.high %v721_v53, %v725_v55  ;;  %v183_v0 = vld [vmem:[#allocation5 + $0x78] sm:$0xff]  ;;  %v562_v41 = vld [vmem:[#allocation5 + $0xc50] sm:$0xff] }
 0x20c   :  { %4410 = vmatprep.subr.bf16.mxu0 %v6700_v21  ;;  %v6740_v21 = vcombine.high %v530_v56, %v534_v58  ;;  %v566_v43 = vld [vmem:[#allocation5 + $0xc70] sm:$0xff] }
 0x20d   :  { %4215 = vmatmul.mubr.bf16.vlgmr.msra.gmra.mrb[16].mxu1 %v8178_v17 }
 0x20e   :  { %4236 = vmatpush1.bf16.msra.mxu1 %v6889_v3  ;;  %4224 = vmatprep.mubr.bf16.mxu1 %v8181_v23  ;;  %v6929_v3 = vcombine.low %v721_v53, %v725_v55  ;;  %v187_v53 = vld [vmem:[#allocation5 + $0x98] sm:$0xff] }
 0x20f   :  { %4411 = vmatpush1.bf16.msra.mxu0 %v6699_v7  ;;  %4237 = vmatprep.subr.bf16.mxu1 %v6898_v33  ;;  %v6739_v7 = vcombine.low %v530_v56, %v534_v58  ;;  %v6938_v33 = vcombine.high %v729_v62, %v733_v1  ;;  %v191_v55 = vld [vmem:[#allocation5 + $0xb8] sm:$0xff]  ;;  %v8188_v56 = vld [vmem:[#allocation2 + $0x20] ss:$36 sps:$4 sm:$0xff]  }
 0x210   :  { %4412 = vmatprep.subr.bf16.mxu0 %v6708_v13  ;;  %v6748_v13 = vcombine.high %v538_v54, %v542_v57  ;;  %v570_v58 = vld [vmem:[#allocation5 + $0xc90] sm:$0xff] }
 0x212   :  { %4238 = vmatpush1.bf16.msra.mxu1 %v6897_v22  ;;  %v6937_v22 = vcombine.low %v729_v62, %v733_v1  ;;  %v746_v62 = vlaneseq }
 0x213   :  { %4413 = vmatpush1.bf16.msra.mxu0 %v6707_v24  ;;  %4239 = vmatprep.subr.bf16.mxu1 %v6906_v25  ;;  %v6747_v24 = vcombine.low %v538_v54, %v542_v57  ;;  %v6946_v25 = vcombine.high %v737_v11, %v741_v16  ;;  %v195_v54 = vld [vmem:[#allocation5 + $0xd8] sm:$0xff] }
 0x214   :  { %4414 = vmatprep.subr.bf16.mxu0 %v6716_v26  ;;  %v6756_v26 = vcombine.high %v546_v18, %v550_v20  ;;  %v199_v57 = vld [vmem:[#allocation5 + $0xf8] sm:$0xff] }
 0x215   :  { %4225 = vmatmul.mubr.bf16.gmra.mrb[20].mxu1 %v8184_v46 }
 0x216   :  { %4240 = vmatpush1.bf16.msra.mxu1 %v6905_v30  ;;  %4267 = vmatprep.mubr.bf16.mxu1 %v7929_v45  ;;  %v6945_v30 = vcombine.low %v737_v11, %v741_v16  ;;  %v8194_v11 = vshrl.u32 %v746_v62, 7  ;;  %v227_v62 = vld [vmem:[#allocation5 + $0x1d8] sm:$0xff] }
 0x217   :  { %4415 = vmatpush1.bf16.msra.mxu0 %v6715_v32  ;;  %4241 = vmatprep.subr.bf16.mxu1 %v6914_v34  ;;  %v6755_v32 = vcombine.low %v546_v18, %v550_v20  ;;  %v6382_v34 = vcombine.high %v171_v8, %v175_v27  ;;  %v203_v18 = vld [vmem:[#allocation5 + $0x118] sm:$0xff] }
 0x218   :  { %4416 = vmatprep.subr.bf16.mxu0 %v6724_v10  ;;  %v6764_v10 = vcombine.high %v554_v28, %v558_v29  ;;  %v207_v20 = vld [vmem:[#allocation5 + $0x138] sm:$0xff] }
 0x21a   :  { %4242 = vmatpush1.bf16.msra.mxu1 %v6913_v47  ;;  %v6381_v47 = vcombine.low %v171_v8, %v175_v27  ;;  %v6414_v8 = vcombine.high %v203_v18, %v207_v20  ;;  %v8201_v27 = vsub.s32 0, %v8194_v11 }
 0x21b   :  { %4417 = vmatpush1.bf16.msra.mxu0 %v6723_v49  ;;  %4243 = vmatprep.subr.bf16.mxu1 %v6922_v51  ;;  %v6763_v49 = vcombine.low %v554_v28, %v558_v29  ;;  %v6390_v51 = vcombine.high %v179_v36, %v183_v0  ;;  %v211_v29 = vld [vmem:[#allocation5 + $0x158] sm:$0xff] }
 0x21c   :  { %4418 = vmatprep.subr.bf16.mxu0 %v6732_v52  ;;  %v6772_v52 = vcombine.high %v562_v41, %v566_v43 }
 0x21e   :  { %4244 = vmatpush1.bf16.msra.mxu1 %v6921_v59  ;;  %v574_v59 = vld [vmem:[#allocation5 + $0xcb0] sm:$0xff] }
 0x21f   :  { %4419 = vmatpush1.bf16.msra.mxu0 %v6731_v60  ;;  %4245 = vmatprep.subr.bf16.mxu1 %v6930_v61  ;;  %v6389_v60 = vcombine.low %v179_v36, %v183_v0  ;;  %v6771_v61 = vcombine.low %v562_v41, %v566_v43  ;;  %v6780_v1 = vcombine.high %v570_v58, %v574_v59  ;;  %v598_v36 = vld [vmem:[#allocation5 + $0xd70] sm:$0xff] }
 0x220   :  { %4420 = vmatprep.subr.bf16.mxu0 %v6740_v21  ;;  %v6398_v21 = vcombine.high %v187_v53, %v191_v55  ;;  %v6413_v0 = vcombine.low %v203_v18, %v207_v20 }
 0x222   :  { %4246 = vmatpush1.bf16.msra.mxu1 %v6929_v3  ;;  %v578_v3 = vld [vmem:[#allocation5 + $0xcd0] sm:$0xff] }
 0x223   :  { %4421 = vmatpush1.bf16.msra.mxu0 %v6739_v7  ;;  %4247 = vmatprep.subr.bf16.mxu1 %v6938_v33  ;;  %v582_v7 = vld [vmem:[#allocation5 + $0xcf0] sm:$0xff]  ;;  %v6397_v33 = vcombine.low %v187_v53, %v191_v55 }
 0x224   :  { %4422 = vmatprep.subr.bf16.mxu0 %v6748_v13  ;;  %v6406_v13 = vcombine.high %v195_v54, %v199_v57  ;;  %v6788_v16 = vcombine.high %v578_v3, %v582_v7  ;;  %v602_v53 = vld [vmem:[#allocation5 + $0xd90] sm:$0xff] }
 0x225   :  { %v606_v55 = vld [vmem:[#allocation5 + $0xdb0] sm:$0xff] }
 0x226   :  { %4248 = vmatpush1.bf16.msra.mxu1 %v6937_v22  ;;  %v8196_v22 = vld [vmem:[#allocation2 + $0x68] ss:$36 sps:$4 sm:$0xff]  }
 0x227   :  { %4423 = vmatpush1.bf16.msra.mxu0 %v6747_v24  ;;  %4249 = vmatprep.subr.bf16.mxu1 %v6946_v25  ;;  %v586_v24 = vld [vmem:[#allocation5 + $0xd10] sm:$0xff] }
 0x228   :  { %4424 = vmatprep.subr.bf16.mxu0 %v6756_v26  ;;  %v590_v25 = vld [vmem:[#allocation5 + $0xd30] sm:$0xff]  ;;  %v6787_v26 = vcombine.low %v578_v3, %v582_v7 }
 0x229   :  { %v6796_v28 = vcombine.high %v586_v24, %v590_v25  ;;  %v6795_v41 = vcombine.low %v586_v24, %v590_v25  ;;  %v610_v3 = vld [vmem:[#allocation5 + $0xdd0] sm:$0xff] }
 0x22a   :  { %4250 = vmatpush1.bf16.msra.mxu1 %v6945_v30  ;;  %v215_v30 = vld [vmem:[#allocation5 + $0x178] sm:$0xff]  ;;  %v614_v7 = vld [vmem:[#allocation5 + $0xdf0] sm:$0xff] }
 0x22b   :  { %4425 = vmatpush1.bf16.msra.mxu0 %v6755_v32  ;;  %4553 = vmatprep.subr.bf16.mxu1 %v6382_v34  ;;  %v744_v32 = vld [vmem:[#allocation7] sm:$0xff]  ;;  %v8205_v34 = vsub.s32 1, %v8194_v11  ;;  %v6422_v43 = vcombine.high %v211_v29, %v215_v30 }
 0x22c   :  { %4447 = vmatprep.subr.bf16.mxu0 %v6764_v10  ;;  %v594_v10 = vld [vmem:[#allocation5 + $0xd50] sm:$0xff] }
 0x22d   :  { %4268 = vmatmul.mubr.bf16.vlgmr.msra.gmra.mrb[16].mxu1 %v8188_v56 }
 0x22e   :  { %4427 = vmatmul.mubr.bf16.vlgmr.msra.gmra.mrb[8].mxu0 %v8146_v15  ;;  %4554 = vmatpush1.bf16.msra.mxu1 %v6381_v47  ;;  %v6779_v15 = vcombine.low %v570_v58, %v574_v59  ;;  %v749_v47 = vrot.slane %v744_v32, %v8201_v27  ;;  %v6421_v58 = vcombine.low %v211_v29, %v215_v30  ;;  %v618_v30 = vld [vmem:[#allocation5 + $0xe10] sm:$0xff] }
 0x22f   :  { %4448 = vmatpush1.bf16.msra.mxu0 %v6763_v49  ;;  %4555 = vmatprep.subr.bf16.mxu1 %v6390_v51  ;;  %v6804_v49 = vcombine.high %v594_v10, %v598_v36  ;;  %v219_v51 = vld [vmem:[#allocation5 + $0x198] sm:$0xff]  ;;  %v6803_v59 = vcombine.low %v594_v10, %v598_v36 }
 0x230   :  { %4449 = vmatprep.subr.bf16.mxu0 %v6772_v52  ;;  %4277 = vmatprep.mubr.bf16.mxu1 %v7929_v45  ;;  %v753_v52 = vrot.slane %v744_v32, %v8205_v34  ;;  %v622_v32 = vld [vmem:[#allocation5 + $0xe30] sm:$0xff]  ;;  %v3803_v10 = vadd.f32 %v8138_v2, %v749_v47  ;;  %v3807_v2 = vadd.f32 %v8142_v6, %v749_v47 }
 0x231   :  { %4436 = vmatprep.mubr.bf16.mxu0 %v8149_v19  ;;  %v6405_v19 = vcombine.low %v195_v54, %v199_v57 }
 0x232   :  { %4556 = vmatpush1.bf16.msra.mxu1 %v6389_v60  ;;  %v3795_v54 = vadd.f32 %v8132_v44, %v753_v52 }
 0x233   :  { %4450 = vmatpush1.bf16.msra.mxu0 %v6771_v61  ;;  %4557 = vmatprep.subr.bf16.mxu1 %v6398_v21  ;;  %v3793_v61 = vadd.f32 %v8130_v40, %v749_v47  ;;  %v6812_v21 = vcombine.high %v602_v53, %v606_v55  ;;  %v6811_v40 = vcombine.low %v602_v53, %v606_v55  ;;  %v247_v53 = vld [vmem:[#allocation5 + $0x278] sm:$0xff] }
 0x234   :  { %4451 = vmatprep.subr.bf16.mxu0 %v6780_v1  ;;  %v231_v1 = vld [vmem:[#allocation5 + $0x1f8] sm:$0xff] }
 0x235   :  { %4278 = vmatmul.mubr.bf16.gmra.mrb[20].mxu1 %v8196_v22  ;;  %v6438_v25 = vcombine.high %v227_v62, %v231_v1 }
 0x236   :  { %4558 = vmatpush1.bf16.msra.mxu1 %v6397_v33  ;;  %4437 = vmatmul.mubr.bf16.gmra.mrb[12].mxu0 %v8152_v37  ;;  %v7661_v37 = vld [vmem:[#allocation2 + $0x4] ss:$36 sps:$4 sm:$0xff]   ;;  %v3797_v33 = vadd.f32 %v8134_v48, %v749_v47 }
 0x237   :  { %4452 = vmatpush1.bf16.msra.mxu0 %v6779_v15  ;;  %4559 = vmatprep.subr.bf16.mxu1 %v6406_v13  ;;  %v3799_v15 = vadd.f32 %v8136_v50, %v753_v52  ;;  %v239_v48 = vld [vmem:[#allocation5 + $0x238] sm:$0xff] }
 0x238   :  { %4453 = vmatprep.subr.bf16.mxu0 %v6788_v16  ;;  %4479 = vmatprep.mubr.bf16.mxu0 %v8155_v39  ;;  %v223_v39 = vld [vmem:[#allocation5 + $0x1b8] sm:$0xff] }
 0x239   :  { %4585 = vmatprep.mubr.bf16.mxu1 %v7661_v37  ;;  %v6430_v60 = vcombine.high %v219_v51, %v223_v39  ;;  %v6429_v18 = vcombine.low %v219_v51, %v223_v39  ;;  %v6437_v37 = vcombine.low %v227_v62, %v231_v1  ;;  %v243_v39 = vld [vmem:[#allocation5 + $0x258] sm:$0xff] }
 0x23a   :  { %4560 = vmatpush1.bf16.msra.mxu1 %v6405_v19 }
 0x23b   :  { %4454 = vmatpush1.bf16.msra.mxu0 %v6787_v26  ;;  %4561 = vmatprep.subr.bf16.mxu1 %v6414_v8  ;;  %v6820_v8 = vcombine.high %v610_v3, %v614_v7 }
 0x23c   :  { %4455 = vmatprep.subr.bf16.mxu0 %v6796_v28  ;;  %v235_v28 = vld [vmem:[#allocation5 + $0x218] sm:$0xff] }
 0x23d   :  { %v6445_v1 = vcombine.low %v235_v28, %v239_v48 }
 0x23e   :  { %4562 = vmatpush1.bf16.msra.mxu1 %v6413_v0 }
 0x23f   :  { %4456 = vmatpush1.bf16.msra.mxu0 %v6795_v41  ;;  %4563 = vmatprep.subr.bf16.mxu1 %v6422_v43  ;;  %v6446_v41 = vcombine.high %v235_v28, %v239_v48  ;;  %v3805_v43 = vadd.f32 %v8140_v4, %v753_v52  ;;  %v6827_v4 = vcombine.low %v618_v30, %v622_v32  ;;  %v259_v28 = vld [vmem:[#allocation5 + $0x2d8] sm:$0xff] }
 0x240   :  { %4457 = vmatprep.subr.bf16.mxu0 %v6804_v49  ;;  %v263_v48 = vld [vmem:[#allocation5 + $0x2f8] sm:$0xff] }
 0x241   :  { %v3951_v57 = vpop.f32.mrb[0].mxu0 }
 0x242   :  { %v7151_v13 = vadd.f32 %v3951_v57, %v3793_v61  ;;  %v3953_v16 = vpop.f32.mrb[1].mxu0  ;;  %4564 = vmatpush1.bf16.msra.mxu1 %v6421_v58 }
 0x243   :  { %v7154_v20 = vadd.f32 %v3953_v16, %v3795_v54  ;;  %v3955_v24 = vpop.f32.mrb[2].mxu0  ;;  %4458 = vmatpush1.bf16.msra.mxu0 %v6803_v59  ;;  %4565 = vmatprep.subr.bf16.mxu1 %v6430_v60  ;;  %v630_v60 = vld [vmem:[#allocation5 + $0xe70] sm:$0xff] }
 0x244   :  { %v7152_v19 = vadd.f32 %v7151_v13, %v8158_v63  ;;  %v7157_v44 = vadd.f32 %v3955_v24, %v3797_v33  ;;  %v3957_v26 = vpop.f32.mrb[3].mxu0  ;;  %4459 = vmatprep.subr.bf16.mxu0 %v6812_v21  ;;  %v6819_v63 = vcombine.low %v610_v3, %v614_v7  ;;  %v6454_v3 = vcombine.high %v243_v39, %v247_v53  ;;  %v251_v33 = vld [vmem:[#allocation5 + $0x298] sm:$0xff] }
 0x245   :  { %v7155_v50 = vadd.f32 %v7154_v20, %v8160_v5  ;;  %v7160_v29 = vadd.f32 %v3957_v26, %v3799_v15  ;;  %v6828_v5 = vcombine.high %v618_v30, %v622_v32  ;;  %v255_v15 = vld [vmem:[#allocation5 + $0x2b8] sm:$0xff]  ;;  %v638_v20 = vld [vmem:[#allocation5 + $0xeb0] sm:$0xff] }
 0x246   :  { %v7158_v36 = vadd.f32 %v7157_v44, %v8162_v12  ;;  %4566 = vmatpush1.bf16.msra.mxu1 %v6429_v18  ;;  %v4818_v49 = vmax.f32 %v7152_v19, 0.0  ;;  %v3809_v12 = vadd.f32 %v8144_v9, %v753_v52  ;;  %v634_v18 = vld [vmem:[#allocation5 + $0xe90] sm:$0xff] }
 0x247   :  { %v7161_v0 = vadd.f32 %v7160_v29, %v8164_v14  ;;  %4460 = vmatpush1.bf16.msra.mxu0 %v6811_v40  ;;  %4567 = vmatprep.subr.bf16.mxu1 %v6438_v25  ;;  %v4819_v55 = vmax.f32 %v7155_v50, 0.0  ;;  %v626_v14 = vld [vmem:[#allocation5 + $0xe50] sm:$0xff]  ;;  %v6453_v40 = vcombine.low %v243_v39, %v247_v53  ;;  %v275_v53 = vld [vmem:[#allocation5 + $0x358] sm:$0xff] }
 0x248   :  { %v4826_v51 = vmax.f32 %v7158_v36, 0.0  ;;  %4461 = vmatprep.subr.bf16.mxu0 %v6820_v8  ;;  %v6836_v7 = vcombine.high %v626_v14, %v630_v60  ;;  %v6835_v19 = vcombine.low %v626_v14, %v630_v60  ;;  %v6844_v8 = vcombine.high %v634_v18, %v638_v20  ;;  %v642_v29 = vld [vmem:[#allocation5 + $0xed0] sm:$0xff] }
 0x249   :  { %v4827_v58 = vmax.f32 %v7161_v0, 0.0  ;;  %v3961_v59 = vpop.f32.mrb[4].mxu0  ;;  %v646_v30 = vld [vmem:[#allocation5 + $0xef0] sm:$0xff]  ;;  %v267_v0 = vld [vmem:[#allocation5 + $0x318] sm:$0xff] }
 0x24a   :  { %v8221_v61 = vpack.c.bf16 %v4826_v51, %v4818_v49  ;;  %v7163_v21 = vadd.f32 %v3961_v59, %v3803_v10  ;;  %v3963_v62 = vpop.f32.mrb[5].mxu0  ;;  %4568 = vmatpush1.bf16.msra.mxu1 %v6437_v37  ;;  %v6470_v10 = vcombine.high %v259_v28, %v263_v48  ;;  %v6852_v37 = vcombine.high %v642_v29, %v646_v30 }
 0x24b   :  { %v7166_v54 = vadd.f32 %v3963_v62, %v3805_v43  ;;  %v3965_v57 = vpop.f32.mrb[6].mxu0  ;;  %4462 = vmatpush1.bf16.msra.mxu0 %v6819_v63  ;;  %4569 = vmatprep.subr.bf16.mxu1 %v6446_v41  ;;  %v8223_v6 = vpack.c.bf16 %v4827_v58, %v4819_v55  ;;  %v271_v63 = vld [vmem:[#allocation5 + $0x338] sm:$0xff]  ;;  %v650_v41 = vld [vmem:[#allocation5 + $0xf10] sm:$0xff]  ;;  %v6469_v49 = vcombine.low %v259_v28, %v263_v48 }
 0x24c   :  { %v7164_v9 = vadd.f32 %v7163_v21, %v8166_v31  ;;  %v7169_v47 = vadd.f32 %v3965_v57, %v3807_v2  ;;  %v3967_v52 = vpop.f32.mrb[7].mxu0  ;;  %4463 = vmatprep.subr.bf16.mxu0 %v6828_v5  ;;  %v6462_v31 = vcombine.high %v251_v33, %v255_v15  ;;  %v654_v43 = vld [vmem:[#allocation5 + $0xf30] sm:$0xff]  ;;  %v6851_v51 = vcombine.low %v642_v29, %v646_v30  ;;  %v279_v2 = vld [vmem:[#allocation5 + $0x378] sm:$0xff] }
 0x24d   :  { %v7167_v13 = vadd.f32 %v7166_v54, %v8168_v35  ;;  %v7172_v16 = vadd.f32 %v3967_v52, %v3809_v12  ;;  %v6478_v5 = vcombine.high %v267_v0, %v271_v63  ;;  %v6860_v39 = vcombine.high %v650_v41, %v654_v43  ;;  %v658_v12 = vld [vmem:[#allocation5 + $0xf50] sm:$0xff]  ;;  %v283_v21 = vld [vmem:[#allocation5 + $0x398] sm:$0xff] }
 0x24e   :  { %v7170_v24 = vadd.f32 %v7169_v47, %v8170_v38  ;;  %4570 = vmatpush1.bf16.msra.mxu1 %v6445_v1  ;;  %v4834_v44 = vmax.f32 %v7164_v9, 0.0  ;;  %v6461_v38 = vcombine.low %v251_v33, %v255_v15  ;;  %v662_v55 = vld [vmem:[#allocation5 + $0xf70] sm:$0xff]  ;;  %v6477_v58 = vcombine.low %v267_v0, %v271_v63  ;;  %v287_v62 = vld [vmem:[#allocation5 + $0x3b8] sm:$0xff] }
 0x24f   :  { %v7173_v25 = vadd.f32 %v7172_v16, %v8172_v42  ;;  %4464 = vmatpush1.bf16.msra.mxu0 %v6827_v4  ;;  %4571 = vmatprep.subr.bf16.mxu1 %v6454_v3  ;;  %v4835_v35 = vmax.f32 %v7167_v13, 0.0  ;;  %v6843_v42 = vcombine.low %v634_v18, %v638_v20  ;;  %v6859_v59 = vcombine.low %v650_v41, %v654_v43  ;;  %v666_v4 = vld [vmem:[#allocation5 + $0xf90] sm:$0xff]  ;;  %v291_v47 = vld [vmem:[#allocation5 + $0x3d8] sm:$0xff] }
 0x250   :  { %v4842_v26 = vmax.f32 %v7170_v24, 0.0  ;;  %4465 = vmatprep.subr.bf16.mxu0 %v6836_v7  ;;  %v6486_v14 = vcombine.high %v275_v53, %v279_v2  ;;  %v6868_v60 = vcombine.high %v658_v12, %v662_v55  ;;  %v670_v1 = vld [vmem:[#allocation5 + $0xfb0] sm:$0xff]  ;;  %v6485_v54 = vcombine.low %v275_v53, %v279_v2  ;;  %v295_v52 = vld [vmem:[#allocation5 + $0x3f8] sm:$0xff] }
 0x251   :  { %v4843_v50 = vmax.f32 %v7173_v25, 0.0  ;;  %v6867_v57 = vcombine.low %v658_v12, %v662_v55  ;;  %v6494_v3 = vcombine.high %v283_v21, %v287_v62  ;;  %v6876_v9 = vcombine.high %v666_v4, %v670_v1  ;;  %v674_v7 = vld [vmem:[#allocation5 + $0xfd0] sm:$0xff]  ;;  %v299_v20 = vld [vmem:[#allocation5 + $0x418] sm:$0xff] }
 0x252   :  { %4572 = vmatpush1.bf16.msra.mxu1 %v6453_v40  ;;  %v8229_v32 = vpack.c.bf16 %v4842_v26, %v4834_v44  ;;  %v678_v33 = vld [vmem:[#allocation5 + $0xff0] sm:$0xff]  ;;  %v6493_v15 = vcombine.low %v283_v21, %v287_v62  ;;  %v6875_v13 = vcombine.low %v666_v4, %v670_v1  ;;  %v6502_v16 = vcombine.high %v291_v47, %v295_v52  ;;  %v303_v24 = vld [vmem:[#allocation5 + $0x438] sm:$0xff] }
 0x253   :  { %4466 = vmatpush1.bf16.msra.mxu0 %v6835_v19  ;;  %4573 = vmatprep.subr.bf16.mxu1 %v6462_v31  ;;  %v8231_v36 = vpack.c.bf16 %v4843_v50, %v4835_v35  ;;  %v6884_v18 = vcombine.high %v674_v7, %v678_v33  ;;  %v682_v40 = vld [vmem:[#allocation5 + $0x1010] sm:$0xff]  ;;  %v6501_v19 = vcombine.low %v291_v47, %v295_v52  ;;  %v311_v28 = vld [vmem:[#allocation5 + $0x478] sm:$0xff] }
 0x254   :  { %4467 = vmatprep.subr.bf16.mxu0 %v6844_v8  ;;  %v686_v25 = vld [vmem:[#allocation5 + $0x1030] sm:$0xff]  ;;  %v6883_v31 = vcombine.low %v674_v7, %v678_v33  ;;  %v6510_v44 = vcombine.high %v299_v20, %v303_v24  ;;  %v307_v8 = vld [vmem:[#allocation5 + $0x458] sm:$0xff]  ;;  %v6509_v50 = vcombine.low %v299_v20, %v303_v24 }
 0x255   :  { %v6892_v26 = vcombine.high %v682_v40, %v686_v25  ;;  %v690_v48 = vld [vmem:[#allocation5 + $0x1050] sm:$0xff]  ;;  %v6891_v29 = vcombine.low %v682_v40, %v686_v25  ;;  %v6518_v30 = vcombine.high %v307_v8, %v311_v28  ;;  %v6517_v41 = vcombine.low %v307_v8, %v311_v28  ;;  %v7663_v12 = vld [vmem:[#allocation2 + $0x4c] ss:$36 sps:$4 sm:$0xff]  }
 0x256   :  { %4574 = vmatpush1.bf16.msra.mxu1 %v6461_v38  ;;  %v694_v35 = vld [vmem:[#allocation5 + $0x1070] sm:$0xff]  ;;  %v7664_v4 = vld [vmem:[#allocation2 + $0x48] ss:$36 sps:$4 sm:$0xff]  }
 0x257   :  { %4468 = vmatpush1.bf16.msra.mxu0 %v6843_v42  ;;  %4575 = vmatprep.subr.bf16.mxu1 %v6470_v10  ;;  %v6900_v38 = vcombine.high %v690_v48, %v694_v35  ;;  %v315_v42 = vld [vmem:[#allocation5 + $0x498] sm:$0xff]  ;;  %v698_v0 = vld [vmem:[#allocation5 + $0x1090] sm:$0xff]  ;;  %v6899_v43 = vcombine.low %v690_v48, %v694_v35 }
 0x258   :  { %4469 = vmatprep.subr.bf16.mxu0 %v6852_v37  ;;  %v319_v10 = vld [vmem:[#allocation5 + $0x4b8] sm:$0xff]  ;;  %v7662_v37 = vld [vmem:[#allocation2] ss:$36 sps:$4 sm:$0xff]  }
 0x259   :  { %v702_v63 = vld [vmem:[#allocation5 + $0x10b0] sm:$0xff]  ;;  %v6525_v55 = vcombine.low %v315_v42, %v319_v10  ;;  %v7665_v7 = vld [vmem:[#allocation2 + $0xc] ss:$36 sps:$4 sm:$0xff]  }
 0x25a   :  { %4576 = vmatpush1.bf16.msra.mxu1 %v6469_v49  ;;  %v6526_v49 = vcombine.high %v315_v42, %v319_v10  ;;  %v706_v53 = vld [vmem:[#allocation5 + $0x10d0] sm:$0xff] }
 0x25b   :  { %4470 = vmatpush1.bf16.msra.mxu0 %v6851_v51  ;;  %4577 = vmatprep.subr.bf16.mxu1 %v6478_v5  ;;  %v6908_v51 = vcombine.high %v698_v0, %v702_v63  ;;  %v323_v5 = vld [vmem:[#allocation5 + $0x4d8] sm:$0xff]  ;;  %v710_v2 = vld [vmem:[#allocation5 + $0x10f0] sm:$0xff] }
 0x25c   :  { %4471 = vmatprep.subr.bf16.mxu0 %v6860_v39  ;;  %v327_v39 = vld [vmem:[#allocation5 + $0x4f8] sm:$0xff]  ;;  %v714_v21 = vld [vmem:[#allocation5 + $0x1110] sm:$0xff]  ;;  %v6915_v1 = vcombine.low %v706_v53, %v710_v2 }
 0x25d   :  { %v718_v62 = vld [vmem:[#allocation5 + $0x1130] sm:$0xff] }
 0x25e   :  { %4578 = vmatpush1.bf16.msra.mxu1 %v6477_v58  ;;  %v6534_v58 = vcombine.high %v323_v5, %v327_v39  ;;  %v722_v47 = vld [vmem:[#allocation5 + $0x1150] sm:$0xff] }
 0x25f   :  { %4472 = vmatpush1.bf16.msra.mxu0 %v6859_v59  ;;  %4579 = vmatprep.subr.bf16.mxu1 %v6486_v14  ;;  %v6916_v59 = vcombine.high %v706_v53, %v710_v2  ;;  %v331_v14 = vld [vmem:[#allocation5 + $0x518] sm:$0xff]  ;;  %v726_v52 = vld [vmem:[#allocation5 + $0x1170] sm:$0xff] }
 0x260   :  { %4473 = vmatprep.subr.bf16.mxu0 %v6868_v60  ;;  %v335_v60 = vld [vmem:[#allocation5 + $0x538] sm:$0xff]  ;;  %v730_v20 = vld [vmem:[#allocation5 + $0x1190] sm:$0xff]  ;;  %v6931_v25 = vcombine.low %v722_v47, %v726_v52 }
 0x261   :  { %v6541_v33 = vcombine.low %v331_v14, %v335_v60  ;;  %v734_v24 = vld [vmem:[#allocation5 + $0x11b0] sm:$0xff]  ;;  %v383_v53 = vld [vmem:[#allocation5 + $0x6b8] sm:$0xff] }
 0x262   :  { %4580 = vmatpush1.bf16.msra.mxu1 %v6485_v54  ;;  %v6542_v54 = vcombine.high %v331_v14, %v335_v60  ;;  %v738_v8 = vld [vmem:[#allocation5 + $0x11d0] sm:$0xff]  ;;  %v6939_v35 = vcombine.low %v730_v20, %v734_v24 }
 0x263   :  { %4474 = vmatpush1.bf16.msra.mxu0 %v6867_v57  ;;  %4581 = vmatprep.subr.bf16.mxu1 %v6494_v3  ;;  %v6924_v57 = vcombine.high %v714_v21, %v718_v62  ;;  %v339_v3 = vld [vmem:[#allocation5 + $0x558] sm:$0xff]  ;;  %v742_v28 = vld [vmem:[#allocation5 + $0x11f0] sm:$0xff] }
 0x264   :  { %4475 = vmatprep.subr.bf16.mxu0 %v6876_v9  ;;  %v343_v9 = vld [vmem:[#allocation5 + $0x578] sm:$0xff]  ;;  %v6947_v10 = vcombine.low %v738_v8, %v742_v28  ;;  %v7393_v60 = vld [vmem:[#allocation8 + $0x20] ss:$8 sps:$4 sm:$0xff]  }
 0x265   :  { %v6549_v40 = vcombine.low %v339_v3, %v343_v9 }
 0x266   :  { %4582 = vmatpush1.bf16.msra.mxu1 %v6493_v15  ;;  %v6923_v15 = vcombine.low %v714_v21, %v718_v62  ;;  %v395_v62 = vld [vmem:[#allocation5 + $0x718] sm:$0xff] }
 0x267   :  { %4476 = vmatpush1.bf16.msra.mxu0 %v6875_v13  ;;  %4583 = vmatprep.subr.bf16.mxu1 %v6502_v16  ;;  %v6932_v13 = vcombine.high %v722_v47, %v726_v52  ;;  %v347_v16 = vld [vmem:[#allocation5 + $0x598] sm:$0xff]  ;;  %v7399_v52 = vld [vmem:[#allocation8 + $0x40] ss:$8 sps:$4 sm:$0xff]  }
 0x268   :  { %4477 = vmatprep.subr.bf16.mxu0 %v6884_v18  ;;  %v351_v18 = vld [vmem:[#allocation5 + $0x5b8] sm:$0xff] }
 0x269   :  { %v6557_v48 = vcombine.low %v347_v16, %v351_v18 }
 0x26a   :  { %4584 = vmatpush1.bf16.msra.mxu1 %v6501_v19  ;;  %v6558_v19 = vcombine.high %v347_v16, %v351_v18  ;;  %v7407_v16 = vld [vmem:[#allocation8 + $0x64] ss:$8 sps:$4 sm:$0xff]   ;;  %v419_v18 = vld [vmem:[#allocation5 + $0x7d8] sm:$0xff] }
 0x26b   :  { %4478 = vmatpush1.bf16.msra.mxu0 %v6883_v31  ;;  %4606 = vmatprep.subr.bf16.mxu1 %v6510_v44  ;;  %v6940_v31 = vcombine.high %v730_v20, %v734_v24  ;;  %v355_v44 = vld [vmem:[#allocation5 + $0x5d8] sm:$0xff] }
 0x26c   :  { %4500 = vmatprep.subr.bf16.mxu0 %v6892_v26  ;;  %v359_v26 = vld [vmem:[#allocation5 + $0x5f8] sm:$0xff] }
 0x26d   :  { %4586 = vmatmul.mubr.bf16.vlgmr.msra.gmra.mrb[24].mxu1 %v7662_v37  ;;  %v6565_v42 = vcombine.low %v355_v44, %v359_v26  ;;  %v423_v20 = vld [vmem:[#allocation5 + $0x7f8] sm:$0xff] }
 0x26e   :  { %4480 = vmatmul.mubr.bf16.vlgmr.msra.gmra.mrb[8].mxu0 %v8178_v17  ;;  %4607 = vmatpush1.bf16.msra.mxu1 %v6509_v50  ;;  %v6907_v17 = vcombine.low %v698_v0, %v702_v63  ;;  %v6566_v50 = vcombine.high %v355_v44, %v359_v26  ;;  %v7389_v0 = vld [vmem:[#allocation8 + $0x4] ss:$8 sps:$4 sm:$0xff]   ;;  %v371_v63 = vld [vmem:[#allocation5 + $0x658] sm:$0xff]  ;;  %v6629_v26 = vcombine.low %v419_v18, %v423_v20 }
 0x26f   :  { %4501 = vmatpush1.bf16.msra.mxu0 %v6891_v29  ;;  %4608 = vmatprep.subr.bf16.mxu1 %v6518_v30  ;;  %v6948_v29 = vcombine.high %v738_v8, %v742_v28  ;;  %v363_v30 = vld [vmem:[#allocation5 + $0x618] sm:$0xff] }
 0x270   :  { %4502 = vmatprep.subr.bf16.mxu0 %v6900_v38  ;;  %4489 = vmatprep.mubr.bf16.mxu0 %v8181_v23  ;;  %v6533_v23 = vcombine.low %v323_v5, %v327_v39  ;;  %v367_v38 = vld [vmem:[#allocation5 + $0x638] sm:$0xff] }
 0x271   :  { %4595 = vmatprep.mubr.bf16.mxu1 %v7663_v12  ;;  %v6574_v37 = vcombine.high %v363_v30, %v367_v38  ;;  %v7392_v5 = vld [vmem:[#allocation8 + $0x14] ss:$8 sps:$4 sm:$0xff]   ;;  %v7390_v12 = vld [vmem:[#allocation8 + $0x10] ss:$8 sps:$4 sm:$0xff]  }
 0x272   :  { %4609 = vmatpush1.bf16.msra.mxu1 %v6517_v41  ;;  %v375_v41 = vld [vmem:[#allocation5 + $0x678] sm:$0xff] }
 0x273   :  { %4503 = vmatpush1.bf16.msra.mxu0 %v6899_v43  ;;  %4610 = vmatprep.subr.bf16.mxu1 %v6526_v49  ;;  %v6573_v43 = vcombine.low %v363_v30, %v367_v38  ;;  %v7387_v49 = vld [vmem:[#allocation8] ss:$8 sps:$4 sm:$0xff]   ;;  %v379_v39 = vld [vmem:[#allocation5 + $0x698] sm:$0xff]  ;;  %v6581_v2 = vcombine.low %v371_v63, %v375_v41 }
 0x274   :  { %4504 = vmatprep.subr.bf16.mxu0 %v6908_v51  ;;  %v6582_v51 = vcombine.high %v371_v63, %v375_v41  ;;  %v6589_v14 = vcombine.low %v379_v39, %v383_v53  ;;  %v431_v44 = vld [vmem:[#allocation5 + $0x838] sm:$0xff]  ;;  %v7411_v30 = vld [vmem:[#allocation8 + $0x80] ss:$8 sps:$4 sm:$0xff]  }
 0x275   :  { %4596 = vmatmul.mubr.bf16.gmra.mrb[28].mxu1 %v7664_v4  ;;  %v399_v4 = vld [vmem:[#allocation5 + $0x738] sm:$0xff]  ;;  %v7667_v41 = vld [vmem:[#allocation2 + $0x54] ss:$36 sps:$4 sm:$0xff]  }
 0x276   :  { %4611 = vmatpush1.bf16.msra.mxu1 %v6525_v55  ;;  %4490 = vmatmul.mubr.bf16.gmra.mrb[12].mxu0 %v8184_v46  ;;  %v6550_v46 = vcombine.high %v339_v3, %v343_v9  ;;  %v6590_v55 = vcombine.high %v379_v39, %v383_v53  ;;  %v403_v3 = vld [vmem:[#allocation5 + $0x758] sm:$0xff]  ;;  %v6605_v47 = vcombine.low %v395_v62, %v399_v4 }
 0x277   :  { %4505 = vmatpush1.bf16.msra.mxu0 %v6907_v17  ;;  %4612 = vmatprep.subr.bf16.mxu1 %v6534_v58  ;;  %v7395_v17 = vld [vmem:[#allocation8 + $0x24] ss:$8 sps:$4 sm:$0xff]   ;;  %v387_v58 = vld [vmem:[#allocation5 + $0x6d8] sm:$0xff] }
 0x278   :  { %4506 = vmatprep.subr.bf16.mxu0 %v6916_v59  ;;  %4532 = vmatprep.mubr.bf16.mxu0 %v7929_v45  ;;  %v391_v59 = vld [vmem:[#allocation5 + $0x6f8] sm:$0xff] }
 0x279   :  { %4638 = vmatprep.mubr.bf16.mxu1 %v7665_v7  ;;  %v6598_v21 = vcombine.high %v387_v58, %v391_v59  ;;  %v407_v9 = vld [vmem:[#allocation5 + $0x778] sm:$0xff] }
 0x27a   :  { %4613 = vmatpush1.bf16.msra.mxu1 %v6533_v23  ;;  %v6597_v23 = vcombine.low %v387_v58, %v391_v59  ;;  %v6614_v7 = vcombine.high %v403_v3, %v407_v9  ;;  %v7408_v8 = vld [vmem:[#allocation8 + $0x70] ss:$8 sps:$4 sm:$0xff]  }
 0x27b   :  { %4507 = vmatpush1.bf16.msra.mxu0 %v6915_v1  ;;  %4614 = vmatprep.subr.bf16.mxu1 %v6542_v54  ;;  %v7396_v1 = vld [vmem:[#allocation8 + $0x30] ss:$8 sps:$4 sm:$0xff]   ;;  %v6606_v54 = vcombine.high %v395_v62, %v399_v4  ;;  %v7425_v62 = vld [vmem:[#allocation8 + $0xc4] ss:$8 sps:$4 sm:$0xff]  }
 0x27c   :  { %4508 = vmatprep.subr.bf16.mxu0 %v6924_v57  ;;  %v7401_v57 = vld [vmem:[#allocation8 + $0x44] ss:$8 sps:$4 sm:$0xff]   ;;  %v455_v39 = vld [vmem:[#allocation5 + $0x8f8] sm:$0xff]  ;;  %v7668_v59 = vld [vmem:[#allocation2 + $0x50] ss:$36 sps:$4 sm:$0xff]  }
 0x27d   :  { %v463_v58 = vld [vmem:[#allocation5 + $0x938] sm:$0xff] }
 0x27e   :  { %4615 = vmatpush1.bf16.msra.mxu1 %v6541_v33  ;;  %v411_v33 = vld [vmem:[#allocation5 + $0x798] sm:$0xff] }
 0x27f   :  { %4509 = vmatpush1.bf16.msra.mxu0 %v6923_v15  ;;  %4616 = vmatprep.subr.bf16.mxu1 %v6550_v46  ;;  %v415_v15 = vld [vmem:[#allocation5 + $0x7b8] sm:$0xff]  ;;  %v6613_v46 = vcombine.low %v403_v3, %v407_v9 }
 0x280   :  { %4510 = vmatprep.subr.bf16.mxu0 %v6932_v13  ;;  %v6622_v13 = vcombine.high %v411_v33, %v415_v15  ;;  %v6621_v24 = vcombine.low %v411_v33, %v415_v15  ;;  %v467_v4 = vld [vmem:[#allocation5 + $0x958] sm:$0xff]  ;;  %v7431_v33 = vld [vmem:[#allocation8 + $0xe4] ss:$8 sps:$4 sm:$0xff]  }
 0x281   :  { %v7428_v3 = vld [vmem:[#allocation8 + $0xd4] ss:$8 sps:$4 sm:$0xff]  }
 0x282   :  { %4617 = vmatpush1.bf16.msra.mxu1 %v6549_v40  ;;  %v7405_v40 = vld [vmem:[#allocation8 + $0x60] ss:$8 sps:$4 sm:$0xff]   ;;  %v475_v9 = vld [vmem:[#allocation5 + $0x998] sm:$0xff] }
 0x283   :  { %4511 = vmatpush1.bf16.msra.mxu0 %v6931_v25  ;;  %4618 = vmatprep.subr.bf16.mxu1 %v6558_v19  ;;  %v6630_v25 = vcombine.high %v419_v18, %v423_v20  ;;  %v7410_v19 = vld [vmem:[#allocation8 + $0x74] ss:$8 sps:$4 sm:$0xff]  }
 0x284   :  { %4512 = vmatprep.subr.bf16.mxu0 %v6940_v31  ;;  %v427_v31 = vld [vmem:[#allocation5 + $0x818] sm:$0xff] }
 0x285   :  { %v6638_v28 = vcombine.high %v427_v31, %v431_v44  ;;  %v483_v15 = vld [vmem:[#allocation5 + $0x9d8] sm:$0xff] }
 0x286   :  { %4619 = vmatpush1.bf16.msra.mxu1 %v6557_v48  ;;  %v7413_v48 = vld [vmem:[#allocation8 + $0x84] ss:$8 sps:$4 sm:$0xff]   ;;  %v7434_v18 = vld [vmem:[#allocation8 + $0xf4] ss:$8 sps:$4 sm:$0xff]  }
 0x287   :  { %4513 = vmatpush1.bf16.msra.mxu0 %v6939_v35  ;;  %4620 = vmatprep.subr.bf16.mxu1 %v6566_v50  ;;  %v435_v35 = vld [vmem:[#allocation5 + $0x858] sm:$0xff] }
 0x288   :  { %4514 = vmatprep.subr.bf16.mxu0 %v6948_v29  ;;  %v439_v50 = vld [vmem:[#allocation5 + $0x878] sm:$0xff]  ;;  %v6637_v29 = vcombine.low %v427_v31, %v431_v44  ;;  %v7437_v31 = vld [vmem:[#allocation8 + $0x104] ss:$8 sps:$4 sm:$0xff]  }
 0x289   :  { %v6646_v38 = vcombine.high %v435_v35, %v439_v50  ;;  %v6645_v63 = vcombine.low %v435_v35, %v439_v50  ;;  %v491_v20 = vld [vmem:[#allocation5 + $0xa18] sm:$0xff] }
 0x28a   :  { %4621 = vmatpush1.bf16.msra.mxu1 %v6565_v42  ;;  %v7416_v42 = vld [vmem:[#allocation8 + $0x94] ss:$8 sps:$4 sm:$0xff]  }
 0x28b   :  { %4515 = vmatpush1.bf16.msra.mxu0 %v6947_v10  ;;  %4622 = vmatprep.subr.bf16.mxu1 %v6574_v37  ;;  %v443_v10 = vld [vmem:[#allocation5 + $0x898] sm:$0xff] }
 0x28c   :  { %5646 = vmatprep.subr.bf16.mxu0 %v7389_v0  ;;  %v447_v37 = vld [vmem:[#allocation5 + $0x8b8] sm:$0xff] }
 0x28d   :  { %v7666_v0 = vld [vmem:[#allocation2 + $0x8] ss:$36 sps:$4 sm:$0xff]   ;;  %v6653_v53 = vcombine.low %v443_v10, %v447_v37 }
 0x28e   :  { %4533 = vmatmul.mubr.bf16.vlgmr.msra.gmra.mrb[8].mxu0 %v8188_v56  ;;  %4623 = vmatpush1.bf16.msra.mxu1 %v6573_v43  ;;  %v7398_v56 = vld [vmem:[#allocation8 + $0x34] ss:$8 sps:$4 sm:$0xff]   ;;  %v7414_v43 = vld [vmem:[#allocation8 + $0x90] ss:$8 sps:$4 sm:$0xff]  }
 0x28f   :  { %5647 = vmatpush1.bf16.msra.mxu0 %v7387_v49  ;;  %4624 = vmatprep.subr.bf16.mxu1 %v6582_v51  ;;  %v6654_v49 = vcombine.high %v443_v10, %v447_v37  ;;  %v7419_v51 = vld [vmem:[#allocation8 + $0xa4] ss:$8 sps:$4 sm:$0xff]   ;;  %v499_v44 = vld [vmem:[#allocation5 + $0xa58] sm:$0xff] }
 0x290   :  { %5648 = vmatprep.subr.bf16.mxu0 %v7392_v5  ;;  %4542 = vmatprep.mubr.bf16.mxu0 %v7929_v45  ;;  %v451_v5 = vld [vmem:[#allocation5 + $0x8d8] sm:$0xff]  ;;  %v7443_v10 = vld [vmem:[#allocation8 + $0x124] ss:$8 sps:$4 sm:$0xff]  }
 0x291   :  { %v7440_v35 = vld [vmem:[#allocation8 + $0x114] ss:$8 sps:$4 sm:$0xff]  }
 0x292   :  { %4625 = vmatpush1.bf16.msra.mxu1 %v6581_v2  ;;  %v7417_v2 = vld [vmem:[#allocation8 + $0xa0] ss:$8 sps:$4 sm:$0xff]   ;;  %v507_v50 = vld [vmem:[#allocation5 + $0xa98] sm:$0xff] }
 0x293   :  { %5649 = vmatpush1.bf16.msra.mxu0 %v7390_v12  ;;  %4626 = vmatprep.subr.bf16.mxu1 %v6590_v55  ;;  %v6662_v12 = vcombine.high %v451_v5, %v455_v39  ;;  %v7422_v55 = vld [vmem:[#allocation8 + $0xb4] ss:$8 sps:$4 sm:$0xff]  }
 0x294   :  { %5650 = vmatprep.subr.bf16.mxu0 %v7395_v17  ;;  %v459_v17 = vld [vmem:[#allocation5 + $0x918] sm:$0xff] }
 0x295   :  { %v515_v37 = vld [vmem:[#allocation5 + $0xad8] sm:$0xff] }
 0x296   :  { %4543 = vmatmul.mubr.bf16.gmra.mrb[12].mxu0 %v8196_v22  ;;  %4627 = vmatpush1.bf16.msra.mxu1 %v6589_v14  ;;  %v7404_v22 = vld [vmem:[#allocation8 + $0x54] ss:$8 sps:$4 sm:$0xff]   ;;  %v6661_v14 = vcombine.low %v451_v5, %v455_v39  ;;  %v7444_v5 = vld [vmem:[#allocation8 + $0x130] ss:$8 sps:$4 sm:$0xff]  }
 0x297   :  { %5651 = vmatpush1.bf16.msra.mxu0 %v7393_v60  ;;  %5678 = vmatprep.mubr.bf16.mxu0 %v8223_v6  ;;  %v7402_v6 = vld [vmem:[#allocation8 + $0x50] ss:$8 sps:$4 sm:$0xff]   ;;  %v7669_v60 = vld [vmem:[#allocation2 + $0x14] ss:$36 sps:$4 sm:$0xff]  }
 0x298   :  { %4628 = vmatprep.subr.bf16.mxu1 %v6598_v21  ;;  %5652 = vmatprep.subr.bf16.mxu0 %v7398_v56  ;;  %v7420_v21 = vld [vmem:[#allocation8 + $0xb0] ss:$8 sps:$4 sm:$0xff]   ;;  %v6670_v56 = vcombine.high %v459_v17, %v463_v58 }
 0x29a   :  { %4629 = vmatpush1.bf16.msra.mxu1 %v6597_v23  ;;  %v471_v23 = vld [vmem:[#allocation5 + $0x978] sm:$0xff] }
 0x29b   :  { %5653 = vmatpush1.bf16.msra.mxu0 %v7396_v1  ;;  %4630 = vmatprep.subr.bf16.mxu1 %v6606_v54  ;;  %v6669_v1 = vcombine.low %v459_v17, %v463_v58  ;;  %v7423_v54 = vld [vmem:[#allocation8 + $0xc0] ss:$8 sps:$4 sm:$0xff]  }
 0x29c   :  { %5654 = vmatprep.subr.bf16.mxu0 %v7401_v57  ;;  %v6678_v57 = vcombine.high %v467_v4, %v471_v23  ;;  %v7447_v17 = vld [vmem:[#allocation8 + $0x140] ss:$8 sps:$4 sm:$0xff]  }
 0x29e   :  { %4631 = vmatpush1.bf16.msra.mxu1 %v6605_v47  ;;  %v479_v47 = vld [vmem:[#allocation5 + $0x9b8] sm:$0xff] }
 0x29f   :  { %5655 = vmatpush1.bf16.msra.mxu0 %v7399_v52  ;;  %4632 = vmatprep.subr.bf16.mxu1 %v6614_v7  ;;  %v6677_v52 = vcombine.low %v467_v4, %v471_v23  ;;  %v7426_v7 = vld [vmem:[#allocation8 + $0xd0] ss:$8 sps:$4 sm:$0xff]  }
 0x2a0   :  { %5656 = vmatprep.subr.bf16.mxu0 %v7404_v22  ;;  %v6686_v22 = vcombine.high %v475_v9, %v479_v47  ;;  %v547_v4 = vld [vmem:[#allocation5 + $0xbd8] sm:$0xff] }
 0x2a1   :  { %v551_v23 = vld [vmem:[#allocation5 + $0xbf8] sm:$0xff] }
 0x2a2   :  { %4633 = vmatpush1.bf16.msra.mxu1 %v6613_v46  ;;  %v487_v46 = vld [vmem:[#allocation5 + $0x9f8] sm:$0xff] }
 0x2a3   :  { %5657 = vmatpush1.bf16.msra.mxu0 %v7402_v6  ;;  %4634 = vmatprep.subr.bf16.mxu1 %v6622_v13  ;;  %v6685_v6 = vcombine.low %v475_v9, %v479_v47  ;;  %v7429_v13 = vld [vmem:[#allocation8 + $0xe0] ss:$8 sps:$4 sm:$0xff]   ;;  %v555_v9 = vld [vmem:[#allocation5 + $0xc18] sm:$0xff] }
 0x2a4   :  { %5658 = vmatprep.subr.bf16.mxu0 %v7407_v16  ;;  %v6694_v16 = vcombine.high %v483_v15, %v487_v46  ;;  %v559_v47 = vld [vmem:[#allocation5 + $0xc38] sm:$0xff] }
 0x2a6   :  { %4635 = vmatpush1.bf16.msra.mxu1 %v6621_v24  ;;  %v495_v24 = vld [vmem:[#allocation5 + $0xa38] sm:$0xff] }
 0x2a7   :  { %5659 = vmatpush1.bf16.msra.mxu0 %v7405_v40  ;;  %4636 = vmatprep.subr.bf16.mxu1 %v6630_v25  ;;  %v6693_v40 = vcombine.low %v483_v15, %v487_v46  ;;  %v7432_v25 = vld [vmem:[#allocation8 + $0xf0] ss:$8 sps:$4 sm:$0xff]  }
 0x2a8   :  { %5660 = vmatprep.subr.bf16.mxu0 %v7410_v19  ;;  %v6702_v19 = vcombine.high %v491_v20, %v495_v24  ;;  %v563_v15 = vld [vmem:[#allocation5 + $0xc58] sm:$0xff] }
 0x2a9   :  { %v567_v46 = vld [vmem:[#allocation5 + $0xc78] sm:$0xff] }
 0x2aa   :  { %4637 = vmatpush1.bf16.msra.mxu1 %v6629_v26  ;;  %v503_v26 = vld [vmem:[#allocation5 + $0xa78] sm:$0xff] }
 0x2ab   :  { %5661 = vmatpush1.bf16.msra.mxu0 %v7408_v8  ;;  %4659 = vmatprep.subr.bf16.mxu1 %v6638_v28  ;;  %v6701_v8 = vcombine.low %v491_v20, %v495_v24  ;;  %v7435_v28 = vld [vmem:[#allocation8 + $0x100] ss:$8 sps:$4 sm:$0xff]   ;;  %v571_v20 = vld [vmem:[#allocation5 + $0xc98] sm:$0xff] }
 0x2ac   :  { %5662 = vmatprep.subr.bf16.mxu0 %v7413_v48  ;;  %v6710_v48 = vcombine.high %v499_v44, %v503_v26  ;;  %v575_v24 = vld [vmem:[#allocation5 + $0xcb8] sm:$0xff] }
 0x2ad   :  { %4639 = vmatmul.mubr.bf16.vlgmr.msra.gmra.mrb[24].mxu1 %v7666_v0  ;;  %v519_v0 = vld [vmem:[#allocation5 + $0xaf8] sm:$0xff] }
 0x2ae   :  { %4660 = vmatpush1.bf16.msra.mxu1 %v6637_v29  ;;  %4648 = vmatprep.mubr.bf16.mxu1 %v7667_v41  ;;  %v511_v29 = vld [vmem:[#allocation5 + $0xab8] sm:$0xff]  ;;  %v7441_v41 = vld [vmem:[#allocation8 + $0x120] ss:$8 sps:$4 sm:$0xff]  }
 0x2af   :  { %5663 = vmatpush1.bf16.msra.mxu0 %v7411_v30  ;;  %4661 = vmatprep.subr.bf16.mxu1 %v6646_v38  ;;  %v6709_v30 = vcombine.low %v499_v44, %v503_v26  ;;  %v7438_v38 = vld [vmem:[#allocation8 + $0x110] ss:$8 sps:$4 sm:$0xff]   ;;  %v6782_v44 = vcombine.high %v571_v20, %v575_v24  ;;  %v7467_v26 = vld [vmem:[#allocation8 + $0x1a4] ss:$8 sps:$4 sm:$0xff]  }
 0x2b0   :  { %5664 = vmatprep.subr.bf16.mxu0 %v7416_v42  ;;  %v6718_v42 = vcombine.high %v507_v50, %v511_v29 }
 0x2b2   :  { %4662 = vmatpush1.bf16.msra.mxu1 %v6645_v63  ;;  %v6717_v63 = vcombine.low %v507_v50, %v511_v29  ;;  %v7470_v29 = vld [vmem:[#allocation8 + $0x1b4] ss:$8 sps:$4 sm:$0xff]  }
 0x2b3   :  { %5665 = vmatpush1.bf16.msra.mxu0 %v7414_v43  ;;  %4663 = vmatprep.subr.bf16.mxu1 %v6654_v49  ;;  %v6726_v43 = vcombine.high %v515_v37, %v519_v0  ;;  %v523_v49 = vld [vmem:[#allocation5 + $0xb18] sm:$0xff] }
 0x2b4   :  { %5666 = vmatprep.subr.bf16.mxu0 %v7419_v51  ;;  %v527_v51 = vld [vmem:[#allocation5 + $0xb38] sm:$0xff] }
 0x2b5   :  { %4649 = vmatmul.mubr.bf16.gmra.mrb[28].mxu1 %v7668_v59  ;;  %v6734_v39 = vcombine.high %v523_v49, %v527_v51  ;;  %v7452_v59 = vld [vmem:[#allocation8 + $0x154] ss:$8 sps:$4 sm:$0xff]  }
 0x2b6   :  { %4664 = vmatpush1.bf16.msra.mxu1 %v6653_v53  ;;  %4691 = vmatprep.mubr.bf16.mxu1 %v7669_v60  ;;  %v7449_v53 = vld [vmem:[#allocation8 + $0x144] ss:$8 sps:$4 sm:$0xff]  }
 0x2b7   :  { %5667 = vmatpush1.bf16.msra.mxu0 %v7417_v2  ;;  %4665 = vmatprep.subr.bf16.mxu1 %v6662_v12  ;;  %v531_v2 = vld [vmem:[#allocation5 + $0xb58] sm:$0xff] }
 0x2b8   :  { %5668 = vmatprep.subr.bf16.mxu0 %v7422_v55  ;;  %v535_v12 = vld [vmem:[#allocation5 + $0xb78] sm:$0xff]  ;;  %v6733_v55 = vcombine.low %v523_v49, %v527_v51  ;;  %v756_v49 = vsub.s32 2, %v8194_v11 }
 0x2b9   :  { %v6742_v58 = vcombine.high %v531_v2, %v535_v12  ;;  %v6741_v60 = vcombine.low %v531_v2, %v535_v12  ;;  %v603_v2 = vld [vmem:[#allocation5 + $0xd98] sm:$0xff] }
 0x2ba   :  { %4666 = vmatpush1.bf16.msra.mxu1 %v6661_v14  ;;  %v539_v14 = vld [vmem:[#allocation5 + $0xb98] sm:$0xff] }
 0x2bb   :  { %5669 = vmatpush1.bf16.msra.mxu0 %v7420_v21  ;;  %4667 = vmatprep.subr.bf16.mxu1 %v6670_v56  ;;  %v7450_v21 = vld [vmem:[#allocation8 + $0x150] ss:$8 sps:$4 sm:$0xff]  }
 0x2bc   :  { %5670 = vmatprep.subr.bf16.mxu0 %v7425_v62  ;;  %v7455_v62 = vld [vmem:[#allocation8 + $0x164] ss:$8 sps:$4 sm:$0xff]   ;;  %v607_v12 = vld [vmem:[#allocation5 + $0xdb8] sm:$0xff] }
 0x2be   :  { %4668 = vmatpush1.bf16.msra.mxu1 %v6669_v1 }
 0x2bf   :  { %5671 = vmatpush1.bf16.msra.mxu0 %v7423_v54  ;;  %4669 = vmatprep.subr.bf16.mxu1 %v6678_v57  ;;  %v7453_v54 = vld [vmem:[#allocation8 + $0x160] ss:$8 sps:$4 sm:$0xff]   ;;  %v6758_v57 = vcombine.high %v547_v4, %v551_v23 }
 0x2c0   :  { %5672 = vmatprep.subr.bf16.mxu0 %v7428_v3  ;;  %v7458_v3 = vld [vmem:[#allocation8 + $0x174] ss:$8 sps:$4 sm:$0xff]  }
 0x2c2   :  { %4670 = vmatpush1.bf16.msra.mxu1 %v6677_v52  ;;  %v6757_v52 = vcombine.low %v547_v4, %v551_v23 }
 0x2c3   :  { %5673 = vmatpush1.bf16.msra.mxu0 %v7426_v7  ;;  %4671 = vmatprep.subr.bf16.mxu1 %v6686_v22  ;;  %v7456_v7 = vld [vmem:[#allocation8 + $0x170] ss:$8 sps:$4 sm:$0xff]   ;;  %v6766_v22 = vcombine.high %v555_v9, %v559_v47 }
 0x2c4   :  { %5674 = vmatprep.subr.bf16.mxu0 %v7431_v33  ;;  %v7461_v33 = vld [vmem:[#allocation8 + $0x184] ss:$8 sps:$4 sm:$0xff]  }
 0x2c6   :  { %4672 = vmatpush1.bf16.msra.mxu1 %v6685_v6  ;;  %v6765_v6 = vcombine.low %v555_v9, %v559_v47  ;;  %v7477_v47 = vld [vmem:[#allocation8 + $0x1e0] ss:$8 sps:$4 sm:$0xff]  }
 0x2c7   :  { %5675 = vmatpush1.bf16.msra.mxu0 %v7429_v13  ;;  %4673 = vmatprep.subr.bf16.mxu1 %v6694_v16  ;;  %v7459_v13 = vld [vmem:[#allocation8 + $0x180] ss:$8 sps:$4 sm:$0xff]   ;;  %v6774_v16 = vcombine.high %v563_v15, %v567_v46 }
 0x2c8   :  { %5676 = vmatprep.subr.bf16.mxu0 %v7434_v18  ;;  %v7464_v18 = vld [vmem:[#allocation8 + $0x194] ss:$8 sps:$4 sm:$0xff]  }
 0x2ca   :  { %4674 = vmatpush1.bf16.msra.mxu1 %v6693_v40  ;;  %v7670_v40 = vld [vmem:[#allocation2 + $0x10] ss:$36 sps:$4 sm:$0xff]  }
 0x2cb   :  { %5677 = vmatpush1.bf16.msra.mxu0 %v7432_v25  ;;  %4675 = vmatprep.subr.bf16.mxu1 %v6702_v19  ;;  %v6773_v25 = vcombine.low %v563_v15, %v567_v46  ;;  %v7671_v19 = vld [vmem:[#allocation2 + $0x5c] ss:$36 sps:$4 sm:$0xff]   ;;  %v623_v15 = vld [vmem:[#allocation5 + $0xe38] sm:$0xff] }
 0x2cc   :  { %5699 = vmatprep.subr.bf16.mxu0 %v7437_v31  ;;  %v7462_v31 = vld [vmem:[#allocation8 + $0x190] ss:$8 sps:$4 sm:$0xff]  }
 0x2ce   :  { %5679 = vmatmul.mubr.bf16.vlgmr.msra.gmra.mrb[16].mxu0 %v8221_v61  ;;  %4676 = vmatpush1.bf16.msra.mxu1 %v6701_v8  ;;  %v7446_v61 = vld [vmem:[#allocation8 + $0x134] ss:$8 sps:$4 sm:$0xff]  }
 0x2cf   :  { %5688 = vmatprep.mubr.bf16.mxu0 %v8231_v36  ;;  %5700 = vmatpush1.bf16.msra.mxu0 %v7435_v28  ;;  %v6725_v36 = vcombine.low %v515_v37, %v519_v0  ;;  %v579_v8 = vld [vmem:[#allocation5 + $0xcd8] sm:$0xff]  ;;  %v7673_v37 = vld [vmem:[#allocation2 + $0x1c] ss:$36 sps:$4 sm:$0xff]  }
 0x2d0   :  { %4677 = vmatprep.subr.bf16.mxu1 %v6710_v48  ;;  %5701 = vmatprep.subr.bf16.mxu0 %v7440_v35  ;;  %v583_v28 = vld [vmem:[#allocation5 + $0xcf8] sm:$0xff]  ;;  %v6781_v48 = vcombine.low %v571_v20, %v575_v24  ;;  %v7465_v35 = vld [vmem:[#allocation8 + $0x1a0] ss:$8 sps:$4 sm:$0xff]  }
 0x2d1   :  { %v6790_v50 = vcombine.high %v579_v8, %v583_v28  ;;  %v7468_v0 = vld [vmem:[#allocation8 + $0x1b0] ss:$8 sps:$4 sm:$0xff]  }
 0x2d2   :  { %4678 = vmatpush1.bf16.msra.mxu1 %v6709_v30  ;;  %v587_v30 = vld [vmem:[#allocation5 + $0xd18] sm:$0xff] }
 0x2d3   :  { %5702 = vmatpush1.bf16.msra.mxu0 %v7438_v38  ;;  %4679 = vmatprep.subr.bf16.mxu1 %v6718_v42  ;;  %v591_v38 = vld [vmem:[#allocation5 + $0xd38] sm:$0xff]  ;;  %v7672_v42 = vld [vmem:[#allocation2 + $0x58] ss:$36 sps:$4 sm:$0xff]  }
 0x2d4   :  { %5703 = vmatprep.subr.bf16.mxu0 %v7443_v10  ;;  %v6789_v10 = vcombine.low %v579_v8, %v583_v28  ;;  %v6797_v51 = vcombine.low %v587_v30, %v591_v38  ;;  %v7480_v24 = vld [vmem:[#allocation8 + $0x1f0] ss:$8 sps:$4 sm:$0xff]  }
 0x2d6   :  { %5689 = vmatmul.mubr.bf16.gmra.mrb[20].mxu0 %v8229_v32  ;;  %4680 = vmatpush1.bf16.msra.mxu1 %v6717_v63  ;;  %v543_v32 = vld [vmem:[#allocation5 + $0xbb8] sm:$0xff]  ;;  %v6798_v63 = vcombine.high %v587_v30, %v591_v38 }
 0x2d7   :  { %5704 = vmatpush1.bf16.msra.mxu0 %v7441_v41  ;;  %4681 = vmatprep.subr.bf16.mxu1 %v6726_v43  ;;  %v6750_v56 = vcombine.high %v539_v14, %v543_v32  ;;  %v6749_v1 = vcombine.low %v539_v14, %v543_v32  ;;  %v7473_v41 = vld [vmem:[#allocation8 + $0x1c4] ss:$8 sps:$4 sm:$0xff]   ;;  %v595_v43 = vld [vmem:[#allocation5 + $0xd58] sm:$0xff]  ;;  %v6814_v32 = vcombine.high %v603_v2, %v607_v12 }
 0x2d8   :  { %5705 = vmatprep.subr.bf16.mxu0 %v7446_v61  ;;  %v599_v61 = vld [vmem:[#allocation5 + $0xd78] sm:$0xff] }
 0x2d9   :  { %v7474_v14 = vld [vmem:[#allocation8 + $0x1d0] ss:$8 sps:$4 sm:$0xff]  }
 0x2da   :  { %4682 = vmatpush1.bf16.msra.mxu1 %v6725_v36  ;;  %v760_v36 = vsub.s32 3, %v8194_v11 }
 0x2db   :  { %5706 = vmatpush1.bf16.msra.mxu0 %v7444_v5  ;;  %4683 = vmatprep.subr.bf16.mxu1 %v6734_v39  ;;  %v7471_v5 = vld [vmem:[#allocation8 + $0x1c0] ss:$8 sps:$4 sm:$0xff]   ;;  %v6806_v39 = vcombine.high %v595_v43, %v599_v61 }
 0x2dc   :  { %5707 = vmatprep.subr.bf16.mxu0 %v7449_v53  ;;  %v7476_v53 = vld [vmem:[#allocation8 + $0x1d4] ss:$8 sps:$4 sm:$0xff]  }
 0x2de   :  { %4684 = vmatpush1.bf16.msra.mxu1 %v6733_v55  ;;  %v8246_v55 = vld [vmem:[#allocation7] sm:$0xff] }
 0x2df   :  { %5708 = vmatpush1.bf16.msra.mxu0 %v7447_v17  ;;  %4685 = vmatprep.subr.bf16.mxu1 %v6742_v58  ;;  %v757_v17 = vrot.slane %v8246_v55, %v756_v49  ;;  %v761_v58 = vrot.slane %v8246_v55, %v760_v36 }
 0x2e0   :  { %5709 = vmatprep.subr.bf16.mxu0 %v7452_v59  ;;  %v6805_v59 = vcombine.low %v595_v43, %v599_v61 }
 0x2e2   :  { %4686 = vmatpush1.bf16.msra.mxu1 %v6741_v60 }
 0x2e3   :  { %5710 = vmatpush1.bf16.msra.mxu0 %v7450_v21  ;;  %4687 = vmatprep.subr.bf16.mxu1 %v6750_v56  ;;  %v7479_v21 = vld [vmem:[#allocation8 + $0x1e4] ss:$8 sps:$4 sm:$0xff]   ;;  %v611_v56 = vld [vmem:[#allocation5 + $0xdd8] sm:$0xff] }
 0x2e4   :  { %5711 = vmatprep.subr.bf16.mxu0 %v7455_v62  ;;  %v615_v62 = vld [vmem:[#allocation5 + $0xdf8] sm:$0xff] }
 0x2e6   :  { %4688 = vmatpush1.bf16.msra.mxu1 %v6749_v1 }
 0x2e7   :  { %5712 = vmatpush1.bf16.msra.mxu0 %v7453_v54  ;;  %4689 = vmatprep.subr.bf16.mxu1 %v6758_v57  ;;  %v6813_v57 = vcombine.low %v603_v2, %v607_v12  ;;  %v643_v2 = vld [vmem:[#allocation5 + $0xed8] sm:$0xff] }
 0x2e8   :  { %5713 = vmatprep.subr.bf16.mxu0 %v7458_v3  ;;  %v647_v12 = vld [vmem:[#allocation5 + $0xef8] sm:$0xff] }
 0x2ea   :  { %4690 = vmatpush1.bf16.msra.mxu1 %v6757_v52  ;;  %v6822_v52 = vcombine.high %v611_v56, %v615_v62 }
 0x2eb   :  { %5714 = vmatpush1.bf16.msra.mxu0 %v7456_v7  ;;  %4712 = vmatprep.subr.bf16.mxu1 %v6766_v22  ;;  %v7482_v22 = vld [vmem:[#allocation8 + $0x1f4] ss:$8 sps:$4 sm:$0xff]  }
 0x2ec   :  { %5715 = vmatprep.subr.bf16.mxu0 %v7461_v33  ;;  %v619_v33 = vld [vmem:[#allocation5 + $0xe18] sm:$0xff] }
 0x2ed   :  { %4692 = vmatmul.mubr.bf16.vlgmr.msra.gmra.mrb[24].mxu1 %v7670_v40  ;;  %v6830_v40 = vcombine.high %v619_v33, %v623_v15 }
 0x2ee   :  { %4713 = vmatpush1.bf16.msra.mxu1 %v6765_v6  ;;  %4701 = vmatprep.mubr.bf16.mxu1 %v7671_v19 }
 0x2ef   :  { %5716 = vmatpush1.bf16.msra.mxu0 %v7459_v13  ;;  %4714 = vmatprep.subr.bf16.mxu1 %v6774_v16 }
 0x2f0   :  { %5717 = vmatprep.subr.bf16.mxu0 %v7464_v18  ;;  %v6821_v18 = vcombine.low %v611_v56, %v615_v62  ;;  %v6853_v56 = vcombine.low %v643_v2, %v647_v12 }
 0x2f2   :  { %4715 = vmatpush1.bf16.msra.mxu1 %v6773_v25 }
 0x2f3   :  { %5718 = vmatpush1.bf16.msra.mxu0 %v7462_v31  ;;  %4716 = vmatprep.subr.bf16.mxu1 %v6782_v44  ;;  %v627_v31 = vld [vmem:[#allocation5 + $0xe58] sm:$0xff] }
 0x2f4   :  { %5719 = vmatprep.subr.bf16.mxu0 %v7467_v26  ;;  %v631_v44 = vld [vmem:[#allocation5 + $0xe78] sm:$0xff]  ;;  %v7485_v26 = vld [vmem:[#allocation8 + $0x204] ss:$8 sps:$4 sm:$0xff]  }
 0x2f5   :  { %4702 = vmatmul.mubr.bf16.gmra.mrb[28].mxu1 %v7672_v42  ;;  %v6838_v38 = vcombine.high %v627_v31, %v631_v44  ;;  %v7483_v42 = vld [vmem:[#allocation8 + $0x200] ss:$8 sps:$4 sm:$0xff]  }
 0x2f6   :  { %4717 = vmatpush1.bf16.msra.mxu1 %v6781_v48  ;;  %4744 = vmatprep.mubr.bf16.mxu1 %v7673_v37  ;;  %v635_v37 = vld [vmem:[#allocation5 + $0xe98] sm:$0xff] }
 0x2f7   :  { %5720 = vmatpush1.bf16.msra.mxu0 %v7465_v35  ;;  %4718 = vmatprep.subr.bf16.mxu1 %v6790_v50  ;;  %v6829_v50 = vcombine.low %v619_v33, %v623_v15  ;;  %v7498_v15 = vld [vmem:[#allocation8 + $0x250] ss:$8 sps:$4 sm:$0xff]  }
 0x2f8   :  { %5721 = vmatprep.subr.bf16.mxu0 %v7470_v29 }
 0x2fa   :  { %4719 = vmatpush1.bf16.msra.mxu1 %v6789_v10 }
 0x2fb   :  { %5722 = vmatpush1.bf16.msra.mxu0 %v7468_v0  ;;  %4720 = vmatprep.subr.bf16.mxu1 %v6798_v63  ;;  %v639_v0 = vld [vmem:[#allocation5 + $0xeb8] sm:$0xff] }
 0x2fc   :  { %5723 = vmatprep.subr.bf16.mxu0 %v7473_v41  ;;  %v7488_v63 = vld [vmem:[#allocation8 + $0x214] ss:$8 sps:$4 sm:$0xff]  }
 0x2fe   :  { %4721 = vmatpush1.bf16.msra.mxu1 %v6797_v51  ;;  %v6837_v51 = vcombine.low %v627_v31, %v631_v44  ;;  %v7504_v44 = vld [vmem:[#allocation8 + $0x270] ss:$8 sps:$4 sm:$0xff]  }
 0x2ff   :  { %5724 = vmatpush1.bf16.msra.mxu0 %v7471_v5  ;;  %4722 = vmatprep.subr.bf16.mxu1 %v6806_v39  ;;  %v6846_v5 = vcombine.high %v635_v37, %v639_v0  ;;  %v7486_v39 = vld [vmem:[#allocation8 + $0x210] ss:$8 sps:$4 sm:$0xff]  }
 0x300   :  { %v4269_v60 = vpop.f32.mrb[16].mxu1  ;;  %5725 = vmatprep.subr.bf16.mxu0 %v7476_v53 }
 0x301   :  { %v7174_v4 = vadd.f32 %v4269_v60, %v757_v17  ;;  %v4271_v23 = vpop.f32.mrb[17].mxu1  ;;  %v655_v60 = vld [vmem:[#allocation5 + $0xf38] sm:$0xff] }
 0x302   :  { %v7175_v1 = vadd.f32 %v4271_v23, %v761_v58  ;;  %v4273_v54 = vpop.f32.mrb[18].mxu1  ;;  %4723 = vmatpush1.bf16.msra.mxu1 %v6805_v59  ;;  %v6854_v59 = vcombine.high %v643_v2, %v647_v12  ;;  %v659_v23 = vld [vmem:[#allocation5 + $0xf58] sm:$0xff]  ;;  %v7677_v2 = vld [vmem:[#allocation2 + $0x60] ss:$36 sps:$4 sm:$0xff]  }
 0x303   :  { %v7176_v3 = vadd.f32 %v4273_v54, %v757_v17  ;;  %5726 = vmatpush1.bf16.msra.mxu0 %v7474_v14  ;;  %v4275_v9 = vpop.f32.mrb[19].mxu1  ;;  %4724 = vmatprep.subr.bf16.mxu1 %v6814_v32  ;;  %v4820_v46 = vmax.f32 %v7174_v4, 0.0  ;;  %v7489_v14 = vld [vmem:[#allocation8 + $0x220] ss:$8 sps:$4 sm:$0xff]   ;;  %v651_v32 = vld [vmem:[#allocation5 + $0xf18] sm:$0xff] }
 0x304   :  { %v7177_v7 = vadd.f32 %v4275_v9, %v761_v58  ;;  %5727 = vmatprep.subr.bf16.mxu0 %v7479_v21  ;;  %v4821_v13 = vmax.f32 %v7175_v1, 0.0  ;;  %v7494_v21 = vld [vmem:[#allocation8 + $0x234] ss:$8 sps:$4 sm:$0xff]   ;;  %v6862_v62 = vcombine.high %v651_v32, %v655_v60  ;;  %v7492_v4 = vld [vmem:[#allocation8 + $0x230] ss:$8 sps:$4 sm:$0xff]  }
 0x305   :  { %v4828_v6 = vmax.f32 %v7176_v3, 0.0  ;;  %v663_v1 = vld [vmem:[#allocation5 + $0xf78] sm:$0xff]  ;;  %v7497_v54 = vld [vmem:[#allocation8 + $0x244] ss:$8 sps:$4 sm:$0xff]   ;;  %v7495_v9 = vld [vmem:[#allocation8 + $0x240] ss:$8 sps:$4 sm:$0xff]  }
 0x306   :  { %v4829_v16 = vmax.f32 %v7177_v7, 0.0  ;;  %4725 = vmatpush1.bf16.msra.mxu1 %v6813_v57  ;;  %v6861_v57 = vcombine.low %v651_v32, %v655_v60  ;;  %v6870_v3 = vcombine.high %v659_v23, %v663_v1  ;;  %v7500_v7 = vld [vmem:[#allocation8 + $0x254] ss:$8 sps:$4 sm:$0xff]   ;;  %v7521_v32 = vld [vmem:[#allocation8 + $0x2c4] ss:$8 sps:$4 sm:$0xff]  }
 0x307   :  { %v4852_v20 = vpack.c.bf16 %v4828_v6, %v4820_v46  ;;  %5728 = vmatpush1.bf16.msra.mxu0 %v7477_v47  ;;  %4726 = vmatprep.subr.bf16.mxu1 %v6822_v52  ;;  %v667_v47 = vld [vmem:[#allocation5 + $0xf98] sm:$0xff] }
 0x308   :  { %v4853_v25 = vpack.c.bf16 %v4829_v16, %v4821_v13  ;;  %v4279_v19 = vpop.f32.mrb[20].mxu1  ;;  %5729 = vmatprep.subr.bf16.mxu0 %v7482_v22  ;;  %v671_v52 = vld [vmem:[#allocation5 + $0xfb8] sm:$0xff]  ;;  %v6869_v22 = vcombine.low %v659_v23, %v663_v1  ;;  %v7503_v13 = vld [vmem:[#allocation8 + $0x264] ss:$8 sps:$4 sm:$0xff]  }
 0x309   :  { %v7178_v8 = vadd.f32 %v4279_v19, %v757_v17  ;;  %v4281_v28 = vpop.f32.mrb[21].mxu1  ;;  %v6878_v33 = vcombine.high %v667_v47, %v671_v52  ;;  %v675_v46 = vld [vmem:[#allocation5 + $0xfd8] sm:$0xff]  ;;  %v6877_v16 = vcombine.low %v667_v47, %v671_v52  ;;  %v7527_v47 = vld [vmem:[#allocation8 + $0x2e4] ss:$8 sps:$4 sm:$0xff]  }
 0x30a   :  { %v7179_v48 = vadd.f32 %v4281_v28, %v761_v58  ;;  %v4283_v35 = vpop.f32.mrb[22].mxu1  ;;  %4727 = vmatpush1.bf16.msra.mxu1 %v6821_v18  ;;  %5731 = vmatprep.mubr.bf16.mxu0 %v4853_v25  ;;  %v679_v6 = vld [vmem:[#allocation5 + $0xff8] sm:$0xff]  ;;  %v7509_v28 = vld [vmem:[#allocation8 + $0x284] ss:$8 sps:$4 sm:$0xff]  }
 0x30b   :  { %v7180_v29 = vadd.f32 %v4283_v35, %v757_v17  ;;  %5730 = vmatpush1.bf16.msra.mxu0 %v7480_v24  ;;  %v4285_v30 = vpop.f32.mrb[23].mxu1  ;;  %4728 = vmatprep.subr.bf16.mxu1 %v6830_v40  ;;  %v4836_v41 = vmax.f32 %v7178_v8, 0.0  ;;  %v7491_v17 = vld [vmem:[#allocation8 + $0x224] ss:$8 sps:$4 sm:$0xff]   ;;  %v6886_v18 = vcombine.high %v675_v46, %v679_v6  ;;  %v683_v24 = vld [vmem:[#allocation5 + $0x1018] sm:$0xff]  ;;  %v6885_v19 = vcombine.low %v675_v46, %v679_v6 }
 0x30c   :  { %v7181_v10 = vadd.f32 %v4285_v30, %v761_v58  ;;  %5752 = vmatprep.subr.bf16.mxu0 %v7485_v26  ;;  %v4837_v61 = vmax.f32 %v7179_v48, 0.0  ;;  %v6845_v58 = vcombine.low %v635_v37, %v639_v0  ;;  %v687_v40 = vld [vmem:[#allocation5 + $0x1038] sm:$0xff]  ;;  %v7533_v6 = vld [vmem:[#allocation8 + $0x304] ss:$8 sps:$4 sm:$0xff]  }
 0x30d   :  { %v4844_v43 = vmax.f32 %v7180_v29, 0.0  ;;  %v7506_v25 = vld [vmem:[#allocation8 + $0x274] ss:$8 sps:$4 sm:$0xff]   ;;  %v6894_v31 = vcombine.high %v683_v24, %v687_v40  ;;  %v6893_v48 = vcombine.low %v683_v24, %v687_v40  ;;  %v7676_v37 = vld [vmem:[#allocation2 + $0x64] ss:$36 sps:$4 sm:$0xff]  }
 0x30e   :  { %v4845_v49 = vmax.f32 %v7181_v10, 0.0  ;;  %5732 = vmatmul.mubr.bf16.vlgmr.msra.gmra.mrb[16].mxu0 %v4852_v20  ;;  %4729 = vmatpush1.bf16.msra.mxu1 %v6829_v50  ;;  %v7501_v20 = vld [vmem:[#allocation8 + $0x260] ss:$8 sps:$4 sm:$0xff]   ;;  %v691_v26 = vld [vmem:[#allocation5 + $0x1058] sm:$0xff] }
 0x30f   :  { %v4860_v36 = vpack.c.bf16 %v4844_v43, %v4836_v41  ;;  %4730 = vmatprep.subr.bf16.mxu1 %v6838_v38  ;;  %5753 = vmatpush1.bf16.msra.mxu0 %v7483_v42  ;;  %v695_v8 = vld [vmem:[#allocation5 + $0x1078] sm:$0xff]  ;;  %v7507_v50 = vld [vmem:[#allocation8 + $0x280] ss:$8 sps:$4 sm:$0xff]  }
 0x310   :  { %v4861_v53 = vpack.c.bf16 %v4845_v49, %v4837_v61  ;;  %5754 = vmatprep.subr.bf16.mxu0 %v7488_v63  ;;  %v6902_v35 = vcombine.high %v691_v26, %v695_v8  ;;  %v699_v29 = vld [vmem:[#allocation5 + $0x1098] sm:$0xff]  ;;  %v7675_v42 = vld [vmem:[#allocation2 + $0x18] ss:$36 sps:$4 sm:$0xff]   ;;  %v6901_v10 = vcombine.low %v691_v26, %v695_v8 }
 0x311   :  { %v703_v30 = vld [vmem:[#allocation5 + $0x10b8] sm:$0xff]  ;;  %v7515_v61 = vld [vmem:[#allocation8 + $0x2a4] ss:$8 sps:$4 sm:$0xff]  }
 0x312   :  { %4731 = vmatpush1.bf16.msra.mxu1 %v6837_v51  ;;  %5741 = vmatprep.mubr.bf16.mxu0 %v4861_v53  ;;  %v7512_v38 = vld [vmem:[#allocation8 + $0x294] ss:$8 sps:$4 sm:$0xff]   ;;  %v6910_v0 = vcombine.high %v699_v29, %v703_v30  ;;  %v7510_v63 = vld [vmem:[#allocation8 + $0x290] ss:$8 sps:$4 sm:$0xff]   ;;  %v6909_v49 = vcombine.low %v699_v29, %v703_v30 }
 0x313   :  { %4732 = vmatprep.subr.bf16.mxu1 %v6846_v5  ;;  %5755 = vmatpush1.bf16.msra.mxu0 %v7486_v39  ;;  %v707_v41 = vld [vmem:[#allocation5 + $0x10d8] sm:$0xff] }
 0x314   :  { %5756 = vmatprep.subr.bf16.mxu0 %v7491_v17  ;;  %v711_v43 = vld [vmem:[#allocation5 + $0x10f8] sm:$0xff] }
 0x315   :  { %v6918_v51 = vcombine.high %v707_v41, %v711_v43  ;;  %v715_v5 = vld [vmem:[#allocation5 + $0x1118] sm:$0xff]  ;;  %v6917_v12 = vcombine.low %v707_v41, %v711_v43 }
 0x316   :  { %5742 = vmatmul.mubr.bf16.gmra.mrb[20].mxu0 %v4860_v36  ;;  %4733 = vmatpush1.bf16.msra.mxu1 %v6845_v58  ;;  %v7513_v36 = vld [vmem:[#allocation8 + $0x2a0] ss:$8 sps:$4 sm:$0xff]   ;;  %v719_v39 = vld [vmem:[#allocation5 + $0x1138] sm:$0xff] }
 0x317   :  { %4734 = vmatprep.subr.bf16.mxu1 %v6854_v59  ;;  %5757 = vmatpush1.bf16.msra.mxu0 %v7489_v14  ;;  %v7518_v53 = vld [vmem:[#allocation8 + $0x2b4] ss:$8 sps:$4 sm:$0xff]   ;;  %v6926_v17 = vcombine.high %v715_v5, %v719_v39  ;;  %v7516_v58 = vld [vmem:[#allocation8 + $0x2b0] ss:$8 sps:$4 sm:$0xff]   ;;  %v6925_v60 = vcombine.low %v715_v5, %v719_v39 }
 0x318   :  { %5758 = vmatprep.subr.bf16.mxu0 %v7494_v21  ;;  %v723_v59 = vld [vmem:[#allocation5 + $0x1158] sm:$0xff] }
 0x319   :  { %v727_v14 = vld [vmem:[#allocation5 + $0x1178] sm:$0xff] }
 0x31a   :  { %4735 = vmatpush1.bf16.msra.mxu1 %v6853_v56  ;;  %v6934_v21 = vcombine.high %v723_v59, %v727_v14  ;;  %v7519_v56 = vld [vmem:[#allocation8 + $0x2c0] ss:$8 sps:$4 sm:$0xff]   ;;  %v7524_v23 = vld [vmem:[#allocation8 + $0x2d4] ss:$8 sps:$4 sm:$0xff]   ;;  %v6933_v1 = vcombine.low %v723_v59, %v727_v14  ;;  %v7528_v46 = vld [vmem:[#allocation8 + $0x2f0] ss:$8 sps:$4 sm:$0xff]  }
 0x31b   :  { %4736 = vmatprep.subr.bf16.mxu1 %v6862_v62  ;;  %5759 = vmatpush1.bf16.msra.mxu0 %v7492_v4  ;;  %v731_v62 = vld [vmem:[#allocation5 + $0x1198] sm:$0xff]  ;;  %v7537_v59 = vld [vmem:[#allocation8 + $0x320] ss:$8 sps:$4 sm:$0xff]  }
 0x31c   :  { %5760 = vmatprep.subr.bf16.mxu0 %v7497_v54  ;;  %v735_v4 = vld [vmem:[#allocation5 + $0x11b8] sm:$0xff] }
 0x31d   :  { %v6942_v54 = vcombine.high %v731_v62, %v735_v4  ;;  %v6941_v52 = vcombine.low %v731_v62, %v735_v4  ;;  %v7542_v14 = vld [vmem:[#allocation8 + $0x334] ss:$8 sps:$4 sm:$0xff]   ;;  %v7546_v62 = vld [vmem:[#allocation8 + $0x350] ss:$8 sps:$4 sm:$0xff]   ;;  %v7551_v4 = vld [vmem:[#allocation8 + $0x364] ss:$8 sps:$4 sm:$0xff]  }
 0x31e   :  { %4737 = vmatpush1.bf16.msra.mxu1 %v6861_v57  ;;  %v7522_v57 = vld [vmem:[#allocation8 + $0x2d0] ss:$8 sps:$4 sm:$0xff]  }
 0x31f   :  { %4738 = vmatprep.subr.bf16.mxu1 %v6870_v3  ;;  %5761 = vmatpush1.bf16.msra.mxu0 %v7495_v9  ;;  %v739_v3 = vld [vmem:[#allocation5 + $0x11d8] sm:$0xff] }
 0x320   :  { %5762 = vmatprep.subr.bf16.mxu0 %v7500_v7  ;;  %v743_v9 = vld [vmem:[#allocation5 + $0x11f8] sm:$0xff] }
 0x321   :  { %v6950_v7 = vcombine.high %v739_v3, %v743_v9 }
 0x322   :  { %4739 = vmatpush1.bf16.msra.mxu1 %v6869_v22  ;;  %v7525_v22 = vld [vmem:[#allocation8 + $0x2e0] ss:$8 sps:$4 sm:$0xff]  }
 0x323   :  { %4740 = vmatprep.subr.bf16.mxu1 %v6878_v33  ;;  %5763 = vmatpush1.bf16.msra.mxu0 %v7498_v15  ;;  %v7530_v33 = vld [vmem:[#allocation8 + $0x2f4] ss:$8 sps:$4 sm:$0xff]   ;;  %v6949_v15 = vcombine.low %v739_v3, %v743_v9  ;;  %v7555_v3 = vld [vmem:[#allocation8 + $0x380] ss:$8 sps:$4 sm:$0xff]  }
 0x324   :  { %5764 = vmatprep.subr.bf16.mxu0 %v7503_v13  ;;  %v7678_v13 = vld [vmem:[#allocation2 + $0x20] ss:$36 sps:$4 sm:$0xff]   ;;  %v7560_v9 = vld [vmem:[#allocation8 + $0x394] ss:$8 sps:$4 sm:$0xff]  }
 0x326   :  { %4741 = vmatpush1.bf16.msra.mxu1 %v6877_v16  ;;  %v7679_v16 = vld [vmem:[#allocation2 + $0x68] ss:$36 sps:$4 sm:$0xff]  }
 0x327   :  { %4742 = vmatprep.subr.bf16.mxu1 %v6886_v18  ;;  %5765 = vmatpush1.bf16.msra.mxu0 %v7501_v20  ;;  %v764_v18 = vsub.s32 4, %v8194_v11  ;;  %v768_v20 = vsub.s32 5, %v8194_v11 }
 0x328   :  { %5766 = vmatprep.subr.bf16.mxu0 %v7506_v25 }
 0x329   :  { %v765_v24 = vrot.slane %v8246_v55, %v764_v18  ;;  %v769_v40 = vrot.slane %v8246_v55, %v768_v20  ;;  %v7573_v18 = vld [vmem:[#allocation8 + $0x3e0] ss:$8 sps:$4 sm:$0xff]   ;;  %v7578_v20 = vld [vmem:[#allocation8 + $0x3f4] ss:$8 sps:$4 sm:$0xff]  }
 0x32a   :  { %4743 = vmatpush1.bf16.msra.mxu1 %v6885_v19 }
 0x32b   :  { %4765 = vmatprep.subr.bf16.mxu1 %v6894_v31  ;;  %5767 = vmatpush1.bf16.msra.mxu0 %v7504_v44 }
 0x32c   :  { %5768 = vmatprep.subr.bf16.mxu0 %v7509_v28 }
 0x32d   :  { %4745 = vmatmul.mubr.bf16.vlgmr.msra.gmra.mrb[24].mxu1 %v7675_v42 }
 0x32e   :  { %4766 = vmatpush1.bf16.msra.mxu1 %v6893_v48  ;;  %4754 = vmatprep.mubr.bf16.mxu1 %v7676_v37 }
 0x32f   :  { %4767 = vmatprep.subr.bf16.mxu1 %v6902_v35  ;;  %5769 = vmatpush1.bf16.msra.mxu0 %v7507_v50 }
 0x330   :  { %5770 = vmatprep.subr.bf16.mxu0 %v7512_v38 }
 0x332   :  { %4768 = vmatpush1.bf16.msra.mxu1 %v6901_v10  ;;  %v7531_v10 = vld [vmem:[#allocation8 + $0x300] ss:$8 sps:$4 sm:$0xff]  }
 0x333   :  { %4769 = vmatprep.subr.bf16.mxu1 %v6910_v0  ;;  %5771 = vmatpush1.bf16.msra.mxu0 %v7510_v63  ;;  %v7536_v63 = vld [vmem:[#allocation8 + $0x314] ss:$8 sps:$4 sm:$0xff]  }
 0x334   :  { %5772 = vmatprep.subr.bf16.mxu0 %v7515_v61 }
 0x335   :  { %4755 = vmatmul.mubr.bf16.gmra.mrb[28].mxu1 %v7677_v2 }
 0x336   :  { %4770 = vmatpush1.bf16.msra.mxu1 %v6909_v49  ;;  %4797 = vmatprep.mubr.bf16.mxu1 %v7929_v45 }
 0x337   :  { %4771 = vmatprep.subr.bf16.mxu1 %v6918_v51  ;;  %5773 = vmatpush1.bf16.msra.mxu0 %v7513_v36  ;;  %v7534_v36 = vld [vmem:[#allocation8 + $0x310] ss:$8 sps:$4 sm:$0xff]  }
 0x338   :  { %5774 = vmatprep.subr.bf16.mxu0 %v7518_v53  ;;  %v7539_v53 = vld [vmem:[#allocation8 + $0x324] ss:$8 sps:$4 sm:$0xff]  }
 0x33a   :  { %4772 = vmatpush1.bf16.msra.mxu1 %v6917_v12 }
 0x33b   :  { %4773 = vmatprep.subr.bf16.mxu1 %v6926_v17  ;;  %5775 = vmatpush1.bf16.msra.mxu0 %v7516_v58 }
 0x33c   :  { %5776 = vmatprep.subr.bf16.mxu0 %v7521_v32  ;;  %v7540_v32 = vld [vmem:[#allocation8 + $0x330] ss:$8 sps:$4 sm:$0xff]  }
 0x33e   :  { %4774 = vmatpush1.bf16.msra.mxu1 %v6925_v60  ;;  %v7545_v60 = vld [vmem:[#allocation8 + $0x344] ss:$8 sps:$4 sm:$0xff]  }
 0x33f   :  { %4775 = vmatprep.subr.bf16.mxu1 %v6934_v21  ;;  %5777 = vmatpush1.bf16.msra.mxu0 %v7519_v56  ;;  %v7543_v21 = vld [vmem:[#allocation8 + $0x340] ss:$8 sps:$4 sm:$0xff]   ;;  %v7548_v56 = vld [vmem:[#allocation8 + $0x354] ss:$8 sps:$4 sm:$0xff]  }
 0x340   :  { %5778 = vmatprep.subr.bf16.mxu0 %v7524_v23  ;;  %v7549_v23 = vld [vmem:[#allocation8 + $0x360] ss:$8 sps:$4 sm:$0xff]  }
 0x342   :  { %4776 = vmatpush1.bf16.msra.mxu1 %v6933_v1  ;;  %v7554_v1 = vld [vmem:[#allocation8 + $0x374] ss:$8 sps:$4 sm:$0xff]  }
 0x343   :  { %4777 = vmatprep.subr.bf16.mxu1 %v6942_v54  ;;  %5779 = vmatpush1.bf16.msra.mxu0 %v7522_v57  ;;  %v7552_v54 = vld [vmem:[#allocation8 + $0x370] ss:$8 sps:$4 sm:$0xff]   ;;  %v7557_v57 = vld [vmem:[#allocation8 + $0x384] ss:$8 sps:$4 sm:$0xff]  }
 0x344   :  { %5780 = vmatprep.subr.bf16.mxu0 %v7527_v47  ;;  %v7558_v47 = vld [vmem:[#allocation8 + $0x390] ss:$8 sps:$4 sm:$0xff]  }
 0x346   :  { %4778 = vmatpush1.bf16.msra.mxu1 %v6941_v52  ;;  %v7563_v52 = vld [vmem:[#allocation8 + $0x3a4] ss:$8 sps:$4 sm:$0xff]  }
 0x347   :  { %4779 = vmatprep.subr.bf16.mxu1 %v6950_v7  ;;  %5781 = vmatpush1.bf16.msra.mxu0 %v7525_v22  ;;  %v7561_v7 = vld [vmem:[#allocation8 + $0x3a0] ss:$8 sps:$4 sm:$0xff]   ;;  %v7566_v22 = vld [vmem:[#allocation8 + $0x3b4] ss:$8 sps:$4 sm:$0xff]  }
 0x348   :  { %5782 = vmatprep.subr.bf16.mxu0 %v7530_v33  ;;  %v7564_v33 = vld [vmem:[#allocation8 + $0x3b0] ss:$8 sps:$4 sm:$0xff]  }
 0x34a   :  { %4780 = vmatpush1.bf16.msra.mxu1 %v6949_v15  ;;  %v7569_v15 = vld [vmem:[#allocation8 + $0x3c4] ss:$8 sps:$4 sm:$0xff]  }
 0x34b   :  { %5783 = vmatpush1.bf16.msra.mxu0 %v7528_v46  ;;  %v7567_v46 = vld [vmem:[#allocation8 + $0x3c0] ss:$8 sps:$4 sm:$0xff]  }
 0x34c   :  { %5805 = vmatprep.subr.bf16.mxu0 %v7533_v6  ;;  %v7572_v6 = vld [vmem:[#allocation8 + $0x3d4] ss:$8 sps:$4 sm:$0xff]  }
 0x34d   :  { %4798 = vmatmul.mubr.bf16.vlgmr.msra.gmra.mrb[24].mxu1 %v7678_v13  ;;  %v7570_v13 = vld [vmem:[#allocation8 + $0x3d0] ss:$8 sps:$4 sm:$0xff]  }
 0x34e   :  { %4807 = vmatprep.mubr.bf16.mxu1 %v7929_v45 }
 0x355   :  { %4808 = vmatmul.mubr.bf16.gmra.mrb[28].mxu1 %v7679_v16  ;;  %v7575_v16 = vld [vmem:[#allocation8 + $0x3e4] ss:$8 sps:$4 sm:$0xff]  }
 0x361   :  { %v4534_v25 = vpop.f32.mrb[8].mxu0 }
 0x362   :  { %v7182_v19 = vadd.f32 %v4534_v25, %v765_v24  ;;  %v4536_v31 = vpop.f32.mrb[9].mxu0  ;;  %v7581_v25 = vld [vmem:[#allocation11 + $0x4] ss:$8 sps:$4 sm:$0xff]  }
 0x363   :  { %v7183_v44 = vadd.f32 %v4536_v31, %v769_v40  ;;  %v4538_v26 = vpop.f32.mrb[10].mxu0  ;;  %6117 = vmatprep.subr.bf16.mxu1 %v7581_v25  ;;  %v7582_v31 = vld [vmem:[#allocation11 + $0x10] ss:$8 sps:$4 sm:$0xff]  }
 0x364   :  { %v7184_v8 = vadd.f32 %v4538_v26, %v765_v24  ;;  %v4540_v28 = vpop.f32.mrb[11].mxu0  ;;  %v4822_v35 = vmax.f32 %v7182_v19, 0.0  ;;  %v7584_v19 = vld [vmem:[#allocation11 + $0x14] ss:$8 sps:$4 sm:$0xff]   ;;  %v7585_v26 = vld [vmem:[#allocation11 + $0x20] ss:$8 sps:$4 sm:$0xff]  }
 0x365   :  { %v7185_v48 = vadd.f32 %v4540_v28, %v769_v40  ;;  %v4823_v50 = vmax.f32 %v7183_v44, 0.0  ;;  %v7587_v44 = vld [vmem:[#allocation11 + $0x24] ss:$8 sps:$4 sm:$0xff]   ;;  %v7588_v28 = vld [vmem:[#allocation11 + $0x30] ss:$8 sps:$4 sm:$0xff]  }
 0x366   :  { %v4830_v45 = vmax.f32 %v7184_v8, 0.0  ;;  %v7590_v8 = vld [vmem:[#allocation11 + $0x34] ss:$8 sps:$4 sm:$0xff]   ;;  %v7624_v25 = vld [vmem:[#allocation11 + $0xf0] ss:$8 sps:$4 sm:$0xff]  }
 0x367   :  { %v4831_v29 = vmax.f32 %v7185_v48, 0.0  ;;  %v7593_v48 = vld [vmem:[#allocation11 + $0x44] ss:$8 sps:$4 sm:$0xff]  }
 0x368   :  { %v4854_v30 = vpack.c.bf16 %v4830_v45, %v4822_v35  ;;  %v7591_v35 = vld [vmem:[#allocation11 + $0x40] ss:$8 sps:$4 sm:$0xff]   ;;  %v7596_v45 = vld [vmem:[#allocation11 + $0x54] ss:$8 sps:$4 sm:$0xff]  }
 0x369   :  { %v4855_v38 = vpack.c.bf16 %v4831_v29, %v4823_v50  ;;  %v4544_v42 = vpop.f32.mrb[12].mxu0  ;;  %v7594_v50 = vld [vmem:[#allocation11 + $0x50] ss:$8 sps:$4 sm:$0xff]   ;;  %v7599_v29 = vld [vmem:[#allocation11 + $0x64] ss:$8 sps:$4 sm:$0xff]  }
 0x36a   :  { %v7186_v37 = vadd.f32 %v4544_v42, %v765_v24  ;;  %v4546_v0 = vpop.f32.mrb[13].mxu0  ;;  %v776_v42 = vsub.s32 7, %v8194_v11 }
 0x36b   :  { %v7187_v41 = vadd.f32 %v4546_v0, %v769_v40  ;;  %v4548_v43 = vpop.f32.mrb[14].mxu0  ;;  %5784 = vmatprep.mubr.bf16.mxu0 %v4855_v38  ;;  %v772_v38 = vsub.s32 6, %v8194_v11 }
 0x36c   :  { %v7188_v61 = vadd.f32 %v4548_v43, %v765_v24  ;;  %v4550_v49 = vpop.f32.mrb[15].mxu0  ;;  %5785 = vmatmul.mubr.bf16.vlgmr.msra.gmra.mrb[16].mxu0 %v4854_v30  ;;  %v4838_v5 = vmax.f32 %v7186_v37, 0.0  ;;  %v7576_v24 = vld [vmem:[#allocation8 + $0x3f0] ss:$8 sps:$4 sm:$0xff]   ;;  %v7597_v30 = vld [vmem:[#allocation11 + $0x60] ss:$8 sps:$4 sm:$0xff]   ;;  %v777_v37 = vrot.slane %v8246_v55, %v776_v42 }
 0x36d   :  { %v7189_v51 = vadd.f32 %v4550_v49, %v769_v40  ;;  %5806 = vmatpush1.bf16.msra.mxu0 %v7531_v10  ;;  %v4839_v2 = vmax.f32 %v7187_v41, 0.0  ;;  %v7579_v40 = vld [vmem:[#allocation11] ss:$8 sps:$4 sm:$0xff]   ;;  %v773_v10 = vrot.slane %v8246_v55, %v772_v38 }
 0x36e   :  { %v4846_v39 = vmax.f32 %v7188_v61, 0.0  ;;  %5807 = vmatprep.subr.bf16.mxu0 %v7536_v63  ;;  %6118 = vmatpush1.bf16.msra.mxu1 %v7579_v40  ;;  %v7626_v40 = vld [vmem:[#allocation11 + $0xf4] ss:$8 sps:$4 sm:$0xff]  }
 0x36f   :  { %v4847_v12 = vmax.f32 %v7189_v51, 0.0  ;;  %6119 = vmatprep.subr.bf16.mxu1 %v7584_v19  ;;  %v7627_v19 = vld [vmem:[#allocation14 + $0x40] sm:$0xff]  }
 0x370   :  { %v4862_v17 = vpack.c.bf16 %v4846_v39, %v4838_v5 }
 0x371   :  { %v4863_v58 = vpack.c.bf16 %v4847_v12, %v4839_v2  ;;  %5808 = vmatpush1.bf16.msra.mxu0 %v7534_v36 }
 0x372   :  { %5809 = vmatprep.subr.bf16.mxu0 %v7539_v53  ;;  %6120 = vmatpush1.bf16.msra.mxu1 %v7582_v31  ;;  %v4994_v31 = vld [vmem:[#allocation10] sm:$0x3] }
 0x373   :  { %5794 = vmatprep.mubr.bf16.mxu0 %v4863_v58  ;;  %6121 = vmatprep.subr.bf16.mxu1 %v7587_v44  ;;  %v4999_v44 = vrot.slane %v4994_v31, %v8201_v27 }
 0x374   :  { %5795 = vmatmul.mubr.bf16.gmra.mrb[20].mxu0 %v4862_v17 }
 0x375   :  { %5810 = vmatpush1.bf16.msra.mxu0 %v7537_v59 }
 0x376   :  { %5811 = vmatprep.subr.bf16.mxu0 %v7542_v14  ;;  %6122 = vmatpush1.bf16.msra.mxu1 %v7585_v26  ;;  %v5003_v26 = vrot.slane %v4994_v31, %v8205_v34 }
 0x377   :  { %6123 = vmatprep.subr.bf16.mxu1 %v7590_v8 }
 0x379   :  { %5812 = vmatpush1.bf16.msra.mxu0 %v7540_v32 }
 0x37a   :  { %5813 = vmatprep.subr.bf16.mxu0 %v7545_v60  ;;  %6124 = vmatpush1.bf16.msra.mxu1 %v7588_v28 }
 0x37b   :  { %6125 = vmatprep.subr.bf16.mxu1 %v7593_v48 }
 0x37d   :  { %5814 = vmatpush1.bf16.msra.mxu0 %v7543_v21 }
 0x37e   :  { %5815 = vmatprep.subr.bf16.mxu0 %v7548_v56  ;;  %6126 = vmatpush1.bf16.msra.mxu1 %v7591_v35 }
 0x37f   :  { %6127 = vmatprep.subr.bf16.mxu1 %v7596_v45 }
 0x381   :  { %5816 = vmatpush1.bf16.msra.mxu0 %v7546_v62 }
 0x382   :  { %5817 = vmatprep.subr.bf16.mxu0 %v7551_v4  ;;  %6128 = vmatpush1.bf16.msra.mxu1 %v7594_v50 }
 0x383   :  { %6129 = vmatprep.subr.bf16.mxu1 %v7599_v29 }
 0x385   :  { %5818 = vmatpush1.bf16.msra.mxu0 %v7549_v23 }
 0x386   :  { %5819 = vmatprep.subr.bf16.mxu0 %v7554_v1  ;;  %6130 = vmatpush1.bf16.msra.mxu1 %v7597_v30 }
 0x389   :  { %5820 = vmatpush1.bf16.msra.mxu0 %v7552_v54 }
 0x38a   :  { %5821 = vmatprep.subr.bf16.mxu0 %v7557_v57  ;;  %v7602_v57 = vld [vmem:[#allocation11 + $0x74] ss:$8 sps:$4 sm:$0xff]  }
 0x38b   :  { %6131 = vmatprep.subr.bf16.mxu1 %v7602_v57 }
 0x38d   :  { %5822 = vmatpush1.bf16.msra.mxu0 %v7555_v3  ;;  %v7600_v3 = vld [vmem:[#allocation11 + $0x70] ss:$8 sps:$4 sm:$0xff]  }
 0x38e   :  { %5823 = vmatprep.subr.bf16.mxu0 %v7560_v9  ;;  %6132 = vmatpush1.bf16.msra.mxu1 %v7600_v3  ;;  %v7605_v9 = vld [vmem:[#allocation11 + $0x84] ss:$8 sps:$4 sm:$0xff]  }
 0x38f   :  { %6133 = vmatprep.subr.bf16.mxu1 %v7605_v9 }
 0x391   :  { %5824 = vmatpush1.bf16.msra.mxu0 %v7558_v47  ;;  %v7603_v47 = vld [vmem:[#allocation11 + $0x80] ss:$8 sps:$4 sm:$0xff]  }
 0x392   :  { %5825 = vmatprep.subr.bf16.mxu0 %v7563_v52  ;;  %6134 = vmatpush1.bf16.msra.mxu1 %v7603_v47  ;;  %v7608_v52 = vld [vmem:[#allocation11 + $0x94] ss:$8 sps:$4 sm:$0xff]  }
 0x393   :  { %6135 = vmatprep.subr.bf16.mxu1 %v7608_v52 }
 0x395   :  { %5826 = vmatpush1.bf16.msra.mxu0 %v7561_v7  ;;  %v7606_v7 = vld [vmem:[#allocation11 + $0x90] ss:$8 sps:$4 sm:$0xff]  }
 0x396   :  { %5827 = vmatprep.subr.bf16.mxu0 %v7566_v22  ;;  %6136 = vmatpush1.bf16.msra.mxu1 %v7606_v7  ;;  %v7611_v22 = vld [vmem:[#allocation11 + $0xa4] ss:$8 sps:$4 sm:$0xff]  }
 0x397   :  { %6137 = vmatprep.subr.bf16.mxu1 %v7611_v22 }
 0x399   :  { %5828 = vmatpush1.bf16.msra.mxu0 %v7564_v33  ;;  %v7609_v33 = vld [vmem:[#allocation11 + $0xa0] ss:$8 sps:$4 sm:$0xff]  }
 0x39a   :  { %5829 = vmatprep.subr.bf16.mxu0 %v7569_v15  ;;  %6138 = vmatpush1.bf16.msra.mxu1 %v7609_v33  ;;  %v7614_v15 = vld [vmem:[#allocation11 + $0xb4] ss:$8 sps:$4 sm:$0xff]  }
 0x39b   :  { %6139 = vmatprep.subr.bf16.mxu1 %v7614_v15 }
 0x39d   :  { %5830 = vmatpush1.bf16.msra.mxu0 %v7567_v46  ;;  %v7612_v46 = vld [vmem:[#allocation11 + $0xb0] ss:$8 sps:$4 sm:$0xff]  }
 0x39e   :  { %5831 = vmatprep.subr.bf16.mxu0 %v7572_v6  ;;  %6140 = vmatpush1.bf16.msra.mxu1 %v7612_v46  ;;  %v7617_v6 = vld [vmem:[#allocation11 + $0xc4] ss:$8 sps:$4 sm:$0xff]  }
 0x39f   :  { %6141 = vmatprep.subr.bf16.mxu1 %v7617_v6 }
 0x3a1   :  { %5832 = vmatpush1.bf16.msra.mxu0 %v7570_v13  ;;  %v7615_v13 = vld [vmem:[#allocation11 + $0xc0] ss:$8 sps:$4 sm:$0xff]  }
 0x3a2   :  { %5833 = vmatprep.subr.bf16.mxu0 %v7575_v16  ;;  %6142 = vmatpush1.bf16.msra.mxu1 %v7615_v13  ;;  %v7620_v16 = vld [vmem:[#allocation11 + $0xd4] ss:$8 sps:$4 sm:$0xff]  }
 0x3a3   :  { %6143 = vmatprep.subr.bf16.mxu1 %v7620_v16 }
 0x3a5   :  { %5834 = vmatpush1.bf16.msra.mxu0 %v7573_v18  ;;  %v7618_v18 = vld [vmem:[#allocation11 + $0xd0] ss:$8 sps:$4 sm:$0xff]  }
 0x3a6   :  { %5835 = vmatprep.subr.bf16.mxu0 %v7578_v20  ;;  %6144 = vmatpush1.bf16.msra.mxu1 %v7618_v18  ;;  %v7623_v20 = vld [vmem:[#allocation11 + $0xe4] ss:$8 sps:$4 sm:$0xff]  }
 0x3a7   :  { %6145 = vmatprep.subr.bf16.mxu1 %v7623_v20 }
 0x3a9   :  { %5836 = vmatpush1.bf16.msra.mxu0 %v7576_v24  ;;  %v7621_v24 = vld [vmem:[#allocation11 + $0xe0] ss:$8 sps:$4 sm:$0xff]  }
 0x3aa   :  { %6146 = vmatpush1.bf16.msra.mxu1 %v7621_v24 }
 0x3ab   :  { %6147 = vmatprep.subr.bf16.mxu1 %v7626_v40 }
 0x3ae   :  { %6148 = vmatpush1.bf16.msra.mxu1 %v7624_v25 }
 0x3af   :  { %7128 = vmatprep.subr.bf16.mxu1 %v7627_v19 }
 0x420   :  { %v4799_v0 = vpop.f32.mrb[24].mxu1 }
 0x421   :  { %v7190_v63 = vadd.f32 %v4799_v0, %v773_v10  ;;  %v4801_v41 = vpop.f32.mrb[25].mxu1 }
 0x422   :  { %v7191_v43 = vadd.f32 %v4801_v41, %v777_v37  ;;  %v4803_v61 = vpop.f32.mrb[26].mxu1 }
 0x423   :  { %v7192_v49 = vadd.f32 %v4803_v61, %v773_v10  ;;  %v4805_v51 = vpop.f32.mrb[27].mxu1  ;;  %v4824_v5 = vmax.f32 %v7190_v63, 0.0 }
 0x424   :  { %v7193_v36 = vadd.f32 %v4805_v51, %v777_v37  ;;  %v4825_v53 = vmax.f32 %v7191_v43, 0.0 }
 0x425   :  { %v4832_v39 = vmax.f32 %v7192_v49, 0.0 }
 0x426   :  { %v4833_v2 = vmax.f32 %v7193_v36, 0.0 }
 0x427   :  { %v4856_v12 = vpack.c.bf16 %v4832_v39, %v4824_v5 }
 0x428   :  { %v4857_v17 = vpack.c.bf16 %v4833_v2, %v4825_v53  ;;  %v4809_v58 = vpop.f32.mrb[28].mxu1 }
 0x429   :  { %v7194_v11 = vadd.f32 %v4809_v58, %v773_v10  ;;  %v4811_v59 = vpop.f32.mrb[29].mxu1 }
 0x42a   :  { %v7195_v14 = vadd.f32 %v4811_v59, %v777_v37  ;;  %v4813_v32 = vpop.f32.mrb[30].mxu1  ;;  %5837 = vmatprep.mubr.bf16.mxu0 %v4857_v17 }
 0x42b   :  { %v7196_v55 = vadd.f32 %v4813_v32, %v773_v10  ;;  %v4815_v60 = vpop.f32.mrb[31].mxu1  ;;  %5838 = vmatmul.mubr.bf16.vlgmr.msra.gmra.mrb[16].mxu0 %v4856_v12  ;;  %v4840_v56 = vmax.f32 %v7194_v11, 0.0 }
 0x42c   :  { %v7197_v21 = vadd.f32 %v4815_v60, %v777_v37  ;;  %v4841_v4 = vmax.f32 %v7195_v14, 0.0 }
 0x42d   :  { %v4848_v62 = vmax.f32 %v7196_v55, 0.0 }
 0x42e   :  { %v4849_v23 = vmax.f32 %v7197_v21, 0.0 }
 0x42f   :  { %v4864_v1 = vpack.c.bf16 %v4848_v62, %v4840_v56 }
 0x430   :  { %v4865_v54 = vpack.c.bf16 %v4849_v23, %v4841_v4 }
 0x432   :  { %5847 = vmatprep.mubr.bf16.mxu0 %v4865_v54 }
 0x433   :  { %5848 = vmatmul.mubr.bf16.gmra.mrb[20].mxu0 %v4864_v1 }
 0x4fe   :  { %v5839_v8 = vpop.f32.mrb[16].mxu0 }
 0x4ff   :  { %v7198_v28 = vadd.f32 %v5839_v8, %v4999_v44  ;;  %v5841_v48 = vpop.f32.mrb[17].mxu0 }
 0x500   :  { %v7199_v35 = vadd.f32 %v5841_v48, %v5003_v26  ;;  %v5843_v45 = vpop.f32.mrb[18].mxu0 }
 0x501   :  { %v7200_v50 = vadd.f32 %v5843_v45, %v4999_v44  ;;  %v5845_v29 = vpop.f32.mrb[19].mxu0  ;;  %v5858_v38 = vmax.f32 %v7198_v28, 0.0  ;;  %v7628_v28 = vld [vmem:[#allocation14] sm:$0xff]   ;;  %v7630_v45 = vld [vmem:[#allocation14 + $0x8] sm:$0xff]  }
 0x502   :  { %v7201_v30 = vadd.f32 %v5845_v29, %v5003_v26  ;;  %v5859_v10 = vmax.f32 %v7199_v35, 0.0  ;;  %v7629_v35 = vld [vmem:[#allocation14 + $0x48] sm:$0xff]   ;;  %v7632_v29 = vld [vmem:[#allocation14 + $0x10] sm:$0xff]  }
 0x503   :  { %v5860_v42 = vmax.f32 %v7200_v50, 0.0  ;;  %v7631_v50 = vld [vmem:[#allocation14 + $0x50] sm:$0xff]  }
 0x504   :  { %v5861_v37 = vmax.f32 %v7201_v30, 0.0  ;;  %v7633_v30 = vld [vmem:[#allocation14 + $0x58] sm:$0xff]  }
 0x505   :  { %v5866_v0 = vmax.f32 %v5858_v38, %v5860_v42  ;;  %v7634_v38 = vld [vmem:[#allocation14 + $0x18] sm:$0xff]   ;;  %v7635_v42 = vld [vmem:[#allocation14 + $0x60] sm:$0xff]  }
 0x506   :  { %v5873_v63 = vmax.f32 %v5859_v10, %v5861_v37  ;;  %v5849_v41 = vpop.f32.mrb[20].mxu0  ;;  %v7636_v10 = vld [vmem:[#allocation14 + $0x20] sm:$0xff]   ;;  %v7637_v37 = vld [vmem:[#allocation14 + $0x68] sm:$0xff]  }
 0x507   :  { %v5867_v43 = vrot.slane %v5866_v0, 4  ;;  %v7202_v61 = vadd.f32 %v5849_v41, %v4999_v44  ;;  %v5851_v49 = vpop.f32.mrb[21].mxu0  ;;  %v7640_v41 = vld [vmem:[#allocation14 + $0x30] sm:$0xff]  }
 0x508   :  { %v5874_v51 = vrot.slane %v5873_v63, 4  ;;  %v7203_v36 = vadd.f32 %v5851_v49, %v5003_v26  ;;  %v5853_v5 = vpop.f32.mrb[22].mxu0  ;;  %v5930_v49 = vld [vmem:[#allocation13] sm:$0x3] }
 0x509   :  { %v5868_v39 = vmax.f32 %v5866_v0, %v5867_v43  ;;  %v7204_v53 = vadd.f32 %v5853_v5, %v4999_v44  ;;  %v5855_v2 = vpop.f32.mrb[23].mxu0  ;;  %v5862_v11 = vmax.f32 %v7202_v61, 0.0  ;;  %v7638_v0 = vld [vmem:[#allocation14 + $0x28] sm:$0xff]   ;;  %v7641_v43 = vld [vmem:[#allocation14 + $0x78] sm:$0xff]  }
 0x50a   :  { %v5875_v12 = vmax.f32 %v5873_v63, %v5874_v51  ;;  %v7205_v17 = vadd.f32 %v5855_v2, %v5003_v26  ;;  %v5863_v32 = vmax.f32 %v7203_v36, 0.0  ;;  %v7639_v63 = vld [vmem:[#allocation14 + $0x70] sm:$0xff]   ;;  %v7642_v61 = vld [vmem:[#allocation14 + $0x38] sm:$0xff]   ;;  %v5935_v51 = vrot.slane %v5930_v49, %v8201_v27 }
 0x50b   :  { %v5869_v58 = vrot.slane %v5868_v39, 2  ;;  %v5864_v59 = vmax.f32 %v7204_v53, 0.0  ;;  %v5939_v36 = vrot.slane %v5930_v49, %v8205_v34 }
 0x50c   :  { %v5876_v14 = vrot.slane %v5875_v12, 2  ;;  %v5865_v55 = vmax.f32 %v7205_v17, 0.0 }
 0x50d   :  { %v5870_v60 = vmax.f32 %v5868_v39, %v5869_v58  ;;  %v5880_v21 = vmax.f32 %v5862_v11, %v5864_v59 }
 0x50e   :  { %v5877_v56 = vmax.f32 %v5875_v12, %v5876_v14  ;;  %v5887_v62 = vmax.f32 %v5863_v32, %v5865_v55  ;;  %v7111_v55 = vld [vmem:[#allocation16] ss:$0 sm:$0xff] }
 0x50f   :  { %v5881_v4 = vrot.slane %v5880_v21, 4  ;;  %v5871_v1 = vrot.slane %v5870_v60, 1 }
 0x510   :  { %v5888_v23 = vrot.slane %v5887_v62, 4  ;;  %v5878_v57 = vrot.slane %v5877_v56, 1 }
 0x511   :  { %v5882_v54 = vmax.f32 %v5880_v21, %v5881_v4  ;;  %v5872_v52 = vmax.f32 %v5870_v60, %v5871_v1 }
 0x512   :  { %v5889_v3 = vmax.f32 %v5887_v62, %v5888_v23  ;;  %v5879_v22 = vmax.f32 %v5877_v56, %v5878_v57 }
 0x513   :  { %v5883_v9 = vrot.slane %v5882_v54, 2  ;;  %v5894_v6 = vpack.c.bf16 %v5872_v52, %v5872_v52 }
 0x514   :  { %v5890_v47 = vrot.slane %v5889_v3, 2  ;;  %v5895_v18 = vpack.c.bf16 %v5879_v22, %v5879_v22 }
 0x515   :  { %v5884_v7 = vmax.f32 %v5882_v54, %v5883_v9  ;;  %v5946_v40 = vunpack.c.l.b16 %v5894_v6 }
 0x516   :  { %v5891_v33 = vmax.f32 %v5889_v3, %v5890_v47  ;;  %v5947_v19 = vunpack.c.l.b16 %v5895_v18 }
 0x517   :  { %v5885_v15 = vrot.slane %v5884_v7, 1 }
 0x518   :  { %v5892_v46 = vrot.slane %v5891_v33, 1 }
 0x519   :  { %v5886_v13 = vmax.f32 %v5884_v7, %v5885_v15 }
 0x51a   :  { %v5893_v16 = vmax.f32 %v5891_v33, %v5892_v46 }
 0x51b   :  { %v5896_v20 = vpack.c.bf16 %v5886_v13, %v5886_v13 }
 0x51c   :  { %v5897_v24 = vpack.c.bf16 %v5893_v16, %v5893_v16 }
 0x51d   :  { %v5948_v25 = vunpack.c.l.b16 %v5896_v20 }
 0x51e   :  { %v5949_v31 = vunpack.c.l.b16 %v5897_v24 }
 0x51f   :  { %v5951_v44 = vsel %vm5950_vm0, %v5948_v25, %v5946_v40 }
 0x520   :  { %v5952_v26 = vsel %vm5950_vm0, %v5949_v31, %v5947_v19  ;;  %v5953_v48 = vpack.c.b16 %v5951_v44, %v5951_v44 }
 0x521   :  { %v5954_v8 = vpack.c.b16 %v5952_v26, %v5952_v26 }
 0x523   :  { %6149 = vmatprep.mubr.bf16.mxu1 %v5954_v8 }
 0x524   :  { %6150 = vmatmul.mubr.bf16.vlgmr.msra.gmra.mrb[32].mxu1 %v5953_v48 }
 0x525   :  { %7129 = vmatpush3.bf16.msra.mxu1 %v7628_v28 }
 0x526   :  { %7130 = vmatprep.subr.bf16.mxu1 %v7629_v35 }
 0x529   :  { %7131 = vmatpush3.bf16.msra.mxu1 %v7630_v45 }
 0x52a   :  { %7132 = vmatprep.subr.bf16.mxu1 %v7631_v50 }
 0x52d   :  { %7133 = vmatpush3.bf16.msra.mxu1 %v7632_v29 }
 0x52e   :  { %7134 = vmatprep.subr.bf16.mxu1 %v7633_v30 }
 0x531   :  { %7135 = vmatpush3.bf16.msra.mxu1 %v7634_v38 }
 0x532   :  { %7136 = vmatprep.subr.bf16.mxu1 %v7635_v42 }
 0x535   :  { %7137 = vmatpush3.bf16.msra.mxu1 %v7636_v10 }
 0x536   :  { %7138 = vmatprep.subr.bf16.mxu1 %v7637_v37 }
 0x539   :  { %7139 = vmatpush3.bf16.msra.mxu1 %v7638_v0 }
 0x53a   :  { %7140 = vmatprep.subr.bf16.mxu1 %v7639_v63 }
 0x53d   :  { %7141 = vmatpush3.bf16.msra.mxu1 %v7640_v41 }
 0x53e   :  { %7142 = vmatprep.subr.bf16.mxu1 %v7641_v43 }
 0x541   :  { %7143 = vmatpush3.bf16.msra.mxu1 %v7642_v61 }
 0x5f7   :  { %v6151_v5 = vpop.f32.mrb[32].mxu1 }
 0x5f8   :  { %v6152_v39 = vadd.f32 %v6151_v5, %v5935_v51  ;;  %v6153_v53 = vpop.f32.mrb[33].mxu1 }
 0x5f9   :  { %v6154_v2 = vadd.f32 %v6153_v53, %v5939_v36  ;;  %v6155_v12 = vpop.f32.mrb[34].mxu1 }
 0x5fa   :  { %v6158_v17 = vmax.f32 %v6152_v39, 0.0  ;;  %v6156_v58 = vpop.f32.mrb[35].mxu1 }
 0x5fb   :  { %v6159_v11 = vmax.f32 %v6154_v2, 0.0 }
 0x5fc   :  { %v6160_v14 = vpack.c.bf16 %v6158_v17, %v6158_v17 }
 0x5fd   :  { %v6161_v59 = vpack.c.bf16 %v6159_v11, %v6159_v11 }
 0x5ff   :  { %6329 = vmatprep.mubr.bf16.mxu1 %v6161_v59 }
 0x600   :  { %6330 = vmatmul.mubr.bf16.vlgmr.msra.gmra.mrb[36].mxu1 %v6160_v14 }
 0x6d3   :  { %v7144_v32 = vpop.f32.mrb[36].mxu1 }
 0x6d4   :  { %v7145_v60 = vpop.f32.mrb[37].mxu1 }
 0x6d5   :  { %v7146_v27 = vadd.f32 %v7145_v60, %v7144_v32  ;;  %v7147_v21 = vpop.f32.mrb[38].mxu1 }
 0x6d6   :  { %v7148_v34 = vpop.f32.mrb[39].mxu1 }
 0x6d7   :  { %v6332_v56 = vadd.f32 %v7146_v27, %v7111_v55 }
 0x6d9   :  { %6337 = vst [vmem:[#allocation17] sm:$0x3] %v6332_v56 }
 0x6da   :  { %7889 = shalt.err (!%p7886_p6)
}
 0x6db   :  { %s7890_s18 = scalar_lea.hbm %s8285_s9, 32 }
 0x6dc   :  { %p7891_p7 = scmp.ne.s32.totalorder %s8285_s9, %s7890_s18  ;;  %p7894_p8 = scmp.lt.u32.totalorder %s7890_s18, %s8285_s9 }
 0x6de   :  { %p7896_p9 = pnand %p7894_p8, %p7891_p7 }
 0x6e0   :  { %7899 = shalt.err (!%p7896_p9)
}
 0x6e1   :  { %6347 = dma.vmem_to_hbm [thread:$0]  %s6345_s3, 32, %s8285_s9, [#allocation4]  }
 0x6e2   :  { %7910 = dma.done.wait [#allocation4], 32  }
 0x6e3   :  { %7911 = vsyncadd [#allocation4], 4294967264 }
 0x6e4   :  { %6351 = vsyncpa [#allocation3], 1 }
 0x6e5   :  { %6352 = vsyncpa [#allocation6], 1 }
 0x6e6   :  { %6353 = vsyncpa [#allocation9], 1 }
 0x6e7   :  { %6354 = vsyncpa [#allocation12], 1 }
 0x6e8   :  { %6355 = vsyncpa [#allocation15], 1 }
 0x6e9   :  { %6356 = vsyncpa [#allocation4], 1 }

</bundles_post_ra>
